<compile_context>
chip_gen: v7x
topology: tpu7x:2x2x1
jax: 0.10.0
libtpu: 0.0.40
codegen_flags: <defaults>
</compile_context>

<pallas_src>
import functools

import jax
import jax.numpy as jnp
from jax import lax
from jax.experimental import pallas as pl
from jax.experimental.pallas import tpu as pltpu


# ----------------------------- Pallas kernel -------------------------------- #

def _upconv_fused_kernel(x_ref, g_ref, gam2_ref, bet2_ref, o_ref,
                         y_vmem, patch_vmem, sum_vmem, sq_vmem,
                         *, H, W, Cin, Cout, N, eps):
    """Fused UpConv forward.

    grid = (2, N): axis 0 = stage (0: conv+stats, 1: BN+ReLU), axis 1 = batch.
      x_ref:     (1, H+2, W+2, Cin)     original-resolution input, zero halo of 1
      g_ref:     (2, 6*Cin, 2*Cout)     folded phase weights; g_ref[a] per row parity
      gam2_ref:  (1, 2*Cout)            gamma tiled to the (b, c) lane layout
      bet2_ref:  (1, 2*Cout)            beta  tiled to the (b, c) lane layout
      o_ref:     (1, 2, H*W, 2*Cout)    out[0,a,i*W+j,b*Cout+c] = act[2i+a, 2j+b, c]
      y_vmem:    (2*N, H*W, 2*Cout)     conv output, resident in VMEM across grid
      patch_vmem:(2, H, W, 6*Cin)       im2col scratch per row parity
      sum_vmem:  (1, 2*Cout)            running batch sums        (BN stats)
      sq_vmem:   (1, 2*Cout)            running batch sums of sq  (BN stats)
    """
    stage = pl.program_id(0)
    n = pl.program_id(1)
    HW = H * W

    # ------------------------- stage 0: conv + stats ------------------------ #
    @pl.when(stage == 0)
    def _conv_stage():
        @pl.when(n == 0)
        def _():
            sum_vmem[...] = jnp.zeros_like(sum_vmem)
            sq_vmem[...] = jnp.zeros_like(sq_vmem)

        # Assemble the two im2col patches: K = (2 row taps) x (3 col taps) x Cin.
        for a in (0, 1):
            for dr in (0, 1):
                for dc in (0, 1, 2):
                    col = (dr * 3 + dc) * Cin
                    patch_vmem[a, :, :, col:col + Cin] = \
                        x_ref[0, a + dr:a + dr + H, dc:dc + W, :]

        s_acc = sum_vmem[...]
        q_acc = sq_vmem[...]
        for a in (0, 1):
            p = patch_vmem[a].reshape(HW, 6 * Cin)
            r = jnp.dot(p, g_ref[a], preferred_element_type=jnp.float32)  # (HW, 2*Cout)
            y_vmem[2 * n + a] = r
            s_acc = s_acc + jnp.sum(r, axis=0, keepdims=True)
            q_acc = q_acc + jnp.sum(r * r, axis=0, keepdims=True)
        sum_vmem[...] = s_acc
        sq_vmem[...] = q_acc

    # ----------------------- stage 1: BN + ReLU + store --------------------- #
    @pl.when(stage == 1)
    def _bn_stage():
        inv_cnt = 1.0 / float(N * 4 * H * W)          # count over (N, 2H, 2W)
        s = sum_vmem[...]                             # (1, 2*Cout) per-(b,c) sums
        q = sq_vmem[...]
        # fold the two column parities into per-channel totals, then re-double
        tot = s[:, :Cout] + s[:, Cout:]               # (1, Cout)
        tot2 = q[:, :Cout] + q[:, Cout:]
        totd = jnp.concatenate([tot, tot], axis=-1)   # (1, 2*Cout)
        tot2d = jnp.concatenate([tot2, tot2], axis=-1)
        mu = totd * inv_cnt
        var = jnp.maximum(tot2d * inv_cnt - mu * mu, 0.0)  # biased, like PyTorch
        scale = gam2_ref[...] * lax.rsqrt(var + eps)
        shift = bet2_ref[...] - mu * scale
        for a in (0, 1):
            ya = y_vmem[2 * n + a]                    # (HW, 2*Cout), still in VMEM
            o_ref[0, a] = jnp.maximum(ya * scale + shift, 0.0)


# --------------------------- host-side weight fold -------------------------- #

def _fold_phase_weights(w):
    """w: (3,3,Cin,Cout) HWIO -> (2, 6*Cin, 2*Cout) folded sub-pixel weights.

    Row taps (dr) fold the 3 conv rows per output-row parity a; column taps (dc)
    keep 3 positions with per-output-phase-b folding of the 3 conv columns.
    K-order: (dr, dc, ci); N-order: (b, co).
    """
    Cin, Cout = w.shape[2], w.shape[3]
    gs = []
    for a in (0, 1):
        if a == 0:
            wr = jnp.stack([w[0], w[1] + w[2]], axis=0)       # (2,3,Cin,Cout)
        else:
            wr = jnp.stack([w[0] + w[1], w[2]], axis=0)
        z = jnp.zeros_like(wr[:, 0])
        cb0 = jnp.stack([wr[:, 0], wr[:, 1] + wr[:, 2], z], axis=1)   # b=0
        cb1 = jnp.stack([z, wr[:, 0] + wr[:, 1], wr[:, 2]], axis=1)   # b=1
        g = jnp.stack([cb0, cb1], axis=3)                             # (2,3,Cin,2,Cout)
        gs.append(g.reshape(6 * Cin, 2 * Cout))
    return jnp.stack(gs, axis=0)                                      # (2,6*Cin,2*Cout)


# ------------------------------ host wrapper ------------------------------- #

def upconv_forward(x_nchw, w_hwio, bias, gamma, beta, eps=1e-5):
    """x_nchw: (N, Cin, H, W) float32 -> (N, Cout, 2H, 2W) float32.

    The conv bias is intentionally unused: a per-channel constant added before
    train-mode BatchNorm cancels exactly in the normalization.
    """
    del bias
    N, Cin, H, W = x_nchw.shape
    Cout = w_hwio.shape[-1]
    Hu, Wu = 2 * H, 2 * W

    # glue: NCHW -> NHWC and a 1-pixel zero halo at the ORIGINAL resolution.
    x = jnp.transpose(x_nchw, (0, 2, 3, 1))                    # (N, H, W, Cin)
    x_pad = jnp.pad(x, ((0, 0), (1, 1), (1, 1), (0, 0)))       # (N, H+2, W+2, Cin)
    g = _fold_phase_weights(w_hwio)                            # (2, 6*Cin, 2*Cout)
    gam2 = jnp.tile(gamma, 2).reshape(1, 2 * Cout)             # (b, c) lane layout
    bet2 = jnp.tile(beta, 2).reshape(1, 2 * Cout)

    # TODO(synk): for large N*H*W add a spatial (row-tile + halo) grid axis and spill
    # y to HBM (previous two-pass design) instead of holding it whole in VMEM.
    kernel = functools.partial(_upconv_fused_kernel,
                               H=H, W=W, Cin=Cin, Cout=Cout, N=N, eps=float(eps))
    y_out = pl.pallas_call(
        kernel,
        out_shape=jax.ShapeDtypeStruct((N, 2, H * W, 2 * Cout), jnp.float32),
        grid=(2, N),
        in_specs=[
            # stage 0 reads sample n; stage 1 parks on block 0 (no redundant fetches)
            pl.BlockSpec((1, H + 2, W + 2, Cin), lambda s, n: ((1 - s) * n, 0, 0, 0)),
            pl.BlockSpec((2, 6 * Cin, 2 * Cout), lambda s, n: (0, 0, 0)),
            pl.BlockSpec((1, 2 * Cout), lambda s, n: (0, 0)),
            pl.BlockSpec((1, 2 * Cout), lambda s, n: (0, 0)),
        ],
        # stage 0 keeps block 0 resident (never flushed with garbage); stage 1 writes
        # block n with the final activations.
        out_specs=pl.BlockSpec((1, 2, H * W, 2 * Cout), lambda s, n: (s * n, 0, 0, 0)),
        scratch_shapes=[
            pltpu.VMEM((2 * N, H * W, 2 * Cout), jnp.float32),   # y (batch-resident)
            pltpu.VMEM((2, H, W, 6 * Cin), jnp.float32),         # im2col patch
            pltpu.VMEM((1, 2 * Cout), jnp.float32),              # BN sum accum
            pltpu.VMEM((1, 2 * Cout), jnp.float32),              # BN sumsq accum
        ],
        compiler_params=pltpu.CompilerParams(
            dimension_semantics=("arbitrary", "arbitrary"),
            vmem_limit_bytes=32 * 1024 * 1024),
    )(x_pad, g, gam2, bet2)

    # --- glue: interleave phases + NHWC -> NCHW in a single XLA transpose pass ---
    # TODO(synk): fold this final transpose into the kernel's store pattern.
    out6 = y_out.reshape(N, 2, H, W, 2, Cout)                   # (n, a, i, j, b, c)
    out = jnp.transpose(out6, (0, 5, 2, 1, 3, 4))               # (n, c, i, a, j, b)
    return out.reshape(N, Cout, Hu, Wu)


# --------------------------- reference (pure JAX) --------------------------- #

def upconv_reference(x_nchw, w_hwio, bias, gamma, beta, eps=1e-5):
    x = jnp.transpose(x_nchw, (0, 2, 3, 1))
    x_up = jnp.repeat(jnp.repeat(x, 2, axis=1), 2, axis=2)
    y = lax.conv_general_dilated(
        x_up, w_hwio, window_strides=(1, 1), padding=((1, 1), (1, 1)),
        dimension_numbers=("NHWC", "HWIO", "NHWC")) + bias
    mu = jnp.mean(y, axis=(0, 1, 2))
    var = jnp.mean((y - mu) ** 2, axis=(0, 1, 2))
    y = (y - mu) / jnp.sqrt(var + eps) * gamma + beta
    y = jnp.maximum(y, 0.0)
    return jnp.transpose(y, (0, 3, 1, 2))


# ---------------------------------- main ------------------------------------ #

if __name__ == "__main__":
    key = jax.random.PRNGKey(0)
    k_x, k_w, k_b = jax.random.split(key, 3)

    N, Cin, H, W = 2, 4, 16, 16
    Cout = 8

    x = jax.random.normal(k_x, (N, Cin, H, W), dtype=jnp.float32)

    # Conv2d weight in HWIO for the NHWC math; BatchNorm2d default init: gamma=1, beta=0.
    w = 0.1 * jax.random.normal(k_w, (3, 3, Cin, Cout), dtype=jnp.float32)
    b = 0.1 * jax.random.normal(k_b, (Cout,), dtype=jnp.float32)
    gamma = jnp.ones((Cout,), dtype=jnp.float32)
    beta = jnp.zeros((Cout,), dtype=jnp.float32)

    out = jax.jit(upconv_forward)(x, w, b, gamma, beta)
    out = jax.block_until_ready(out)

    ref = upconv_reference(x, w, b, gamma, beta)
    assert out.shape == (N, Cout, 2 * H, 2 * W), out.shape
    assert jnp.allclose(out, ref, atol=2e-4, rtol=2e-4), float(jnp.max(jnp.abs(out - ref)))

    print("KERNEL_OK")
</pallas_src>

<mosaic_0001>
module attributes {stable_mosaic.version = 11 : i64} {
  func.func @_upconv_fused_kernel(%arg0: i32, %arg1: i32, %arg2: memref<1x18x18x4xf32, #tpu.memory_space<vmem>>, %arg3: memref<2x24x16xf32, #tpu.memory_space<vmem>>, %arg4: memref<1x16xf32, #tpu.memory_space<vmem>>, %arg5: memref<1x16xf32, #tpu.memory_space<vmem>>, %arg6: memref<1x2x256x16xf32, #tpu.memory_space<vmem>>, %arg7: memref<4x256x16xf32, #tpu.memory_space<vmem>>, %arg8: memref<2x16x16x24xf32, #tpu.memory_space<vmem>>, %arg9: memref<1x16xf32, #tpu.memory_space<vmem>>, %arg10: memref<1x16xf32, #tpu.memory_space<vmem>>) attributes {dimension_semantics = [#tpu.dimension_semantics<arbitrary>, #tpu.dimension_semantics<arbitrary>], iteration_bounds = array<i64: 2, 2>, scalar_prefetch = 0 : i64, scratch_operands = 4 : i64, tpu.core_type = #tpu.core_type<tc>, window_params = [{transform_indices = @transform_0, window_bounds = array<i64: 1, 18, 18, 4>}, {pipeline_mode = #tpu.pipeline_mode<synchronous>, transform_indices = @transform_1, window_bounds = array<i64: 2, 24, 16>}, {pipeline_mode = #tpu.pipeline_mode<synchronous>, transform_indices = @transform_2, window_bounds = array<i64: 1, 16>}, {pipeline_mode = #tpu.pipeline_mode<synchronous>, transform_indices = @transform_3, window_bounds = array<i64: 1, 16>}, {transform_indices = @transform_4, window_bounds = array<i64: 1, 2, 256, 16>}]} {
    %c0_i32 = arith.constant 0 : i32
    %0 = arith.cmpi eq, %arg0, %c0_i32 : i32
    %1 = arith.extui %0 : i1 to i32
    %c0_i32_0 = arith.constant 0 : i32
    %2 = arith.cmpi ne, %1, %c0_i32_0 : i32
    scf.if %2 {
      %c0_i32_2 = arith.constant 0 : i32
      %6 = arith.cmpi eq, %arg1, %c0_i32_2 : i32
      %7 = arith.extui %6 : i1 to i32
      %c0_i32_3 = arith.constant 0 : i32
      %8 = arith.cmpi ne, %7, %c0_i32_3 : i32
      scf.if %8 {
        %cst_126 = arith.constant 0.000000e+00 : f32
        %111 = vector.broadcast %cst_126 : f32 to vector<1x16xf32>
        %c0_127 = arith.constant 0 : index
        %c0_128 = arith.constant 0 : index
        %112 = vector.load %arg9[%c0_127, %c0_128] : memref<1x16xf32, #tpu.memory_space<vmem>>, vector<1x16xf32>
        tpu.vector_store %arg9[%c0_127, %c0_128], %111 {strides = array<i32>} : memref<1x16xf32, #tpu.memory_space<vmem>>, vector<1x16xf32>,
        %cst_129 = arith.constant 0.000000e+00 : f32
        %113 = vector.broadcast %cst_129 : f32 to vector<1x16xf32>
        %c0_130 = arith.constant 0 : index
        %c0_131 = arith.constant 0 : index
        %114 = vector.load %arg10[%c0_130, %c0_131] : memref<1x16xf32, #tpu.memory_space<vmem>>, vector<1x16xf32>
        tpu.vector_store %arg10[%c0_130, %c0_131], %113 {strides = array<i32>} : memref<1x16xf32, #tpu.memory_space<vmem>>, vector<1x16xf32>,
      } else {
      }
      %c0 = arith.constant 0 : index
      %c0_4 = arith.constant 0 : index
      %c0_5 = arith.constant 0 : index
      %c0_6 = arith.constant 0 : index
      %9 = vector.load %arg2[%c0, %c0_4, %c0_5, %c0_6] : memref<1x18x18x4xf32, #tpu.memory_space<vmem>>, vector<1x16x16x4xf32>
      %10 = vector.shape_cast %9 : vector<1x16x16x4xf32> to vector<16x16x4xf32>
      %c0_7 = arith.constant 0 : index
      %c0_8 = arith.constant 0 : index
      %c0_9 = arith.constant 0 : index
      %c0_10 = arith.constant 0 : index
      %11 = vector.load %arg8[%c0_7, %c0_8, %c0_9, %c0_10] : memref<2x16x16x24xf32, #tpu.memory_space<vmem>>, vector<1x16x16x4xf32>
      %12 = vector.shape_cast %11 : vector<1x16x16x4xf32> to vector<16x16x4xf32>
      %13 = vector.shape_cast %10 : vector<16x16x4xf32> to vector<1x16x16x4xf32>
      tpu.vector_store %arg8[%c0_7, %c0_8, %c0_9, %c0_10], %13 {strides = array<i32>} : memref<2x16x16x24xf32, #tpu.memory_space<vmem>>, vector<1x16x16x4xf32>,
      %c0_11 = arith.constant 0 : index
      %c0_12 = arith.constant 0 : index
      %c1 = arith.constant 1 : index
      %c0_13 = arith.constant 0 : index
      %14 = vector.load %arg2[%c0_11, %c0_12, %c1, %c0_13] : memref<1x18x18x4xf32, #tpu.memory_space<vmem>>, vector<1x16x16x4xf32>
      %15 = vector.shape_cast %14 : vector<1x16x16x4xf32> to vector<16x16x4xf32>
      %c0_14 = arith.constant 0 : index
      %c0_15 = arith.constant 0 : index
      %c0_16 = arith.constant 0 : index
      %c4 = arith.constant 4 : index
      %16 = vector.load %arg8[%c0_14, %c0_15, %c0_16, %c4] : memref<2x16x16x24xf32, #tpu.memory_space<vmem>>, vector<1x16x16x4xf32>
      %17 = vector.shape_cast %16 : vector<1x16x16x4xf32> to vector<16x16x4xf32>
      %18 = vector.shape_cast %15 : vector<16x16x4xf32> to vector<1x16x16x4xf32>
      tpu.vector_store %arg8[%c0_14, %c0_15, %c0_16, %c4], %18 {strides = array<i32>} : memref<2x16x16x24xf32, #tpu.memory_space<vmem>>, vector<1x16x16x4xf32>,
      %c0_17 = arith.constant 0 : index
      %c0_18 = arith.constant 0 : index
      %c2 = arith.constant 2 : index
      %c0_19 = arith.constant 0 : index
      %19 = vector.load %arg2[%c0_17, %c0_18, %c2, %c0_19] : memref<1x18x18x4xf32, #tpu.memory_space<vmem>>, vector<1x16x16x4xf32>
      %20 = vector.shape_cast %19 : vector<1x16x16x4xf32> to vector<16x16x4xf32>
      %c0_20 = arith.constant 0 : index
      %c0_21 = arith.constant 0 : index
      %c0_22 = arith.constant 0 : index
      %c8 = arith.constant 8 : index
      %21 = vector.load %arg8[%c0_20, %c0_21, %c0_22, %c8] : memref<2x16x16x24xf32, #tpu.memory_space<vmem>>, vector<1x16x16x4xf32>
      %22 = vector.shape_cast %21 : vector<1x16x16x4xf32> to vector<16x16x4xf32>
      %23 = vector.shape_cast %20 : vector<16x16x4xf32> to vector<1x16x16x4xf32>
      tpu.vector_store %arg8[%c0_20, %c0_21, %c0_22, %c8], %23 {strides = array<i32>} : memref<2x16x16x24xf32, #tpu.memory_space<vmem>>, vector<1x16x16x4xf32>,
      %c0_23 = arith.constant 0 : index
      %c1_24 = arith.constant 1 : index
      %c0_25 = arith.constant 0 : index
      %c0_26 = arith.constant 0 : index
      %24 = vector.load %arg2[%c0_23, %c1_24, %c0_25, %c0_26] : memref<1x18x18x4xf32, #tpu.memory_space<vmem>>, vector<1x16x16x4xf32>
      %25 = vector.shape_cast %24 : vector<1x16x16x4xf32> to vector<16x16x4xf32>
      %c0_27 = arith.constant 0 : index
      %c0_28 = arith.constant 0 : index
      %c0_29 = arith.constant 0 : index
      %c12 = arith.constant 12 : index
      %26 = vector.load %arg8[%c0_27, %c0_28, %c0_29, %c12] : memref<2x16x16x24xf32, #tpu.memory_space<vmem>>, vector<1x16x16x4xf32>
      %27 = vector.shape_cast %26 : vector<1x16x16x4xf32> to vector<16x16x4xf32>
      %28 = vector.shape_cast %25 : vector<16x16x4xf32> to vector<1x16x16x4xf32>
      tpu.vector_store %arg8[%c0_27, %c0_28, %c0_29, %c12], %28 {strides = array<i32>} : memref<2x16x16x24xf32, #tpu.memory_space<vmem>>, vector<1x16x16x4xf32>,
      %c0_30 = arith.constant 0 : index
      %c1_31 = arith.constant 1 : index
      %c1_32 = arith.constant 1 : index
      %c0_33 = arith.constant 0 : index
      %29 = vector.load %arg2[%c0_30, %c1_31, %c1_32, %c0_33] : memref<1x18x18x4xf32, #tpu.memory_space<vmem>>, vector<1x16x16x4xf32>
      %30 = vector.shape_cast %29 : vector<1x16x16x4xf32> to vector<16x16x4xf32>
      %c0_34 = arith.constant 0 : index
      %c0_35 = arith.constant 0 : index
      %c0_36 = arith.constant 0 : index
      %c16 = arith.constant 16 : index
      %31 = vector.load %arg8[%c0_34, %c0_35, %c0_36, %c16] : memref<2x16x16x24xf32, #tpu.memory_space<vmem>>, vector<1x16x16x4xf32>
      %32 = vector.shape_cast %31 : vector<1x16x16x4xf32> to vector<16x16x4xf32>
      %33 = vector.shape_cast %30 : vector<16x16x4xf32> to vector<1x16x16x4xf32>
      tpu.vector_store %arg8[%c0_34, %c0_35, %c0_36, %c16], %33 {strides = array<i32>} : memref<2x16x16x24xf32, #tpu.memory_space<vmem>>, vector<1x16x16x4xf32>,
      %c0_37 = arith.constant 0 : index
      %c1_38 = arith.constant 1 : index
      %c2_39 = arith.constant 2 : index
      %c0_40 = arith.constant 0 : index
      %34 = vector.load %arg2[%c0_37, %c1_38, %c2_39, %c0_40] : memref<1x18x18x4xf32, #tpu.memory_space<vmem>>, vector<1x16x16x4xf32>
      %35 = vector.shape_cast %34 : vector<1x16x16x4xf32> to vector<16x16x4xf32>
      %c0_41 = arith.constant 0 : index
      %c0_42 = arith.constant 0 : index
      %c0_43 = arith.constant 0 : index
      %c20 = arith.constant 20 : index
      %36 = vector.load %arg8[%c0_41, %c0_42, %c0_43, %c20] : memref<2x16x16x24xf32, #tpu.memory_space<vmem>>, vector<1x16x16x4xf32>
      %37 = vector.shape_cast %36 : vector<1x16x16x4xf32> to vector<16x16x4xf32>
      %38 = vector.shape_cast %35 : vector<16x16x4xf32> to vector<1x16x16x4xf32>
      tpu.vector_store %arg8[%c0_41, %c0_42, %c0_43, %c20], %38 {strides = array<i32>} : memref<2x16x16x24xf32, #tpu.memory_space<vmem>>, vector<1x16x16x4xf32>,
      %c0_44 = arith.constant 0 : index
      %c1_45 = arith.constant 1 : index
      %c0_46 = arith.constant 0 : index
      %c0_47 = arith.constant 0 : index
      %39 = vector.load %arg2[%c0_44, %c1_45, %c0_46, %c0_47] : memref<1x18x18x4xf32, #tpu.memory_space<vmem>>, vector<1x16x16x4xf32>
      %40 = vector.shape_cast %39 : vector<1x16x16x4xf32> to vector<16x16x4xf32>
      %c1_48 = arith.constant 1 : index
      %c0_49 = arith.constant 0 : index
      %c0_50 = arith.constant 0 : index
      %c0_51 = arith.constant 0 : index
      %41 = vector.load %arg8[%c1_48, %c0_49, %c0_50, %c0_51] : memref<2x16x16x24xf32, #tpu.memory_space<vmem>>, vector<1x16x16x4xf32>
      %42 = vector.shape_cast %41 : vector<1x16x16x4xf32> to vector<16x16x4xf32>
      %43 = vector.shape_cast %40 : vector<16x16x4xf32> to vector<1x16x16x4xf32>
      tpu.vector_store %arg8[%c1_48, %c0_49, %c0_50, %c0_51], %43 {strides = array<i32>} : memref<2x16x16x24xf32, #tpu.memory_space<vmem>>, vector<1x16x16x4xf32>,
      %c0_52 = arith.constant 0 : index
      %c1_53 = arith.constant 1 : index
      %c1_54 = arith.constant 1 : index
      %c0_55 = arith.constant 0 : index
      %44 = vector.load %arg2[%c0_52, %c1_53, %c1_54, %c0_55] : memref<1x18x18x4xf32, #tpu.memory_space<vmem>>, vector<1x16x16x4xf32>
      %45 = vector.shape_cast %44 : vector<1x16x16x4xf32> to vector<16x16x4xf32>
      %c1_56 = arith.constant 1 : index
      %c0_57 = arith.constant 0 : index
      %c0_58 = arith.constant 0 : index
      %c4_59 = arith.constant 4 : index
      %46 = vector.load %arg8[%c1_56, %c0_57, %c0_58, %c4_59] : memref<2x16x16x24xf32, #tpu.memory_space<vmem>>, vector<1x16x16x4xf32>
      %47 = vector.shape_cast %46 : vector<1x16x16x4xf32> to vector<16x16x4xf32>
      %48 = vector.shape_cast %45 : vector<16x16x4xf32> to vector<1x16x16x4xf32>
      tpu.vector_store %arg8[%c1_56, %c0_57, %c0_58, %c4_59], %48 {strides = array<i32>} : memref<2x16x16x24xf32, #tpu.memory_space<vmem>>, vector<1x16x16x4xf32>,
      %c0_60 = arith.constant 0 : index
      %c1_61 = arith.constant 1 : index
      %c2_62 = arith.constant 2 : index
      %c0_63 = arith.constant 0 : index
      %49 = vector.load %arg2[%c0_60, %c1_61, %c2_62, %c0_63] : memref<1x18x18x4xf32, #tpu.memory_space<vmem>>, vector<1x16x16x4xf32>
      %50 = vector.shape_cast %49 : vector<1x16x16x4xf32> to vector<16x16x4xf32>
      %c1_64 = arith.constant 1 : index
      %c0_65 = arith.constant 0 : index
      %c0_66 = arith.constant 0 : index
      %c8_67 = arith.constant 8 : index
      %51 = vector.load %arg8[%c1_64, %c0_65, %c0_66, %c8_67] : memref<2x16x16x24xf32, #tpu.memory_space<vmem>>, vector<1x16x16x4xf32>
      %52 = vector.shape_cast %51 : vector<1x16x16x4xf32> to vector<16x16x4xf32>
      %53 = vector.shape_cast %50 : vector<16x16x4xf32> to vector<1x16x16x4xf32>
      tpu.vector_store %arg8[%c1_64, %c0_65, %c0_66, %c8_67], %53 {strides = array<i32>} : memref<2x16x16x24xf32, #tpu.memory_space<vmem>>, vector<1x16x16x4xf32>,
      %c0_68 = arith.constant 0 : index
      %c2_69 = arith.constant 2 : index
      %c0_70 = arith.constant 0 : index
      %c0_71 = arith.constant 0 : index
      %54 = vector.load %arg2[%c0_68, %c2_69, %c0_70, %c0_71] : memref<1x18x18x4xf32, #tpu.memory_space<vmem>>, vector<1x16x16x4xf32>
      %55 = vector.shape_cast %54 : vector<1x16x16x4xf32> to vector<16x16x4xf32>
      %c1_72 = arith.constant 1 : index
      %c0_73 = arith.constant 0 : index
      %c0_74 = arith.constant 0 : index
      %c12_75 = arith.constant 12 : index
      %56 = vector.load %arg8[%c1_72, %c0_73, %c0_74, %c12_75] : memref<2x16x16x24xf32, #tpu.memory_space<vmem>>, vector<1x16x16x4xf32>
      %57 = vector.shape_cast %56 : vector<1x16x16x4xf32> to vector<16x16x4xf32>
      %58 = vector.shape_cast %55 : vector<16x16x4xf32> to vector<1x16x16x4xf32>
      tpu.vector_store %arg8[%c1_72, %c0_73, %c0_74, %c12_75], %58 {strides = array<i32>} : memref<2x16x16x24xf32, #tpu.memory_space<vmem>>, vector<1x16x16x4xf32>,
      %c0_76 = arith.constant 0 : index
      %c2_77 = arith.constant 2 : index
      %c1_78 = arith.constant 1 : index
      %c0_79 = arith.constant 0 : index
      %59 = vector.load %arg2[%c0_76, %c2_77, %c1_78, %c0_79] : memref<1x18x18x4xf32, #tpu.memory_space<vmem>>, vector<1x16x16x4xf32>
      %60 = vector.shape_cast %59 : vector<1x16x16x4xf32> to vector<16x16x4xf32>
      %c1_80 = arith.constant 1 : index
      %c0_81 = arith.constant 0 : index
      %c0_82 = arith.constant 0 : index
      %c16_83 = arith.constant 16 : index
      %61 = vector.load %arg8[%c1_80, %c0_81, %c0_82, %c16_83] : memref<2x16x16x24xf32, #tpu.memory_space<vmem>>, vector<1x16x16x4xf32>
      %62 = vector.shape_cast %61 : vector<1x16x16x4xf32> to vector<16x16x4xf32>
      %63 = vector.shape_cast %60 : vector<16x16x4xf32> to vector<1x16x16x4xf32>
      tpu.vector_store %arg8[%c1_80, %c0_81, %c0_82, %c16_83], %63 {strides = array<i32>} : memref<2x16x16x24xf32, #tpu.memory_space<vmem>>, vector<1x16x16x4xf32>,
      %c0_84 = arith.constant 0 : index
      %c2_85 = arith.constant 2 : index
      %c2_86 = arith.constant 2 : index
      %c0_87 = arith.constant 0 : index
      %64 = vector.load %arg2[%c0_84, %c2_85, %c2_86, %c0_87] : memref<1x18x18x4xf32, #tpu.memory_space<vmem>>, vector<1x16x16x4xf32>
      %65 = vector.shape_cast %64 : vector<1x16x16x4xf32> to vector<16x16x4xf32>
      %c1_88 = arith.constant 1 : index
      %c0_89 = arith.constant 0 : index
      %c0_90 = arith.constant 0 : index
      %c20_91 = arith.constant 20 : index
      %66 = vector.load %arg8[%c1_88, %c0_89, %c0_90, %c20_91] : memref<2x16x16x24xf32, #tpu.memory_space<vmem>>, vector<1x16x16x4xf32>
      %67 = vector.shape_cast %66 : vector<1x16x16x4xf32> to vector<16x16x4xf32>
      %68 = vector.shape_cast %65 : vector<16x16x4xf32> to vector<1x16x16x4xf32>
      tpu.vector_store %arg8[%c1_88, %c0_89, %c0_90, %c20_91], %68 {strides = array<i32>} : memref<2x16x16x24xf32, #tpu.memory_space<vmem>>, vector<1x16x16x4xf32>,
      %c0_92 = arith.constant 0 : index
      %c0_93 = arith.constant 0 : index
      %69 = vector.load %arg9[%c0_92, %c0_93] : memref<1x16xf32, #tpu.memory_space<vmem>>, vector<1x16xf32>
      %c0_94 = arith.constant 0 : index
      %c0_95 = arith.constant 0 : index
      %70 = vector.load %arg10[%c0_94, %c0_95] : memref<1x16xf32, #tpu.memory_space<vmem>>, vector<1x16xf32>
      %c0_96 = arith.constant 0 : index
      %c0_97 = arith.constant 0 : index
      %c0_98 = arith.constant 0 : index
      %c0_99 = arith.constant 0 : index
      %71 = vector.load %arg8[%c0_96, %c0_97, %c0_98, %c0_99] : memref<2x16x16x24xf32, #tpu.memory_space<vmem>>, vector<1x16x16x24xf32>
      %72 = vector.shape_cast %71 : vector<1x16x16x24xf32> to vector<16x16x24xf32>
      %73 = vector.shape_cast %72 : vector<16x16x24xf32> to vector<256x24xf32>
      %c0_100 = arith.constant 0 : index
      %c0_101 = arith.constant 0 : index
      %c0_102 = arith.constant 0 : index
      %74 = vector.load %arg3[%c0_100, %c0_101, %c0_102] : memref<2x24x16xf32, #tpu.memory_space<vmem>>, vector<1x24x16xf32>
      %75 = vector.shape_cast %74 : vector<1x24x16xf32> to vector<24x16xf32>
      %cst = arith.constant dense<0.000000e+00> : vector<256x16xf32>
      %76 = tpu.matmul %73, %75, %cst {dimension_numbers = #tpu.dot_dimension_numbers<[1], [0], [0], [1], [0, 0, 1, 1], [], []>} : vector<256x24xf32>, vector<24x16xf32>, vector<256x16xf32> -> vector<256x16xf32>
      %c2_i32 = arith.constant 2 : i32
      %77 = arith.muli %c2_i32, %arg1 : i32
      %c0_i32_103 = arith.constant 0 : i32
      %78 = arith.addi %77, %c0_i32_103 : i32
      %79 = arith.index_cast %78 : i32 to index
      %c0_104 = arith.constant 0 : index
      %c0_105 = arith.constant 0 : index
      %80 = vector.load %arg7[%79, %c0_104, %c0_105] : memref<4x256x16xf32, #tpu.memory_space<vmem>>, vector<1x256x16xf32>
      %81 = vector.shape_cast %80 : vector<1x256x16xf32> to vector<256x16xf32>
      %82 = vector.shape_cast %76 : vector<256x16xf32> to vector<1x256x16xf32>
      tpu.vector_store %arg7[%79, %c0_104, %c0_105], %82 {strides = array<i32>} : memref<4x256x16xf32, #tpu.memory_space<vmem>>, vector<1x256x16xf32>,
      %cst_106 = arith.constant dense<0.000000e+00> : vector<16xf32>
      %83 = vector.multi_reduction <add>, %76, %cst_106 [0] : vector<256x16xf32> to vector<16xf32>
      %84 = vector.shape_cast %83 : vector<16xf32> to vector<1x16xf32>
      %85 = arith.addf %69, %84 : vector<1x16xf32>
      %86 = arith.mulf %76, %76 : vector<256x16xf32>
      %cst_107 = arith.constant dense<0.000000e+00> : vector<16xf32>
      %87 = vector.multi_reduction <add>, %86, %cst_107 [0] : vector<256x16xf32> to vector<16xf32>
      %88 = vector.shape_cast %87 : vector<16xf32> to vector<1x16xf32>
      %89 = arith.addf %70, %88 : vector<1x16xf32>
      %c1_108 = arith.constant 1 : index
      %c0_109 = arith.constant 0 : index
      %c0_110 = arith.constant 0 : index
      %c0_111 = arith.constant 0 : index
      %90 = vector.load %arg8[%c1_108, %c0_109, %c0_110, %c0_111] : memref<2x16x16x24xf32, #tpu.memory_space<vmem>>, vector<1x16x16x24xf32>
      %91 = vector.shape_cast %90 : vector<1x16x16x24xf32> to vector<16x16x24xf32>
      %92 = vector.shape_cast %91 : vector<16x16x24xf32> to vector<256x24xf32>
      %c1_112 = arith.constant 1 : index
      %c0_113 = arith.constant 0 : index
      %c0_114 = arith.constant 0 : index
      %93 = vector.load %arg3[%c1_112, %c0_113, %c0_114] : memref<2x24x16xf32, #tpu.memory_space<vmem>>, vector<1x24x16xf32>
      %94 = vector.shape_cast %93 : vector<1x24x16xf32> to vector<24x16xf32>
      %cst_115 = arith.constant dense<0.000000e+00> : vector<256x16xf32>
      %95 = tpu.matmul %92, %94, %cst_115 {dimension_numbers = #tpu.dot_dimension_numbers<[1], [0], [0], [1], [0, 0, 1, 1], [], []>} : vector<256x24xf32>, vector<24x16xf32>, vector<256x16xf32> -> vector<256x16xf32>
      %c2_i32_116 = arith.constant 2 : i32
      %96 = arith.muli %c2_i32_116, %arg1 : i32
      %c1_i32_117 = arith.constant 1 : i32
      %97 = arith.addi %96, %c1_i32_117 : i32
      %98 = arith.index_cast %97 : i32 to index
      %c0_118 = arith.constant 0 : index
      %c0_119 = arith.constant 0 : index
      %99 = vector.load %arg7[%98, %c0_118, %c0_119] : memref<4x256x16xf32, #tpu.memory_space<vmem>>, vector<1x256x16xf32>
      %100 = vector.shape_cast %99 : vector<1x256x16xf32> to vector<256x16xf32>
      %101 = vector.shape_cast %95 : vector<256x16xf32> to vector<1x256x16xf32>
      tpu.vector_store %arg7[%98, %c0_118, %c0_119], %101 {strides = array<i32>} : memref<4x256x16xf32, #tpu.memory_space<vmem>>, vector<1x256x16xf32>,
      %cst_120 = arith.constant dense<0.000000e+00> : vector<16xf32>
      %102 = vector.multi_reduction <add>, %95, %cst_120 [0] : vector<256x16xf32> to vector<16xf32>
      %103 = vector.shape_cast %102 : vector<16xf32> to vector<1x16xf32>
      %104 = arith.addf %85, %103 : vector<1x16xf32>
      %105 = arith.mulf %95, %95 : vector<256x16xf32>
      %cst_121 = arith.constant dense<0.000000e+00> : vector<16xf32>
      %106 = vector.multi_reduction <add>, %105, %cst_121 [0] : vector<256x16xf32> to vector<16xf32>
      %107 = vector.shape_cast %106 : vector<16xf32> to vector<1x16xf32>
      %108 = arith.addf %89, %107 : vector<1x16xf32>
      %c0_122 = arith.constant 0 : index
      %c0_123 = arith.constant 0 : index
      %109 = vector.load %arg9[%c0_122, %c0_123] : memref<1x16xf32, #tpu.memory_space<vmem>>, vector<1x16xf32>
      tpu.vector_store %arg9[%c0_122, %c0_123], %104 {strides = array<i32>} : memref<1x16xf32, #tpu.memory_space<vmem>>, vector<1x16xf32>,
      %c0_124 = arith.constant 0 : index
      %c0_125 = arith.constant 0 : index
      %110 = vector.load %arg10[%c0_124, %c0_125] : memref<1x16xf32, #tpu.memory_space<vmem>>, vector<1x16xf32>
      tpu.vector_store %arg10[%c0_124, %c0_125], %108 {strides = array<i32>} : memref<1x16xf32, #tpu.memory_space<vmem>>, vector<1x16xf32>,
    } else {
    }
    %c1_i32 = arith.constant 1 : i32
    %3 = arith.cmpi eq, %arg0, %c1_i32 : i32
    %4 = arith.extui %3 : i1 to i32
    %c0_i32_1 = arith.constant 0 : i32
    %5 = arith.cmpi ne, %4, %c0_i32_1 : i32
    scf.if %5 {
      %c0 = arith.constant 0 : index
      %c0_2 = arith.constant 0 : index
      %6 = vector.load %arg9[%c0, %c0_2] : memref<1x16xf32, #tpu.memory_space<vmem>>, vector<1x16xf32>
      %c0_3 = arith.constant 0 : index
      %c0_4 = arith.constant 0 : index
      %7 = vector.load %arg10[%c0_3, %c0_4] : memref<1x16xf32, #tpu.memory_space<vmem>>, vector<1x16xf32>
      %8 = vector.extract_strided_slice %6 {offsets = [0, 0], sizes = [1, 8], strides = [1, 1]} : vector<1x16xf32> to vector<1x8xf32>
      %9 = vector.extract_strided_slice %6 {offsets = [0, 8], sizes = [1, 8], strides = [1, 1]} : vector<1x16xf32> to vector<1x8xf32>
      %10 = arith.addf %8, %9 : vector<1x8xf32>
      %11 = vector.extract_strided_slice %7 {offsets = [0, 0], sizes = [1, 8], strides = [1, 1]} : vector<1x16xf32> to vector<1x8xf32>
      %12 = vector.extract_strided_slice %7 {offsets = [0, 8], sizes = [1, 8], strides = [1, 1]} : vector<1x16xf32> to vector<1x8xf32>
      %13 = arith.addf %11, %12 : vector<1x8xf32>
      %14 = tpu.concatenate %10, %10 in 1 : vector<1x8xf32>, vector<1x8xf32> -> vector<1x16xf32>
      %15 = tpu.concatenate %13, %13 in 1 : vector<1x8xf32>, vector<1x8xf32> -> vector<1x16xf32>
      %cst = arith.constant 4.8828125E-4 : f32
      %16 = vector.broadcast %cst : f32 to vector<1x16xf32>
      %17 = arith.mulf %14, %16 : vector<1x16xf32>
      %cst_5 = arith.constant 4.8828125E-4 : f32
      %18 = vector.broadcast %cst_5 : f32 to vector<1x16xf32>
      %19 = arith.mulf %15, %18 : vector<1x16xf32>
      %20 = arith.mulf %17, %17 : vector<1x16xf32>
      %21 = arith.subf %19, %20 : vector<1x16xf32>
      %cst_6 = arith.constant 0.000000e+00 : f32
      %22 = vector.broadcast %cst_6 : f32 to vector<1x16xf32>
      %23 = arith.maximumf %21, %22 : vector<1x16xf32>
      %c0_7 = arith.constant 0 : index
      %c0_8 = arith.constant 0 : index
      %24 = vector.load %arg4[%c0_7, %c0_8] : memref<1x16xf32, #tpu.memory_space<vmem>>, vector<1x16xf32>
      %cst_9 = arith.constant 9.99999974E-6 : f32
      %25 = vector.broadcast %cst_9 : f32 to vector<1x16xf32>
      %26 = arith.addf %23, %25 : vector<1x16xf32>
      %27 = math.rsqrt %26 : vector<1x16xf32>
      %28 = arith.mulf %24, %27 : vector<1x16xf32>
      %c0_10 = arith.constant 0 : index
      %c0_11 = arith.constant 0 : index
      %29 = vector.load %arg5[%c0_10, %c0_11] : memref<1x16xf32, #tpu.memory_space<vmem>>, vector<1x16xf32>
      %30 = arith.mulf %17, %28 : vector<1x16xf32>
      %31 = arith.subf %29, %30 : vector<1x16xf32>
      %c2_i32 = arith.constant 2 : i32
      %32 = arith.muli %c2_i32, %arg1 : i32
      %c0_i32_12 = arith.constant 0 : i32
      %33 = arith.addi %32, %c0_i32_12 : i32
      %34 = arith.index_cast %33 : i32 to index
      %c0_13 = arith.constant 0 : index
      %c0_14 = arith.constant 0 : index
      %35 = vector.load %arg7[%34, %c0_13, %c0_14] : memref<4x256x16xf32, #tpu.memory_space<vmem>>, vector<1x256x16xf32>
      %36 = vector.shape_cast %35 : vector<1x256x16xf32> to vector<256x16xf32>
      %37 = vector.broadcast %28 : vector<1x16xf32> to vector<256x16xf32>
      %38 = arith.mulf %36, %37 : vector<256x16xf32>
      %39 = vector.broadcast %31 : vector<1x16xf32> to vector<256x16xf32>
      %40 = arith.addf %38, %39 : vector<256x16xf32>
      %cst_15 = arith.constant 0.000000e+00 : f32
      %41 = vector.broadcast %cst_15 : f32 to vector<256x16xf32>
      %42 = arith.maximumf %40, %41 : vector<256x16xf32>
      %c0_16 = arith.constant 0 : index
      %c0_17 = arith.constant 0 : index
      %c0_18 = arith.constant 0 : index
      %c0_19 = arith.constant 0 : index
      %43 = vector.load %arg6[%c0_16, %c0_17, %c0_18, %c0_19] : memref<1x2x256x16xf32, #tpu.memory_space<vmem>>, vector<1x1x256x16xf32>
      %44 = vector.shape_cast %43 : vector<1x1x256x16xf32> to vector<256x16xf32>
      %45 = vector.shape_cast %42 : vector<256x16xf32> to vector<1x1x256x16xf32>
      tpu.vector_store %arg6[%c0_16, %c0_17, %c0_18, %c0_19], %45 {strides = array<i32>} : memref<1x2x256x16xf32, #tpu.memory_space<vmem>>, vector<1x1x256x16xf32>,
      %c2_i32_20 = arith.constant 2 : i32
      %46 = arith.muli %c2_i32_20, %arg1 : i32
      %c1_i32_21 = arith.constant 1 : i32
      %47 = arith.addi %46, %c1_i32_21 : i32
      %48 = arith.index_cast %47 : i32 to index
      %c0_22 = arith.constant 0 : index
      %c0_23 = arith.constant 0 : index
      %49 = vector.load %arg7[%48, %c0_22, %c0_23] : memref<4x256x16xf32, #tpu.memory_space<vmem>>, vector<1x256x16xf32>
      %50 = vector.shape_cast %49 : vector<1x256x16xf32> to vector<256x16xf32>
      %51 = vector.broadcast %28 : vector<1x16xf32> to vector<256x16xf32>
      %52 = arith.mulf %50, %51 : vector<256x16xf32>
      %53 = vector.broadcast %31 : vector<1x16xf32> to vector<256x16xf32>
      %54 = arith.addf %52, %53 : vector<256x16xf32>
      %cst_24 = arith.constant 0.000000e+00 : f32
      %55 = vector.broadcast %cst_24 : f32 to vector<256x16xf32>
      %56 = arith.maximumf %54, %55 : vector<256x16xf32>
      %c0_25 = arith.constant 0 : index
      %c1 = arith.constant 1 : index
      %c0_26 = arith.constant 0 : index
      %c0_27 = arith.constant 0 : index
      %57 = vector.load %arg6[%c0_25, %c1, %c0_26, %c0_27] : memref<1x2x256x16xf32, #tpu.memory_space<vmem>>, vector<1x1x256x16xf32>
      %58 = vector.shape_cast %57 : vector<1x1x256x16xf32> to vector<256x16xf32>
      %59 = vector.shape_cast %56 : vector<256x16xf32> to vector<1x1x256x16xf32>
      tpu.vector_store %arg6[%c0_25, %c1, %c0_26, %c0_27], %59 {strides = array<i32>} : memref<1x2x256x16xf32, #tpu.memory_space<vmem>>, vector<1x1x256x16xf32>,
    } else {
    }
    return
  }
  func.func @transform_0(%arg0: i32, %arg1: i32) -> (i32, i32, i32, i32) {
    %c1_i32 = arith.constant 1 : i32
    %0 = arith.subi %c1_i32, %arg0 : i32
    %1 = arith.muli %0, %arg1 : i32
    %c0_i32 = arith.constant 0 : i32
    %c0_i32_0 = arith.constant 0 : i32
    %c0_i32_1 = arith.constant 0 : i32
    %c0_i32_2 = arith.constant 0 : i32
    return %1, %c0_i32, %c0_i32_0, %c0_i32_1 : i32, i32, i32, i32
  }
  func.func @transform_1(%arg0: i32, %arg1: i32) -> (i32, i32, i32) {
    %c0_i32 = arith.constant 0 : i32
    %c0_i32_0 = arith.constant 0 : i32
    %c0_i32_1 = arith.constant 0 : i32
    %c0_i32_2 = arith.constant 0 : i32
    return %c0_i32, %c0_i32_0, %c0_i32_1 : i32, i32, i32
  }
  func.func @transform_2(%arg0: i32, %arg1: i32) -> (i32, i32) {
    %c0_i32 = arith.constant 0 : i32
    %c0_i32_0 = arith.constant 0 : i32
    %c0_i32_1 = arith.constant 0 : i32
    return %c0_i32, %c0_i32_0 : i32, i32
  }
  func.func @transform_3(%arg0: i32, %arg1: i32) -> (i32, i32) {
    %c0_i32 = arith.constant 0 : i32
    %c0_i32_0 = arith.constant 0 : i32
    %c0_i32_1 = arith.constant 0 : i32
    return %c0_i32, %c0_i32_0 : i32, i32
  }
  func.func @transform_4(%arg0: i32, %arg1: i32) -> (i32, i32, i32, i32) {
    %0 = arith.muli %arg0, %arg1 : i32
    %c0_i32 = arith.constant 0 : i32
    %c0_i32_0 = arith.constant 0 : i32
    %c0_i32_1 = arith.constant 0 : i32
    %c0_i32_2 = arith.constant 0 : i32
    return %0, %c0_i32, %c0_i32_0, %c0_i32_1 : i32, i32, i32, i32
  }
}

</mosaic_0001>

<bundles_post_ra>
// kernel: tile.13
= control target key start
LH: loop header
LB: loop body
LE: loop exit
PB: predicated region body
PF: predicated region fallthrough
CT: control target
= control target key end

     0   :  { %s22_s0 = inlined_call_operand.vmem [shape: f32[8], index: 0, kind: input, shape index: {}]   ;;  %s23_s1 = inlined_call_operand.vmem [shape: f32[2,8], index: 1, kind: output, shape index: {}]  }
   0x1   :  { %v4_v0 = vld [vmem:[%s22_s0] ss:$0 sm:$0xff] }
   0x2   :  { %5 = vst [vmem:[%s23_s1] sm:$0x3] %v4_v0 }

// kernel: tile.14
= control target key start
LH: loop header
LB: loop body
LE: loop exit
PB: predicated region body
PF: predicated region fallthrough
CT: control target
= control target key end

     0   :  { %vm7_vm0 = vcmask 64512   ;;  %vm13_vm1 = vcmask 130112   ;;  %s39_s0 = inlined_call_operand.vmem [shape: f32[2,8], index: 0, kind: input, shape index: {}]   ;;  %s40_s1 = inlined_call_operand.vmem [shape: f32[1,16], index: 1, kind: output, shape index: {}]  }
   0x1   :  { %v4_v0 = vld [vmem:[%s39_s0] sm:$0x3]  ;;  %s22_s0 = smov 8  }
   0x2   :  { %5 = vst [vmem:[#allocation1] sm:$0x3] %v4_v0 }
   0x9   :  { %v10_v1 = vld [vmem:[#allocation1 + $0x1] sm:$0x1]   ;;  %v6_v2 = vld [vmem:[#allocation1] sm:$0x1]  }
   0xa   :  { %11 = vrot.lane.b32.xlu0 %v10_v1, %s22_s0  ;;  %8 = vst.msk [vmem:[#allocation0] sm:$0x1] %vm7_vm0, %v6_v2  }
  0x7c   :  { %v12_v3 = vpop.permute.xlu0 %11  }
  0x7d   :  { %14 = vst.msk [vmem:[#allocation0] sm:$0x1] %vm13_vm1, %v12_v3  }
  0x84   :  { %v18_v4 = vld [vmem:[#allocation0] sm:$0x1] }
  0x85   :  { %20 = vst [vmem:[%s40_s1] sm:$0x1] %v18_v4 }

// kernel: upconv_forward.1
= control target key start
LH: loop header
LB: loop body
LE: loop exit
PB: predicated region body
PF: predicated region fallthrough
CT: control target
= control target key end

     0   :  { %s4687_s15 = smov 0   ;;  %s4689_s16 = smov 0   ;;  %s6841_s0 = inlined_call_operand.vmem [shape: f32[2,18,18,4], index: 0, kind: input, shape index: {}]   ;;  %s6842_s1 = inlined_call_operand.vmem [shape: f32[2,24,16], index: 1, kind: input, shape index: {}]   ;;  %s6843_s2 = inlined_call_operand.vmem [shape: f32[1,16], index: 2, kind: input, shape index: {}]   ;;  %s6844_s3 = inlined_call_operand.vmem [shape: f32[1,16], index: 3, kind: input, shape index: {}]   ;;  %s6845_s4 = inlined_call_operand.vmem [shape: f32[2,2,256,16], index: 4, kind: output, shape index: {}]  }
   0x1   :  { %s4691_s17 = smov 0   ;;  %s4693_s18 = smov 0  }
   0x2   :  { %s4695_s19 = smov 0  }
   0x3 LB: > { %s23_s20 = sadd.s32 1, %s4644_s17  ;;  %s26_s21 = sadd.s32 1, %s4648_s18  ;;  %s4652_s19 = sphi %s4695_s19, %s14_s19   ;;  %s4648_s18 = sphi %s4693_s18, %s6902_s18   ;;  %s4644_s17 = sphi %s4691_s17, %s6901_s17   ;;  %s4640_s16 = sphi %s4689_s16, %s6900_s16   ;;  %s4636_s15 = sphi %s4687_s15, %s6899_s15  }
   0x4   : > { %p24_p0 = scmp.ge.s32.totalorder %s23_s20, 2  ;;  %p3904_p1 = scmp.ge.s32.totalorder %s4652_s19, 1 }
   0x5   : > { %p184_p2 = scmp.lt.s32.totalorder %s4652_s19, 5 }
   0x6   : > { %s6904_s20 = smov (%p24_p0, %s23_s20), 0  ;;  %s6906_s21 = smov (!%p24_p0, %s26_s21), %s4648_s18 }
   0x7   : > { %p185_p3 = pnand %p3904_p1, %p184_p2  ;;  %p28_p4 = scmp.ge.s32.totalorder %s6906_s21, 2 }
   0x8   : > { %s213_s22 = ssub.s32 (!%p185_p3), 1, %s4640_s16  ;;  %s222_s23 = smul.u32 (!%p185_p3), %s4636_s15, %s4640_s16 }
   0x9   : > { %s6908_s21 = smov (%p28_p4, %s6906_s21), 0  ;;  %188 = sbr.rel (%p185_p3) target bundleno = 1357 (0x54d), region = 36 }
   0xa   : > { %s214_s24 = smul.u32 (!%p185_p3), %s4636_s15, %s213_s22  ;;  %p223_p5 = scmp.lt.s32.totalorder (!%p185_p3), %s222_s23, 1 }
   0xb   : > { %p3908_p7 = scmp.ne.s32.totalorder (!%p185_p3), %s4640_s16, 0 }
   0xc   : > { %p215_p6 = scmp.lt.s32.totalorder (!%p185_p3), %s214_s24, 1 }
  0x10   : > { %s6910_s23 = smov (!%p223_p5, %s222_s23), 1  ;;  %s6912_s24 = smov (!%p215_p6, %s214_s24), 1 }
  0x11   : > { %s4372_s25 = sshll.u32 %s6910_s23, 9  ;;  %s4563_s26 = smul.u32 432, %s6912_s24 }
  0x12   : > { %s4728_s29 = scalar_lea.vmem %s6845_s4, %s4372_s25  ;;  %232 = sbr.rel (%p3908_p7) target bundleno = 1030 (0x406), region = 40 }
  0x13   : > { %s4733_s6 = scalar_lea.vmem %s6841_s0, %s4563_s26 }
  0x19   : > { %p3909_p8 = scmp.ne.s32.totalorder %s4636_s15, 0 }
  0x1a   : > { %vm237_vm0 = vcmask (!%p3909_p8), 122880   ;;  %v4654_v0 = vmov (!%p3909_p8), 0.0  }
  0x1b   : > { %236 = sbr.rel (%p3909_p8) target bundleno = 34 (0x22), region = 44  ;;  %238 = vst.msk [vmem:[#allocation4] sm:$0x1] (!%p3909_p8), %vm237_vm0, %v4654_v0  ;;  %239 = vst.msk [vmem:[#allocation5] sm:$0x1] (!%p3909_p8), %vm237_vm0, %v4654_v0 }
  0x22 PF: > { %v305_v1 = vld [vmem:[%s4733_s6 + $0x1] sm:$0xff]  ;;  %v4739_v2 = vld [vmem:[%s4733_s6 + $0x19] sm:$0xff]  ;;  %s4655_s7 = smov 4   ;;  %v306_v3 = vld [vmem:[%s4733_s6 + $0x9] sm:$0xff]  ;;  %vm272_vm1 = vcmask 31744   ;;  %s4656_s8 = smov 8  }
  0x23   : > { %369 = vrot.lane.b32.xlu0 %v305_v1, %s4655_s7  ;;  %373 = vrot.lane.b32.xlu1 %v4739_v2, %s4655_s7  ;;  %v4746_v4 = vld [vmem:[%s4733_s6 + $0x21] sm:$0xff]  ;;  %v4752_v5 = vld [vmem:[%s4733_s6 + $0x31] sm:$0xff]  ;;  %vm465_vm2 = vcmask 64544   ;;  %s4657_s9 = smov 12   ;;  %vm658_vm3 = vcmask 97344   ;;  %s4658_s10 = smov 16  }
  0x24   : > { %v4755_v6 = vld [vmem:[%s4733_s6 + $0x39] sm:$0xff]  ;;  %v4762_v7 = vld [vmem:[%s4733_s6 + $0x49] sm:$0xff]  ;;  %v4765_v8 = vld [vmem:[%s4733_s6 + $0x51] sm:$0xff]  ;;  %vm852_vm4 = vcmask 130144   ;;  %s4659_s24 = smov 20   ;;  %vm1045_vm5 = vcmask 162944  }
  0x25   : > { %v4772_v9 = vld [vmem:[%s4733_s6 + $0x61] sm:$0xff]  ;;  %v4775_v10 = vld [vmem:[%s4733_s6 + $0x69] sm:$0xff]  ;;  %v4782_v11 = vld [vmem:[%s4733_s6 + $0x79] sm:$0xff]  ;;  %vm1238_vm6 = vcmask 195744   ;;  %vm2334_vm7 = vcmask 195584   ;;  %s4373_s11 = sshll.u32 %s4636_s15, 9 }
  0x26   : > { %v4785_v12 = vld [vmem:[%s4733_s6 + $0x81] sm:$0xff]  ;;  %v4793_v14 = vld [vmem:[%s4733_s6 + $0x18] sm:$0xff]  ;;  %v4810_v19 = vld [vmem:[%s4733_s6 + $0xa9] sm:$0xff]  ;;  %vm2659_vm8 = vcmask 130048   ;;  %s5952_s12 = scalar_lea.vmem [#allocation2], %s4373_s11  ;;  %vm3428_vm9 = vcmask 122880  }
  0x27   : > { %371 = vrot.lane.b32.xlu0 %v306_v3, %s4655_s7  ;;  %375 = vrot.lane.b32.xlu1 %v4746_v4, %s4655_s7  ;;  %v240_v13 = vld [vmem:[%s4733_s6] sm:$0xff]  ;;  %v4796_v15 = vld [vmem:[%s4733_s6 + $0x91] sm:$0xff]  ;;  %275 = vst.msk [vmem:[#allocation3 + $0x10] sm:$0xff] %vm272_vm1, %v4793_v14 }
  0x28   : > { %v4799_v16 = vld [vmem:[%s4733_s6 + $0x99] sm:$0xff]  ;;  %273 = vst.msk [vmem:[#allocation3] sm:$0xff] %vm272_vm1, %v240_v13  ;;  %v241_v17 = vld [vmem:[%s4733_s6 + $0x8] sm:$0xff]  ;;  %v4815_v20 = vld [vmem:[%s4733_s6 + $0x30] sm:$0xff] }
  0x29   : > { %274 = vst.msk [vmem:[#allocation3 + $0x8] sm:$0xff] %vm272_vm1, %v241_v17  ;;  %v4807_v18 = vld [vmem:[%s4733_s6 + $0x20] sm:$0xff]  ;;  %v4818_v21 = vld [vmem:[%s4733_s6 + $0x38] sm:$0xff]  ;;  %277 = vst.msk [vmem:[#allocation3 + $0x20] sm:$0xff] %vm272_vm1, %v4815_v20 }
  0x2a   : > { %276 = vst.msk [vmem:[#allocation3 + $0x18] sm:$0xff] %vm272_vm1, %v4807_v18  ;;  %v4825_v22 = vld [vmem:[%s4733_s6 + $0xb1] sm:$0xff]  ;;  %278 = vst.msk [vmem:[#allocation3 + $0x28] sm:$0xff] %vm272_vm1, %v4818_v21  ;;  %v4832_v23 = vld [vmem:[%s4733_s6 + $0x48] sm:$0xff] }
  0x2b   : > { %377 = vrot.lane.b32.xlu0 %v4752_v5, %s4655_s7  ;;  %379 = vrot.lane.b32.xlu1 %v4755_v6, %s4655_s7  ;;  %279 = vst.msk [vmem:[#allocation3 + $0x30] sm:$0xff] %vm272_vm1, %v4832_v23  ;;  %v4837_v24 = vld [vmem:[%s4733_s6 + $0x50] sm:$0xff]  ;;  %v4840_v25 = vld [vmem:[%s4733_s6 + $0x60] sm:$0xff] }
  0x2c   : > { %v4843_v26 = vld [vmem:[%s4733_s6 + $0x68] sm:$0xff]  ;;  %280 = vst.msk [vmem:[#allocation3 + $0x38] sm:$0xff] %vm272_vm1, %v4837_v24  ;;  %281 = vst.msk [vmem:[#allocation3 + $0x40] sm:$0xff] %vm272_vm1, %v4840_v25  ;;  %v4852_v27 = vld [vmem:[%s4733_s6 + $0x78] sm:$0xff] }
  0x2d   : > { %282 = vst.msk [vmem:[#allocation3 + $0x48] sm:$0xff] %vm272_vm1, %v4843_v26  ;;  %v4855_v28 = vld [vmem:[%s4733_s6 + $0x80] sm:$0xff]  ;;  %v4858_v29 = vld [vmem:[%s4733_s6 + $0x90] sm:$0xff]  ;;  %283 = vst.msk [vmem:[#allocation3 + $0x50] sm:$0xff] %vm272_vm1, %v4852_v27 }
  0x2e   : > { %v4861_v30 = vld [vmem:[%s4733_s6 + $0xc1] sm:$0xff]  ;;  %v4864_v31 = vld [vmem:[%s4733_s6 + $0xc9] sm:$0xff]  ;;  %284 = vst.msk [vmem:[#allocation3 + $0x58] sm:$0xff] %vm272_vm1, %v4855_v28  ;;  %285 = vst.msk [vmem:[#allocation3 + $0x60] sm:$0xff] %vm272_vm1, %v4858_v29 }
  0x2f   : > { %381 = vrot.lane.b32.xlu0 %v4762_v7, %s4655_s7  ;;  %383 = vrot.lane.b32.xlu1 %v4765_v8, %s4655_s7  ;;  %v4873_v32 = vld [vmem:[%s4733_s6 + $0x98] sm:$0xff]  ;;  %v4876_v33 = vld [vmem:[%s4733_s6 + $0xa8] sm:$0xff] }
  0x30   : > { %v4879_v34 = vld [vmem:[%s4733_s6 + $0xb0] sm:$0xff]  ;;  %286 = vst.msk [vmem:[#allocation3 + $0x68] sm:$0xff] %vm272_vm1, %v4873_v32  ;;  %287 = vst.msk [vmem:[#allocation3 + $0x70] sm:$0xff] %vm272_vm1, %v4876_v33  ;;  %v4892_v35 = vld [vmem:[%s4733_s6 + $0xc0] sm:$0xff] }
  0x31   : > { %288 = vst.msk [vmem:[#allocation3 + $0x78] sm:$0xff] %vm272_vm1, %v4879_v34  ;;  %v4895_v36 = vld [vmem:[%s4733_s6 + $0xc8] sm:$0xff]  ;;  %289 = vst.msk [vmem:[#allocation3 + $0x80] sm:$0xff] %vm272_vm1, %v4892_v35  ;;  %v4902_v37 = vld [vmem:[%s4733_s6 + $0xd8] sm:$0xff] }
  0x32   : > { %290 = vst.msk [vmem:[#allocation3 + $0x88] sm:$0xff] %vm272_vm1, %v4895_v36  ;;  %v4905_v38 = vld [vmem:[%s4733_s6 + $0xe0] sm:$0xff]  ;;  %v4908_v39 = vld [vmem:[%s4733_s6 + $0xf0] sm:$0xff]  ;;  %291 = vst.msk [vmem:[#allocation3 + $0x90] sm:$0xff] %vm272_vm1, %v4902_v37 }
  0x33   : > { %385 = vrot.lane.b32.xlu0 %v4772_v9, %s4655_s7  ;;  %387 = vrot.lane.b32.xlu1 %v4775_v10, %s4655_s7  ;;  %292 = vst.msk [vmem:[#allocation3 + $0x98] sm:$0xff] %vm272_vm1, %v4905_v38  ;;  %293 = vst.msk [vmem:[#allocation3 + $0xa0] sm:$0xff] %vm272_vm1, %v4908_v39  ;;  %v4917_v40 = vld [vmem:[%s4733_s6 + $0xf8] sm:$0xff]  ;;  %v4920_v41 = vld [vmem:[%s4733_s6 + $0x108] sm:$0xff] }
  0x34   : > { %v4923_v42 = vld [vmem:[%s4733_s6 + $0x110] sm:$0xff]  ;;  %294 = vst.msk [vmem:[#allocation3 + $0xa8] sm:$0xff] %vm272_vm1, %v4917_v40  ;;  %295 = vst.msk [vmem:[#allocation3 + $0xb0] sm:$0xff] %vm272_vm1, %v4920_v41  ;;  %v4936_v43 = vld [vmem:[%s4733_s6 + $0xd9] sm:$0xff] }
  0x35   : > { %296 = vst.msk [vmem:[#allocation3 + $0xb8] sm:$0xff] %vm272_vm1, %v4923_v42  ;;  %v4939_v44 = vld [vmem:[%s4733_s6 + $0xe1] sm:$0xff]  ;;  %v4956_v47 = vld [vmem:[%s4733_s6 + $0xf1] sm:$0xff]  ;;  %v4959_v48 = vld [vmem:[%s4733_s6 + $0xf9] sm:$0xff] }
  0x36   : > { %v4942_v45 = vld [vmem:[%s4733_s6 + $0x120] sm:$0xff]  ;;  %v4947_v46 = vld [vmem:[%s4733_s6 + $0x128] sm:$0xff]  ;;  %v4962_v49 = vld [vmem:[%s4733_s6 + $0x138] sm:$0xff] }
  0x37   : > { %389 = vrot.lane.b32.xlu0 %v4782_v11, %s4655_s7  ;;  %391 = vrot.lane.b32.xlu1 %v4785_v12, %s4655_s7  ;;  %297 = vst.msk [vmem:[#allocation3 + $0xc0] sm:$0xff] %vm272_vm1, %v4942_v45  ;;  %298 = vst.msk [vmem:[#allocation3 + $0xc8] sm:$0xff] %vm272_vm1, %v4947_v46  ;;  %v4967_v50 = vld [vmem:[%s4733_s6 + $0x140] sm:$0xff]  ;;  %v4976_v51 = vld [vmem:[%s4733_s6 + $0x109] sm:$0xff] }
  0x38   : > { %299 = vst.msk [vmem:[#allocation3 + $0xd0] sm:$0xff] %vm272_vm1, %v4962_v49  ;;  %300 = vst.msk [vmem:[#allocation3 + $0xd8] sm:$0xff] %vm272_vm1, %v4967_v50  ;;  %v4979_v52 = vld [vmem:[%s4733_s6 + $0x111] sm:$0xff]  ;;  %v4996_v55 = vld [vmem:[%s4733_s6 + $0x121] sm:$0xff] }
  0x39   : > { %v4982_v53 = vld [vmem:[%s4733_s6 + $0x150] sm:$0xff]  ;;  %v4987_v54 = vld [vmem:[%s4733_s6 + $0x158] sm:$0xff]  ;;  %v5002_v57 = vld [vmem:[%s4733_s6 + $0x168] sm:$0xff] }
  0x3a   : > { %301 = vst.msk [vmem:[#allocation3 + $0xe0] sm:$0xff] %vm272_vm1, %v4982_v53  ;;  %302 = vst.msk [vmem:[#allocation3 + $0xe8] sm:$0xff] %vm272_vm1, %v4987_v54  ;;  %v4999_v56 = vld [vmem:[%s4733_s6 + $0x129] sm:$0xff]  ;;  %v5016_v59 = vld [vmem:[%s4733_s6 + $0x139] sm:$0xff] }
  0x3b   : > { %393 = vrot.lane.b32.xlu0 %v4796_v15, %s4655_s7  ;;  %395 = vrot.lane.b32.xlu1 %v4799_v16, %s4655_s7  ;;  %303 = vst.msk [vmem:[#allocation3 + $0xf0] sm:$0xff] %vm272_vm1, %v5002_v57  ;;  %v5007_v58 = vld [vmem:[%s4733_s6 + $0x170] sm:$0xff]  ;;  %6867 = vst [vmem:[#allocation6_spill] sm:$0xff] %v5016_v59  ;;  %v5019_v60 = vld [vmem:[%s4733_s6 + $0x141] sm:$0xff] }
  0x3c   : > { %304 = vst.msk [vmem:[#allocation3 + $0xf8] sm:$0xff] %vm272_vm1, %v5007_v58  ;;  %6868 = vst [vmem:[#allocation7_spill] sm:$0xff] %v5019_v60  ;;  %v5026_v61 = vld [vmem:[%s4733_s6 + $0x151] sm:$0xff]  ;;  %v5029_v62 = vld [vmem:[%s4733_s6 + $0x159] sm:$0xff] }
  0x3d   : > { %6869 = vst [vmem:[#allocation8_spill] sm:$0xff] %v5026_v61  ;;  %6870 = vst [vmem:[#allocation9_spill] sm:$0xff] %v5029_v62  ;;  %v5036_v63 = vld [vmem:[%s4733_s6 + $0x169] sm:$0xff]  ;;  %v5039_v0 = vld [vmem:[%s4733_s6 + $0x171] sm:$0xff] }
  0x3e   : > { %6871 = vst [vmem:[#allocation10_spill] sm:$0xff] %v5036_v63  ;;  %6872 = vst [vmem:[#allocation11_spill] sm:$0xff] %v5039_v0  ;;  %v498_v1 = vld [vmem:[%s4733_s6 + $0x2] sm:$0xff]  ;;  %v499_v3 = vld [vmem:[%s4733_s6 + $0xa] sm:$0xff] }
  0x3f   : > { %397 = vrot.lane.b32.xlu0 %v4810_v19, %s4655_s7  ;;  %399 = vrot.lane.b32.xlu1 %v4825_v22, %s4655_s7  ;;  %v5050_v13 = vld [vmem:[%s4733_s6 + $0x1a] sm:$0xff]  ;;  %v5053_v17 = vld [vmem:[%s4733_s6 + $0x22] sm:$0xff] }
  0x40   : > { %6873 = vst [vmem:[#allocation12_spill] sm:$0xff] %v5050_v13  ;;  %6874 = vst [vmem:[#allocation13_spill] sm:$0xff] %v5053_v17 }
  0x43   : > { %401 = vrot.lane.b32.xlu0 %v4861_v30, %s4655_s7  ;;  %403 = vrot.lane.b32.xlu1 %v4864_v31, %s4655_s7 }
  0x47   : > { %405 = vrot.lane.b32.xlu0 %v4936_v43, %s4655_s7  ;;  %407 = vrot.lane.b32.xlu1 %v4939_v44, %s4655_s7 }
  0x4b   : > { %409 = vrot.lane.b32.xlu0 %v4956_v47, %s4655_s7  ;;  %411 = vrot.lane.b32.xlu1 %v4959_v48, %s4655_s7 }
  0x4f   : > { %413 = vrot.lane.b32.xlu0 %v4976_v51, %s4655_s7  ;;  %415 = vrot.lane.b32.xlu1 %v4979_v52, %s4655_s7 }
  0x53   : > { %417 = vrot.lane.b32.xlu0 %v4996_v55, %s4655_s7  ;;  %419 = vrot.lane.b32.xlu1 %v4999_v56, %s4655_s7 }
  0x57   : > { %421 = vrot.lane.b32.xlu0 %v5016_v59, %s4655_s7  ;;  %423 = vrot.lane.b32.xlu1 %v5019_v60, %s4655_s7 }
  0x5b   : > { %425 = vrot.lane.b32.xlu0 %v5026_v61, %s4655_s7  ;;  %427 = vrot.lane.b32.xlu1 %v5029_v62, %s4655_s7  ;;  %v515_v62 = vld [vmem:[%s4733_s6 + $0xca] sm:$0xff]  ;;  %v521_v61 = vld [vmem:[%s4733_s6 + $0x112] sm:$0xff] }
  0x5f   : > { %429 = vrot.lane.b32.xlu0 %v5036_v63, %s4655_s7  ;;  %431 = vrot.lane.b32.xlu1 %v5039_v0, %s4655_s7  ;;  %v5060_v0 = vld [vmem:[%s4733_s6 + $0x32] sm:$0xff]  ;;  %v5063_v63 = vld [vmem:[%s4733_s6 + $0x3a] sm:$0xff] }
  0x60   : > { %6875 = vst [vmem:[#allocation14_spill] sm:$0xff] %v5060_v0  ;;  %6876 = vst [vmem:[#allocation15_spill] sm:$0xff] %v5063_v63 }
  0x63   : > { %562 = vrot.lane.b32.xlu0 %v498_v1, %s4656_s8  ;;  %564 = vrot.lane.b32.xlu1 %v499_v3, %s4656_s8  ;;  %v5070_v1 = vld [vmem:[%s4733_s6 + $0x4a] sm:$0xff]  ;;  %v5073_v3 = vld [vmem:[%s4733_s6 + $0x52] sm:$0xff] }
  0x64   : > { %6877 = vst [vmem:[#allocation16_spill] sm:$0xff] %v5070_v1  ;;  %6878 = vst [vmem:[#allocation17_spill] sm:$0xff] %v5073_v3 }
  0x67   : > { %566 = vrot.lane.b32.xlu0 %v5050_v13, %s4656_s8  ;;  %568 = vrot.lane.b32.xlu1 %v5053_v17, %s4656_s8  ;;  %v5080_v17 = vld [vmem:[%s4733_s6 + $0x62] sm:$0xff]  ;;  %v5083_v13 = vld [vmem:[%s4733_s6 + $0x6a] sm:$0xff] }
  0x68   : > { %6879 = vst [vmem:[#allocation18_spill] sm:$0xff] %v5080_v17  ;;  %6880 = vst [vmem:[#allocation19_spill] sm:$0xff] %v5083_v13 }
  0x6b   : > { %570 = vrot.lane.b32.xlu0 %v5060_v0, %s4656_s8  ;;  %572 = vrot.lane.b32.xlu1 %v5063_v63, %s4656_s8  ;;  %v5090_v63 = vld [vmem:[%s4733_s6 + $0x7a] sm:$0xff]  ;;  %v5093_v0 = vld [vmem:[%s4733_s6 + $0x82] sm:$0xff] }
  0x6c   : > { %6881 = vst [vmem:[#allocation20_spill] sm:$0xff] %v5090_v63  ;;  %6882 = vst [vmem:[#allocation21_spill] sm:$0xff] %v5093_v0 }
  0x6f   : > { %574 = vrot.lane.b32.xlu0 %v5070_v1, %s4656_s8  ;;  %576 = vrot.lane.b32.xlu1 %v5073_v3, %s4656_s8  ;;  %v510_v3 = vld [vmem:[%s4733_s6 + $0x92] sm:$0xff]  ;;  %v511_v1 = vld [vmem:[%s4733_s6 + $0x9a] sm:$0xff] }
  0x73   : > { %578 = vrot.lane.b32.xlu0 %v5080_v17, %s4656_s8  ;;  %580 = vrot.lane.b32.xlu1 %v5083_v13, %s4656_s8  ;;  %v512_v13 = vld [vmem:[%s4733_s6 + $0xaa] sm:$0xff]  ;;  %v513_v17 = vld [vmem:[%s4733_s6 + $0xb2] sm:$0xff] }
  0x77   : > { %582 = vrot.lane.b32.xlu0 %v5090_v63, %s4656_s8  ;;  %584 = vrot.lane.b32.xlu1 %v5093_v0, %s4656_s8  ;;  %v514_v63 = vld [vmem:[%s4733_s6 + $0xc2] sm:$0xff]  ;;  %v516_v0 = vld [vmem:[%s4733_s6 + $0xda] sm:$0xff] }
  0x7b   : > { %586 = vrot.lane.b32.xlu0 %v510_v3, %s4656_s8  ;;  %588 = vrot.lane.b32.xlu1 %v511_v1, %s4656_s8  ;;  %v517_v3 = vld [vmem:[%s4733_s6 + $0xe2] sm:$0xff]  ;;  %v518_v1 = vld [vmem:[%s4733_s6 + $0xf2] sm:$0xff] }
  0x7f   : > { %590 = vrot.lane.b32.xlu0 %v512_v13, %s4656_s8  ;;  %592 = vrot.lane.b32.xlu1 %v513_v17, %s4656_s8  ;;  %v519_v13 = vld [vmem:[%s4733_s6 + $0xfa] sm:$0xff]  ;;  %v520_v17 = vld [vmem:[%s4733_s6 + $0x10a] sm:$0xff] }
  0x83   : > { %594 = vrot.lane.b32.xlu0 %v514_v63, %s4656_s8  ;;  %596 = vrot.lane.b32.xlu1 %v515_v62, %s4656_s8  ;;  %v522_v62 = vld [vmem:[%s4733_s6 + $0x122] sm:$0xff]  ;;  %v523_v63 = vld [vmem:[%s4733_s6 + $0x12a] sm:$0xff] }
  0x87   : > { %598 = vrot.lane.b32.xlu0 %v516_v0, %s4656_s8  ;;  %600 = vrot.lane.b32.xlu1 %v517_v3, %s4656_s8  ;;  %v524_v0 = vld [vmem:[%s4733_s6 + $0x13a] sm:$0xff]  ;;  %v525_v3 = vld [vmem:[%s4733_s6 + $0x142] sm:$0xff] }
  0x8b   : > { %602 = vrot.lane.b32.xlu0 %v518_v1, %s4656_s8  ;;  %604 = vrot.lane.b32.xlu1 %v519_v13, %s4656_s8 }
  0x8f   : > { %606 = vrot.lane.b32.xlu0 %v520_v17, %s4656_s8  ;;  %608 = vrot.lane.b32.xlu1 %v521_v61, %s4656_s8  ;;  %v526_v61 = vld [vmem:[%s4733_s6 + $0x152] sm:$0xff]  ;;  %v527_v17 = vld [vmem:[%s4733_s6 + $0x15a] sm:$0xff] }
  0x93   : > { %610 = vrot.lane.b32.xlu0 %v522_v62, %s4656_s8  ;;  %612 = vrot.lane.b32.xlu1 %v523_v63, %s4656_s8  ;;  %v528_v63 = vld [vmem:[%s4733_s6 + $0x16a] sm:$0xff] }
  0x95   : > { %v370_v1 = vpop.permute.xlu0 %369  ;;  %v374_v13 = vpop.permute.xlu1 %373 }
  0x96   : > { %466 = vst.msk [vmem:[#allocation3] sm:$0xff] %vm465_vm2, %v370_v1  ;;  %468 = vst.msk [vmem:[#allocation3 + $0x10] sm:$0xff] %vm465_vm2, %v374_v13  ;;  %v529_v1 = vld [vmem:[%s4733_s6 + $0x172] sm:$0xff] }
  0x97   : > { %614 = vrot.lane.b32.xlu0 %v524_v0, %s4656_s8  ;;  %616 = vrot.lane.b32.xlu1 %v525_v3, %s4656_s8 }
  0x99   : > { %v372_v62 = vpop.permute.xlu0 %371  ;;  %v376_v60 = vpop.permute.xlu1 %375 }
  0x9a   : > { %467 = vst.msk [vmem:[#allocation3 + $0x8] sm:$0xff] %vm465_vm2, %v372_v62  ;;  %469 = vst.msk [vmem:[#allocation3 + $0x18] sm:$0xff] %vm465_vm2, %v376_v60 }
  0x9b   : > { %618 = vrot.lane.b32.xlu0 %v526_v61, %s4656_s8  ;;  %620 = vrot.lane.b32.xlu1 %v527_v17, %s4656_s8 }
  0x9d   : > { %v378_v59 = vpop.permute.xlu0 %377  ;;  %v380_v13 = vpop.permute.xlu1 %379 }
  0x9e   : > { %470 = vst.msk [vmem:[#allocation3 + $0x20] sm:$0xff] %vm465_vm2, %v378_v59  ;;  %471 = vst.msk [vmem:[#allocation3 + $0x28] sm:$0xff] %vm465_vm2, %v380_v13 }
  0x9f   : > { %622 = vrot.lane.b32.xlu0 %v528_v63, %s4656_s8  ;;  %624 = vrot.lane.b32.xlu1 %v529_v1, %s4656_s8 }
  0xa1   : > { %v382_v0 = vpop.permute.xlu0 %381  ;;  %v384_v3 = vpop.permute.xlu1 %383 }
  0xa2   : > { %472 = vst.msk [vmem:[#allocation3 + $0x30] sm:$0xff] %vm465_vm2, %v382_v0  ;;  %473 = vst.msk [vmem:[#allocation3 + $0x38] sm:$0xff] %vm465_vm2, %v384_v3 }
  0xa3   : > { %756 = vrot.lane.b32.xlu0 %v4793_v14, %s4657_s9  ;;  %758 = vrot.lane.b32.xlu1 %v4807_v18, %s4657_s9 }
  0xa5   : > { %v386_v59 = vpop.permute.xlu0 %385  ;;  %v388_v60 = vpop.permute.xlu1 %387 }
  0xa6   : > { %474 = vst.msk [vmem:[#allocation3 + $0x40] sm:$0xff] %vm465_vm2, %v386_v59  ;;  %475 = vst.msk [vmem:[#allocation3 + $0x48] sm:$0xff] %vm465_vm2, %v388_v60 }
  0xa7   : > { %760 = vrot.lane.b32.xlu0 %v4815_v20, %s4657_s9  ;;  %762 = vrot.lane.b32.xlu1 %v4818_v21, %s4657_s9 }
  0xa9   : > { %v390_v61 = vpop.permute.xlu0 %389  ;;  %v392_v17 = vpop.permute.xlu1 %391 }
  0xaa   : > { %476 = vst.msk [vmem:[#allocation3 + $0x50] sm:$0xff] %vm465_vm2, %v390_v61  ;;  %477 = vst.msk [vmem:[#allocation3 + $0x58] sm:$0xff] %vm465_vm2, %v392_v17 }
  0xab   : > { %764 = vrot.lane.b32.xlu0 %v4832_v23, %s4657_s9  ;;  %766 = vrot.lane.b32.xlu1 %v4837_v24, %s4657_s9 }
  0xad   : > { %v394_v14 = vpop.permute.xlu0 %393  ;;  %v396_v18 = vpop.permute.xlu1 %395 }
  0xae   : > { %478 = vst.msk [vmem:[#allocation3 + $0x60] sm:$0xff] %vm465_vm2, %v394_v14  ;;  %479 = vst.msk [vmem:[#allocation3 + $0x68] sm:$0xff] %vm465_vm2, %v396_v18 }
  0xaf   : > { %768 = vrot.lane.b32.xlu0 %v4840_v25, %s4657_s9  ;;  %770 = vrot.lane.b32.xlu1 %v4843_v26, %s4657_s9 }
  0xb1   : > { %v398_v62 = vpop.permute.xlu0 %397  ;;  %v400_v63 = vpop.permute.xlu1 %399 }
  0xb2   : > { %480 = vst.msk [vmem:[#allocation3 + $0x70] sm:$0xff] %vm465_vm2, %v398_v62  ;;  %481 = vst.msk [vmem:[#allocation3 + $0x78] sm:$0xff] %vm465_vm2, %v400_v63 }
  0xb3   : > { %772 = vrot.lane.b32.xlu0 %v4852_v27, %s4657_s9  ;;  %774 = vrot.lane.b32.xlu1 %v4855_v28, %s4657_s9 }
  0xb5   : > { %v402_v1 = vpop.permute.xlu0 %401  ;;  %v404_v13 = vpop.permute.xlu1 %403 }
  0xb6   : > { %482 = vst.msk [vmem:[#allocation3 + $0x80] sm:$0xff] %vm465_vm2, %v402_v1  ;;  %483 = vst.msk [vmem:[#allocation3 + $0x88] sm:$0xff] %vm465_vm2, %v404_v13 }
  0xb7   : > { %776 = vrot.lane.b32.xlu0 %v4858_v29, %s4657_s9  ;;  %778 = vrot.lane.b32.xlu1 %v4873_v32, %s4657_s9 }
  0xb9   : > { %v406_v0 = vpop.permute.xlu0 %405  ;;  %v408_v3 = vpop.permute.xlu1 %407 }
  0xba   : > { %484 = vst.msk [vmem:[#allocation3 + $0x90] sm:$0xff] %vm465_vm2, %v406_v0  ;;  %485 = vst.msk [vmem:[#allocation3 + $0x98] sm:$0xff] %vm465_vm2, %v408_v3 }
  0xbb   : > { %780 = vrot.lane.b32.xlu0 %v4876_v33, %s4657_s9  ;;  %782 = vrot.lane.b32.xlu1 %v4879_v34, %s4657_s9 }
  0xbd   : > { %v410_v59 = vpop.permute.xlu0 %409  ;;  %v412_v60 = vpop.permute.xlu1 %411 }
  0xbe   : > { %486 = vst.msk [vmem:[#allocation3 + $0xa0] sm:$0xff] %vm465_vm2, %v410_v59  ;;  %487 = vst.msk [vmem:[#allocation3 + $0xa8] sm:$0xff] %vm465_vm2, %v412_v60  ;;  %v6885_v59 = vld [vmem:[#allocation8_spill] sm:$0xff]  ;;  %v6886_v60 = vld [vmem:[#allocation9_spill] sm:$0xff] }
  0xbf   : > { %784 = vrot.lane.b32.xlu0 %v4892_v35, %s4657_s9  ;;  %786 = vrot.lane.b32.xlu1 %v4895_v36, %s4657_s9 }
  0xc1   : > { %v414_v61 = vpop.permute.xlu0 %413  ;;  %v416_v17 = vpop.permute.xlu1 %415 }
  0xc2   : > { %488 = vst.msk [vmem:[#allocation3 + $0xb0] sm:$0xff] %vm465_vm2, %v414_v61  ;;  %489 = vst.msk [vmem:[#allocation3 + $0xb8] sm:$0xff] %vm465_vm2, %v416_v17 }
  0xc3   : > { %788 = vrot.lane.b32.xlu0 %v4902_v37, %s4657_s9  ;;  %790 = vrot.lane.b32.xlu1 %v4905_v38, %s4657_s9 }
  0xc5   : > { %v418_v33 = vpop.permute.xlu0 %417  ;;  %v420_v34 = vpop.permute.xlu1 %419 }
  0xc6   : > { %490 = vst.msk [vmem:[#allocation3 + $0xc0] sm:$0xff] %vm465_vm2, %v418_v33  ;;  %491 = vst.msk [vmem:[#allocation3 + $0xc8] sm:$0xff] %vm465_vm2, %v420_v34  ;;  %v6887_v34 = vld [vmem:[#allocation10_spill] sm:$0xff] }
  0xc7   : > { %792 = vrot.lane.b32.xlu0 %v4908_v39, %s4657_s9  ;;  %794 = vrot.lane.b32.xlu1 %v4917_v40, %s4657_s9 }
  0xc9   : > { %v422_v35 = vpop.permute.xlu0 %421  ;;  %v424_v36 = vpop.permute.xlu1 %423 }
  0xca   : > { %492 = vst.msk [vmem:[#allocation3 + $0xd0] sm:$0xff] %vm465_vm2, %v422_v35  ;;  %493 = vst.msk [vmem:[#allocation3 + $0xd8] sm:$0xff] %vm465_vm2, %v424_v36  ;;  %v6888_v35 = vld [vmem:[#allocation11_spill] sm:$0xff] }
  0xcb   : > { %796 = vrot.lane.b32.xlu0 %v4920_v41, %s4657_s9  ;;  %798 = vrot.lane.b32.xlu1 %v4923_v42, %s4657_s9  ;;  %v2333_v36 = vld [vmem:[%s6842_s1 + $0x10] sm:$0xff] }
  0xcd   : > { %v426_v37 = vpop.permute.xlu0 %425  ;;  %v428_v38 = vpop.permute.xlu1 %427 }
  0xce   : > { %494 = vst.msk [vmem:[#allocation3 + $0xe0] sm:$0xff] %vm465_vm2, %v426_v37  ;;  %495 = vst.msk [vmem:[#allocation3 + $0xe8] sm:$0xff] %vm465_vm2, %v428_v38  ;;  %v3972_v37 = vld [vmem:[%s4733_s6 + $0x181] sm:$0xff]  ;;  %v3973_v38 = vld [vmem:[%s4733_s6 + $0x189] sm:$0xff] }
  0xcf   : > { %800 = vrot.lane.b32.xlu0 %v4942_v45, %s4657_s9  ;;  %802 = vrot.lane.b32.xlu1 %v4947_v46, %s4657_s9 }
  0xd1   : > { %v430_v39 = vpop.permute.xlu0 %429  ;;  %v432_v40 = vpop.permute.xlu1 %431 }
  0xd2   : > { %496 = vst.msk [vmem:[#allocation3 + $0xf0] sm:$0xff] %vm465_vm2, %v430_v39  ;;  %497 = vst.msk [vmem:[#allocation3 + $0xf8] sm:$0xff] %vm465_vm2, %v432_v40 }
  0xd3   : > { %804 = vrot.lane.b32.xlu0 %v4962_v49, %s4657_s9  ;;  %806 = vrot.lane.b32.xlu1 %v4967_v50, %s4657_s9  ;;  %v3940_v49 = vld [vmem:[%s4733_s6 + $0x180] sm:$0xff]  ;;  %v3941_v50 = vld [vmem:[%s4733_s6 + $0x188] sm:$0xff] }
  0xd5   : > { %v563_v41 = vpop.permute.xlu0 %562  ;;  %v565_v42 = vpop.permute.xlu1 %564 }
  0xd6   : > { %659 = vst.msk [vmem:[#allocation3] sm:$0xff] %vm658_vm3, %v563_v41  ;;  %660 = vst.msk [vmem:[#allocation3 + $0x8] sm:$0xff] %vm658_vm3, %v565_v42 }
  0xd7   : > { %808 = vrot.lane.b32.xlu0 %v4982_v53, %s4657_s9  ;;  %810 = vrot.lane.b32.xlu1 %v4987_v54, %s4657_s9 }
  0xd9   : > { %v567_v45 = vpop.permute.xlu0 %566  ;;  %v569_v46 = vpop.permute.xlu1 %568 }
  0xda   : > { %661 = vst.msk [vmem:[#allocation3 + $0x10] sm:$0xff] %vm658_vm3, %v567_v45  ;;  %662 = vst.msk [vmem:[#allocation3 + $0x18] sm:$0xff] %vm658_vm3, %v569_v46  ;;  %v6889_v45 = vld [vmem:[#allocation12_spill] sm:$0xff]  ;;  %v6890_v46 = vld [vmem:[#allocation13_spill] sm:$0xff] }
  0xdb   : > { %812 = vrot.lane.b32.xlu0 %v5002_v57, %s4657_s9  ;;  %814 = vrot.lane.b32.xlu1 %v5007_v58, %s4657_s9 }
  0xdd   : > { %v571_v14 = vpop.permute.xlu0 %570  ;;  %v573_v18 = vpop.permute.xlu1 %572 }
  0xde   : > { %663 = vst.msk [vmem:[#allocation3 + $0x20] sm:$0xff] %vm658_vm3, %v571_v14  ;;  %664 = vst.msk [vmem:[#allocation3 + $0x28] sm:$0xff] %vm658_vm3, %v573_v18  ;;  %v6891_v18 = vld [vmem:[#allocation14_spill] sm:$0xff] }
  0xdf   : > { %816 = vrot.lane.b32.xlu0 %v3940_v49, %s4657_s9  ;;  %818 = vrot.lane.b32.xlu1 %v3941_v50, %s4657_s9  ;;  %v5353_v49 = vld [vmem:[%s4733_s6 + $0xa8] sm:$0xff] }
  0xe0   : > { %1316 = vst.msk [vmem:[#allocation3 + $0x160] sm:$0xff] %vm272_vm1, %v5353_v49 }
  0xe1   : > { %v575_v53 = vpop.permute.xlu0 %574  ;;  %v577_v54 = vpop.permute.xlu1 %576 }
  0xe2   : > { %665 = vst.msk [vmem:[#allocation3 + $0x30] sm:$0xff] %vm658_vm3, %v575_v53  ;;  %666 = vst.msk [vmem:[#allocation3 + $0x38] sm:$0xff] %vm658_vm3, %v577_v54  ;;  %v6892_v53 = vld [vmem:[#allocation15_spill] sm:$0xff] }
  0xe3   : > { %949 = vrot.lane.b32.xlu0 %v4739_v2, %s4658_s10  ;;  %951 = vrot.lane.b32.xlu1 %v4746_v4, %s4658_s10  ;;  %v5364_v54 = vld [vmem:[%s4733_s6 + $0xb0] sm:$0xff] }
  0xe4   : > { %1317 = vst.msk [vmem:[#allocation3 + $0x168] sm:$0xff] %vm272_vm1, %v5364_v54 }
  0xe5   : > { %v579_v57 = vpop.permute.xlu0 %578  ;;  %v581_v58 = vpop.permute.xlu1 %580 }
  0xe6   : > { %667 = vst.msk [vmem:[#allocation3 + $0x40] sm:$0xff] %vm658_vm3, %v579_v57  ;;  %668 = vst.msk [vmem:[#allocation3 + $0x48] sm:$0xff] %vm658_vm3, %v581_v58  ;;  %v4006_v57 = vld [vmem:[%s4733_s6 + $0x18] sm:$0xff] }
  0xe7   : > { %953 = vrot.lane.b32.xlu0 %v4752_v5, %s4658_s10  ;;  %955 = vrot.lane.b32.xlu1 %v4755_v6, %s4658_s10  ;;  %1304 = vst.msk [vmem:[#allocation3 + $0x100] sm:$0xff] %vm272_vm1, %v4006_v57 }
  0xe9   : > { %v583_v62 = vpop.permute.xlu0 %582  ;;  %v585_v63 = vpop.permute.xlu1 %584 }
  0xea   : > { %669 = vst.msk [vmem:[#allocation3 + $0x50] sm:$0xff] %vm658_vm3, %v583_v62  ;;  %670 = vst.msk [vmem:[#allocation3 + $0x58] sm:$0xff] %vm658_vm3, %v585_v63  ;;  %v4007_v63 = vld [vmem:[%s4733_s6 + $0x20] sm:$0xff] }
  0xeb   : > { %957 = vrot.lane.b32.xlu0 %v4762_v7, %s4658_s10  ;;  %959 = vrot.lane.b32.xlu1 %v4765_v8, %s4658_s10  ;;  %1305 = vst.msk [vmem:[#allocation3 + $0x108] sm:$0xff] %vm272_vm1, %v4007_v63 }
  0xed   : > { %v587_v1 = vpop.permute.xlu0 %586  ;;  %v589_v13 = vpop.permute.xlu1 %588 }
  0xee   : > { %671 = vst.msk [vmem:[#allocation3 + $0x60] sm:$0xff] %vm658_vm3, %v587_v1  ;;  %672 = vst.msk [vmem:[#allocation3 + $0x68] sm:$0xff] %vm658_vm3, %v589_v13  ;;  %v6893_v1 = vld [vmem:[#allocation16_spill] sm:$0xff]  ;;  %v6894_v13 = vld [vmem:[#allocation17_spill] sm:$0xff] }
  0xef   : > { %961 = vrot.lane.b32.xlu0 %v4772_v9, %s4658_s10  ;;  %963 = vrot.lane.b32.xlu1 %v4775_v10, %s4658_s10 }
  0xf1   : > { %v591_v5 = vpop.permute.xlu0 %590  ;;  %v593_v6 = vpop.permute.xlu1 %592 }
  0xf2   : > { %673 = vst.msk [vmem:[#allocation3 + $0x70] sm:$0xff] %vm658_vm3, %v591_v5  ;;  %674 = vst.msk [vmem:[#allocation3 + $0x78] sm:$0xff] %vm658_vm3, %v593_v6 }
  0xf3   : > { %965 = vrot.lane.b32.xlu0 %v4782_v11, %s4658_s10  ;;  %967 = vrot.lane.b32.xlu1 %v4785_v12, %s4658_s10 }
  0xf5   : > { %v595_v7 = vpop.permute.xlu0 %594  ;;  %v597_v8 = vpop.permute.xlu1 %596 }
  0xf6   : > { %675 = vst.msk [vmem:[#allocation3 + $0x80] sm:$0xff] %vm658_vm3, %v595_v7  ;;  %676 = vst.msk [vmem:[#allocation3 + $0x88] sm:$0xff] %vm658_vm3, %v597_v8  ;;  %v6895_v7 = vld [vmem:[#allocation18_spill] sm:$0xff]  ;;  %v6896_v8 = vld [vmem:[#allocation19_spill] sm:$0xff] }
  0xf7   : > { %969 = vrot.lane.b32.xlu0 %v4796_v15, %s4658_s10  ;;  %971 = vrot.lane.b32.xlu1 %v4799_v16, %s4658_s10 }
  0xf9   : > { %v599_v9 = vpop.permute.xlu0 %598  ;;  %v601_v10 = vpop.permute.xlu1 %600 }
  0xfa   : > { %677 = vst.msk [vmem:[#allocation3 + $0x90] sm:$0xff] %vm658_vm3, %v599_v9  ;;  %678 = vst.msk [vmem:[#allocation3 + $0x98] sm:$0xff] %vm658_vm3, %v601_v10 }
  0xfb   : > { %973 = vrot.lane.b32.xlu0 %v4810_v19, %s4658_s10  ;;  %975 = vrot.lane.b32.xlu1 %v4825_v22, %s4658_s10 }
  0xfd   : > { %v603_v11 = vpop.permute.xlu0 %602  ;;  %v605_v12 = vpop.permute.xlu1 %604 }
  0xfe   : > { %679 = vst.msk [vmem:[#allocation3 + $0xa0] sm:$0xff] %vm658_vm3, %v603_v11  ;;  %680 = vst.msk [vmem:[#allocation3 + $0xa8] sm:$0xff] %vm658_vm3, %v605_v12  ;;  %v6897_v11 = vld [vmem:[#allocation20_spill] sm:$0xff]  ;;  %v6898_v12 = vld [vmem:[#allocation21_spill] sm:$0xff] }
  0xff   : > { %977 = vrot.lane.b32.xlu0 %v4861_v30, %s4658_s10  ;;  %979 = vrot.lane.b32.xlu1 %v4864_v31, %s4658_s10 }
 0x101   : > { %v607_v15 = vpop.permute.xlu0 %606  ;;  %v609_v16 = vpop.permute.xlu1 %608 }
 0x102   : > { %681 = vst.msk [vmem:[#allocation3 + $0xb0] sm:$0xff] %vm658_vm3, %v607_v15  ;;  %682 = vst.msk [vmem:[#allocation3 + $0xb8] sm:$0xff] %vm658_vm3, %v609_v16 }
 0x103   : > { %981 = vrot.lane.b32.xlu0 %v4936_v43, %s4658_s10  ;;  %983 = vrot.lane.b32.xlu1 %v4939_v44, %s4658_s10 }
 0x105   : > { %v611_v19 = vpop.permute.xlu0 %610  ;;  %v613_v22 = vpop.permute.xlu1 %612 }
 0x106   : > { %683 = vst.msk [vmem:[#allocation3 + $0xc0] sm:$0xff] %vm658_vm3, %v611_v19  ;;  %684 = vst.msk [vmem:[#allocation3 + $0xc8] sm:$0xff] %vm658_vm3, %v613_v22  ;;  %v4008_v19 = vld [vmem:[%s4733_s6 + $0x30] sm:$0xff] }
 0x107   : > { %985 = vrot.lane.b32.xlu0 %v4956_v47, %s4658_s10  ;;  %987 = vrot.lane.b32.xlu1 %v4959_v48, %s4658_s10  ;;  %1306 = vst.msk [vmem:[#allocation3 + $0x110] sm:$0xff] %vm272_vm1, %v4008_v19 }
 0x109   : > { %v615_v30 = vpop.permute.xlu0 %614  ;;  %v617_v31 = vpop.permute.xlu1 %616 }
 0x10a   : > { %685 = vst.msk [vmem:[#allocation3 + $0xd0] sm:$0xff] %vm658_vm3, %v615_v30  ;;  %686 = vst.msk [vmem:[#allocation3 + $0xd8] sm:$0xff] %vm658_vm3, %v617_v31  ;;  %v5405_v31 = vld [vmem:[%s4733_s6 + $0xc0] sm:$0xff] }
 0x10b   : > { %989 = vrot.lane.b32.xlu0 %v4976_v51, %s4658_s10  ;;  %991 = vrot.lane.b32.xlu1 %v4979_v52, %s4658_s10  ;;  %v6883_v51 = vld [vmem:[#allocation6_spill] sm:$0xff]  ;;  %v6884_v52 = vld [vmem:[#allocation7_spill] sm:$0xff]  ;;  %1318 = vst.msk [vmem:[#allocation3 + $0x170] sm:$0xff] %vm272_vm1, %v5405_v31 }
 0x10d   : > { %v619_v43 = vpop.permute.xlu0 %618  ;;  %v621_v44 = vpop.permute.xlu1 %620 }
 0x10e   : > { %687 = vst.msk [vmem:[#allocation3 + $0xe0] sm:$0xff] %vm658_vm3, %v619_v43  ;;  %688 = vst.msk [vmem:[#allocation3 + $0xe8] sm:$0xff] %vm658_vm3, %v621_v44  ;;  %v5418_v44 = vld [vmem:[%s4733_s6 + $0xc8] sm:$0xff] }
 0x10f   : > { %993 = vrot.lane.b32.xlu0 %v4996_v55, %s4658_s10  ;;  %995 = vrot.lane.b32.xlu1 %v4999_v56, %s4658_s10  ;;  %v2331_v55 = vld [vmem:[%s6842_s1] sm:$0xff]  ;;  %v2332_v56 = vld [vmem:[%s6842_s1 + $0x8] sm:$0xff]  ;;  %1319 = vst.msk [vmem:[#allocation3 + $0x178] sm:$0xff] %vm272_vm1, %v5418_v44 }
 0x110   : > { %v4555_v61 = vpack.c.bf16 %v2332_v56, %v2331_v55  ;;  %v4234_v56 = vld [vmem:[%s6842_s1 + $0x28] sm:$0xff] }
 0x111   : > { %v623_v47 = vpop.permute.xlu0 %622  ;;  %v625_v48 = vpop.permute.xlu1 %624 }
 0x112   : > { %689 = vst.msk [vmem:[#allocation3 + $0xf0] sm:$0xff] %vm658_vm3, %v623_v47  ;;  %690 = vst.msk [vmem:[#allocation3 + $0xf8] sm:$0xff] %vm658_vm3, %v625_v48  ;;  %4556 = vmatprep.subr.bf16.mxu0 %v4555_v61  ;;  %v4134_v47 = vld [vmem:[%s4733_s6 + $0x31] sm:$0xff] }
 0x113   : > { %997 = vrot.lane.b32.xlu0 %v6883_v51, %s4658_s10  ;;  %999 = vrot.lane.b32.xlu1 %v6884_v52, %s4658_s10  ;;  %v4232_v52 = vld [vmem:[%s6842_s1 + $0x18] sm:$0xff] }
 0x114   : > { %4558 = vmatpush3.bf16.msra.mxu0 %v4555_v61  ;;  %v4010_v61 = vld [vmem:[%s4733_s6 + $0x48] sm:$0xff] }
 0x115   : > { %v757_v0 = vpop.permute.xlu0 %756  ;;  %v759_v3 = vpop.permute.xlu1 %758  ;;  %4451 = vmatprep.subr.mxu0 %v2333_v36  ;;  %1308 = vst.msk [vmem:[#allocation3 + $0x120] sm:$0xff] %vm272_vm1, %v4010_v61 }
 0x116   : > { %853 = vst.msk [vmem:[#allocation3] sm:$0xff] %vm852_vm4, %v757_v0  ;;  %854 = vst.msk [vmem:[#allocation3 + $0x8] sm:$0xff] %vm852_vm4, %v759_v3  ;;  %v4233_v0 = vld [vmem:[%s6842_s1 + $0x20] sm:$0xff] }
 0x117   : > { %1001 = vrot.lane.b32.xlu0 %v6885_v59, %s4658_s10  ;;  %1003 = vrot.lane.b32.xlu1 %v6886_v60, %s4658_s10 }
 0x118   : > { %4452 = vmatpush3.msra.mxu0 %v2333_v36 }
 0x119   : > { %v761_v17 = vpop.permute.xlu0 %760  ;;  %v763_v33 = vpop.permute.xlu1 %762 }
 0x11a   : > { %855 = vst.msk [vmem:[#allocation3 + $0x10] sm:$0xff] %vm852_vm4, %v761_v17  ;;  %856 = vst.msk [vmem:[#allocation3 + $0x18] sm:$0xff] %vm852_vm4, %v763_v33 }
 0x11b   : > { %1005 = vrot.lane.b32.xlu0 %v6887_v34, %s4658_s10  ;;  %1007 = vrot.lane.b32.xlu1 %v6888_v35, %s4658_s10  ;;  %v4011_v34 = vld [vmem:[%s4733_s6 + $0x50] sm:$0xff] }
 0x11c   : > { %1309 = vst.msk [vmem:[#allocation3 + $0x128] sm:$0xff] %vm272_vm1, %v4011_v34 }
 0x11d   : > { %v765_v39 = vpop.permute.xlu0 %764  ;;  %v767_v40 = vpop.permute.xlu1 %766 }
 0x11e   : > { %857 = vst.msk [vmem:[#allocation3 + $0x20] sm:$0xff] %vm852_vm4, %v765_v39  ;;  %858 = vst.msk [vmem:[#allocation3 + $0x28] sm:$0xff] %vm852_vm4, %v767_v40 }
 0x11f   : > { %1009 = vrot.lane.b32.xlu0 %v3972_v37, %s4658_s10  ;;  %1011 = vrot.lane.b32.xlu1 %v3973_v38, %s4658_s10  ;;  %v5464_v37 = vld [vmem:[%s4733_s6 + $0xd8] sm:$0xff]  ;;  %v4136_v38 = vld [vmem:[%s4733_s6 + $0x49] sm:$0xff] }
 0x120   : > { %1320 = vst.msk [vmem:[#allocation3 + $0x180] sm:$0xff] %vm272_vm1, %v5464_v37 }
 0x121   : > { %v769_v41 = vpop.permute.xlu0 %768  ;;  %v771_v42 = vpop.permute.xlu1 %770 }
 0x122   : > { %859 = vst.msk [vmem:[#allocation3 + $0x30] sm:$0xff] %vm852_vm4, %v769_v41  ;;  %860 = vst.msk [vmem:[#allocation3 + $0x38] sm:$0xff] %vm852_vm4, %v771_v42 }
 0x123   : > { %1142 = vrot.lane.b32.xlu0 %v6889_v45, %s4659_s24  ;;  %1144 = vrot.lane.b32.xlu1 %v6890_v46, %s4659_s24 }
 0x125   : > { %v773_v50 = vpop.permute.xlu0 %772  ;;  %v775_v14 = vpop.permute.xlu1 %774 }
 0x126   : > { %861 = vst.msk [vmem:[#allocation3 + $0x40] sm:$0xff] %vm852_vm4, %v773_v50  ;;  %862 = vst.msk [vmem:[#allocation3 + $0x48] sm:$0xff] %vm852_vm4, %v775_v14  ;;  %v4012_v14 = vld [vmem:[%s4733_s6 + $0x60] sm:$0xff] }
 0x127   : > { %1146 = vrot.lane.b32.xlu0 %v6891_v18, %s4659_s24  ;;  %1148 = vrot.lane.b32.xlu1 %v6892_v53, %s4659_s24  ;;  %1310 = vst.msk [vmem:[#allocation3 + $0x130] sm:$0xff] %vm272_vm1, %v4012_v14  ;;  %v5611_v14 = vld [vmem:[%s4733_s6 + $0x128] sm:$0xff] }
 0x128   : > { %1327 = vst.msk [vmem:[#allocation3 + $0x1b8] sm:$0xff] %vm272_vm1, %v5611_v14 }
 0x129   : > { %v777_v58 = vpop.permute.xlu0 %776  ;;  %v779_v62 = vpop.permute.xlu1 %778 }
 0x12a   : > { %863 = vst.msk [vmem:[#allocation3 + $0x50] sm:$0xff] %vm852_vm4, %v777_v58  ;;  %864 = vst.msk [vmem:[#allocation3 + $0x58] sm:$0xff] %vm852_vm4, %v779_v62  ;;  %v4013_v58 = vld [vmem:[%s4733_s6 + $0x68] sm:$0xff] }
 0x12b   : > { %1150 = vrot.lane.b32.xlu0 %v6893_v1, %s4659_s24  ;;  %1152 = vrot.lane.b32.xlu1 %v6894_v13, %s4659_s24  ;;  %1311 = vst.msk [vmem:[#allocation3 + $0x138] sm:$0xff] %vm272_vm1, %v4013_v58 }
 0x12d   : > { %v781_v5 = vpop.permute.xlu0 %780  ;;  %v783_v6 = vpop.permute.xlu1 %782 }
 0x12e   : > { %865 = vst.msk [vmem:[#allocation3 + $0x60] sm:$0xff] %vm852_vm4, %v781_v5  ;;  %866 = vst.msk [vmem:[#allocation3 + $0x68] sm:$0xff] %vm852_vm4, %v783_v6  ;;  %v5510_v6 = vld [vmem:[%s4733_s6 + $0xf0] sm:$0xff] }
 0x12f   : > { %1154 = vrot.lane.b32.xlu0 %v6895_v7, %s4659_s24  ;;  %1156 = vrot.lane.b32.xlu1 %v6896_v8, %s4659_s24  ;;  %v4139_v7 = vld [vmem:[%s4733_s6 + $0x69] sm:$0xff]  ;;  %1322 = vst.msk [vmem:[#allocation3 + $0x190] sm:$0xff] %vm272_vm1, %v5510_v6 }
 0x131   : > { %v785_v9 = vpop.permute.xlu0 %784  ;;  %v787_v10 = vpop.permute.xlu1 %786 }
 0x132   : > { %867 = vst.msk [vmem:[#allocation3 + $0x70] sm:$0xff] %vm852_vm4, %v785_v9  ;;  %868 = vst.msk [vmem:[#allocation3 + $0x78] sm:$0xff] %vm852_vm4, %v787_v10  ;;  %v5521_v9 = vld [vmem:[%s4733_s6 + $0xf8] sm:$0xff] }
 0x133   : > { %1158 = vrot.lane.b32.xlu0 %v6897_v11, %s4659_s24  ;;  %1160 = vrot.lane.b32.xlu1 %v6898_v12, %s4659_s24  ;;  %1323 = vst.msk [vmem:[#allocation3 + $0x198] sm:$0xff] %vm272_vm1, %v5521_v9  ;;  %v4014_v12 = vld [vmem:[%s4733_s6 + $0x78] sm:$0xff] }
 0x134   : > { %1312 = vst.msk [vmem:[#allocation3 + $0x140] sm:$0xff] %vm272_vm1, %v4014_v12 }
 0x135   : > { %v789_v15 = vpop.permute.xlu0 %788  ;;  %v791_v16 = vpop.permute.xlu1 %790 }
 0x136   : > { %869 = vst.msk [vmem:[#allocation3 + $0x80] sm:$0xff] %vm852_vm4, %v789_v15  ;;  %870 = vst.msk [vmem:[#allocation3 + $0x88] sm:$0xff] %vm852_vm4, %v791_v16  ;;  %v4171_v15 = vld [vmem:[%s4733_s6 + $0x6a] sm:$0xff] }
 0x137   : > { %1400 = vrot.lane.b32.xlu0 %v4739_v2, %s4655_s7  ;;  %1402 = vrot.lane.b32.xlu1 %v4746_v4, %s4655_s7  ;;  %v4009_v2 = vld [vmem:[%s4733_s6 + $0x38] sm:$0xff] }
 0x138   : > { %1307 = vst.msk [vmem:[#allocation3 + $0x118] sm:$0xff] %vm272_vm1, %v4009_v2 }
 0x139   : > { %v793_v22 = vpop.permute.xlu0 %792  ;;  %v795_v30 = vpop.permute.xlu1 %794 }
 0x13a   : > { %871 = vst.msk [vmem:[#allocation3 + $0x90] sm:$0xff] %vm852_vm4, %v793_v22  ;;  %872 = vst.msk [vmem:[#allocation3 + $0x98] sm:$0xff] %vm852_vm4, %v795_v30  ;;  %v4015_v22 = vld [vmem:[%s4733_s6 + $0x80] sm:$0xff] }
 0x13b   : > { %1592 = vrot.lane.b32.xlu0 %v6889_v45, %s4656_s8  ;;  %1594 = vrot.lane.b32.xlu1 %v6890_v46, %s4656_s8  ;;  %v4074_v45 = vld [vmem:[%s4733_s6 + $0x4a] sm:$0xff]  ;;  %1313 = vst.msk [vmem:[#allocation3 + $0x148] sm:$0xff] %vm272_vm1, %v4015_v22  ;;  %v5649_v22 = vld [vmem:[%s4733_s6 + $0x138] sm:$0xff] }
 0x13c   : > { %1328 = vst.msk [vmem:[#allocation3 + $0x1c0] sm:$0xff] %vm272_vm1, %v5649_v22 }
 0x13d   : > { %v797_v4 = vpop.permute.xlu0 %796  ;;  %v799_v43 = vpop.permute.xlu1 %798 }
 0x13e   : > { %873 = vst.msk [vmem:[#allocation3 + $0xa0] sm:$0xff] %vm852_vm4, %v797_v4  ;;  %874 = vst.msk [vmem:[#allocation3 + $0xa8] sm:$0xff] %vm852_vm4, %v799_v43  ;;  %v4140_v4 = vld [vmem:[%s4733_s6 + $0x79] sm:$0xff] }
 0x13f   : > { %1785 = vrot.lane.b32.xlu0 %v4815_v20, %s4657_s9  ;;  %1787 = vrot.lane.b32.xlu1 %v4818_v21, %s4657_s9  ;;  %v4559_v20 = vpack.c.bf16 %v4233_v0, %v4232_v52  ;;  %v4135_v21 = vld [vmem:[%s4733_s6 + $0x39] sm:$0xff] }
 0x141   : > { %v801_v48 = vpop.permute.xlu0 %800  ;;  %v803_v51 = vpop.permute.xlu1 %802  ;;  %4560 = vmatprep.subr.bf16.mxu1 %v4559_v20 }
 0x142   : > { %875 = vst.msk [vmem:[#allocation3 + $0xb0] sm:$0xff] %vm852_vm4, %v801_v48  ;;  %876 = vst.msk [vmem:[#allocation3 + $0xb8] sm:$0xff] %vm852_vm4, %v803_v51  ;;  %4562 = vmatpush3.bf16.msra.mxu1 %v4559_v20  ;;  %v4141_v48 = vld [vmem:[%s4733_s6 + $0x81] sm:$0xff] }
 0x143   : > { %1977 = vrot.lane.b32.xlu0 %v4134_v47, %s4658_s10  ;;  %1404 = vrot.lane.b32.xlu1 %v4134_v47, %s4655_s7  ;;  %v4172_v51 = vld [vmem:[%s4733_s6 + $0x7a] sm:$0xff] }
 0x144   : > { %4505 = vmatprep.subr.mxu1 %v4234_v56 }
 0x145   : > { %v805_v3 = vpop.permute.xlu0 %804  ;;  %v807_v55 = vpop.permute.xlu1 %806 }
 0x146   : > { %877 = vst.msk [vmem:[#allocation3 + $0xc0] sm:$0xff] %vm852_vm4, %v805_v3  ;;  %878 = vst.msk [vmem:[#allocation3 + $0xc8] sm:$0xff] %vm852_vm4, %v807_v55  ;;  %4506 = vmatpush3.msra.mxu1 %v4234_v56  ;;  %v5567_v3 = vld [vmem:[%s4733_s6 + $0x110] sm:$0xff]  ;;  %v4173_v55 = vld [vmem:[%s4733_s6 + $0x82] sm:$0xff] }
 0x147   : > { %1979 = vrot.lane.b32.xlu0 %v4135_v21, %s4658_s10  ;;  %2169 = vrot.lane.b32.xlu1 %v6891_v18, %s4659_s24  ;;  %1325 = vst.msk [vmem:[#allocation3 + $0x1a8] sm:$0xff] %vm272_vm1, %v5567_v3 }
 0x149   : > { %v809_v59 = vpop.permute.xlu0 %808  ;;  %v811_v60 = vpop.permute.xlu1 %810 }
 0x14a   : > { %879 = vst.msk [vmem:[#allocation3 + $0xd0] sm:$0xff] %vm852_vm4, %v809_v59  ;;  %880 = vst.msk [vmem:[#allocation3 + $0xd8] sm:$0xff] %vm852_vm4, %v811_v60  ;;  %v4017_v60 = vld [vmem:[%s4733_s6 + $0x98] sm:$0xff] }
 0x14b   : > { %1406 = vrot.lane.b32.xlu0 %v4135_v21, %s4655_s7  ;;  %1596 = vrot.lane.b32.xlu1 %v6891_v18, %s4656_s8  ;;  %v4169_v18 = vld [vmem:[%s4733_s6 + $0x52] sm:$0xff]  ;;  %1315 = vst.msk [vmem:[#allocation3 + $0x158] sm:$0xff] %vm272_vm1, %v4017_v60 }
 0x14c   : > { %v4016_v21 = vld [vmem:[%s4733_s6 + $0x90] sm:$0xff] }
 0x14d   : > { %v813_v17 = vpop.permute.xlu0 %812  ;;  %v815_v33 = vpop.permute.xlu1 %814  ;;  %1314 = vst.msk [vmem:[#allocation3 + $0x150] sm:$0xff] %vm272_vm1, %v4016_v21 }
 0x14e   : > { %881 = vst.msk [vmem:[#allocation3 + $0xe0] sm:$0xff] %vm852_vm4, %v813_v17  ;;  %882 = vst.msk [vmem:[#allocation3 + $0xe8] sm:$0xff] %vm852_vm4, %v815_v33  ;;  %v4142_v33 = vld [vmem:[%s4733_s6 + $0x91] sm:$0xff] }
 0x14f   : > { %2171 = vrot.lane.b32.xlu0 %v6892_v53, %s4659_s24  ;;  %1598 = vrot.lane.b32.xlu1 %v6892_v53, %s4656_s8 }
 0x151   : > { %v817_v35 = vpop.permute.xlu0 %816  ;;  %v819_v36 = vpop.permute.xlu1 %818 }
 0x152   : > { %883 = vst.msk [vmem:[#allocation3 + $0xf0] sm:$0xff] %vm852_vm4, %v817_v35  ;;  %884 = vst.msk [vmem:[#allocation3 + $0xf8] sm:$0xff] %vm852_vm4, %v819_v36  ;;  %v4143_v36 = vld [vmem:[%s4733_s6 + $0x99] sm:$0xff] }
 0x153   : > { %1789 = vrot.lane.b32.xlu0 %v4832_v23, %s4657_s9  ;;  %1791 = vrot.lane.b32.xlu1 %v4837_v24, %s4657_s9  ;;  %v5474_v23 = vld [vmem:[%s4733_s6 + $0xe0] sm:$0xff]  ;;  %v4137_v24 = vld [vmem:[%s4733_s6 + $0x51] sm:$0xff] }
 0x154   : > { %1321 = vst.msk [vmem:[#allocation3 + $0x188] sm:$0xff] %vm272_vm1, %v5474_v23 }
 0x155   : > { %v950_v39 = vpop.permute.xlu0 %949  ;;  %v952_v40 = vpop.permute.xlu1 %951 }
 0x156   : > { %1046 = vst.msk [vmem:[#allocation3] sm:$0xff] %vm1045_vm5, %v950_v39  ;;  %1047 = vst.msk [vmem:[#allocation3 + $0x8] sm:$0xff] %vm1045_vm5, %v952_v40 }
 0x157   : > { %1981 = vrot.lane.b32.xlu0 %v4136_v38, %s4658_s10  ;;  %1408 = vrot.lane.b32.xlu1 %v4136_v38, %s4655_s7  ;;  %v4174_v38 = vld [vmem:[%s4733_s6 + $0x92] sm:$0xff] }
 0x159   : > { %v954_v41 = vpop.permute.xlu0 %953  ;;  %v956_v42 = vpop.permute.xlu1 %955 }
 0x15a   : > { %1048 = vst.msk [vmem:[#allocation3 + $0x10] sm:$0xff] %vm1045_vm5, %v954_v41  ;;  %1049 = vst.msk [vmem:[#allocation3 + $0x18] sm:$0xff] %vm1045_vm5, %v956_v42  ;;  %v4175_v41 = vld [vmem:[%s4733_s6 + $0x9a] sm:$0xff] }
 0x15b   : > { %1983 = vrot.lane.b32.xlu0 %v4137_v24, %s4658_s10  ;;  %2173 = vrot.lane.b32.xlu1 %v6893_v1, %s4659_s24  ;;  %v4138_v1 = vld [vmem:[%s4733_s6 + $0x61] sm:$0xff] }
 0x15d   : > { %v958_v46 = vpop.permute.xlu0 %957  ;;  %v960_v50 = vpop.permute.xlu1 %959 }
 0x15e   : > { %1050 = vst.msk [vmem:[#allocation3 + $0x20] sm:$0xff] %vm1045_vm5, %v958_v46  ;;  %1051 = vst.msk [vmem:[#allocation3 + $0x28] sm:$0xff] %vm1045_vm5, %v960_v50 }
 0x15f   : > { %1410 = vrot.lane.b32.xlu0 %v4137_v24, %s4655_s7  ;;  %1600 = vrot.lane.b32.xlu1 %v4074_v45, %s4656_s8  ;;  %v5600_v24 = vld [vmem:[%s4733_s6 + $0x120] sm:$0xff] }
 0x160   : > { %1326 = vst.msk [vmem:[#allocation3 + $0x1b0] sm:$0xff] %vm272_vm1, %v5600_v24 }
 0x161   : > { %v962_v53 = vpop.permute.xlu0 %961  ;;  %v964_v57 = vpop.permute.xlu1 %963 }
 0x162   : > { %1052 = vst.msk [vmem:[#allocation3 + $0x30] sm:$0xff] %vm1045_vm5, %v962_v53  ;;  %1053 = vst.msk [vmem:[#allocation3 + $0x38] sm:$0xff] %vm1045_vm5, %v964_v57 }
 0x163   : > { %2175 = vrot.lane.b32.xlu0 %v4169_v18, %s4659_s24  ;;  %1602 = vrot.lane.b32.xlu1 %v4169_v18, %s4656_s8 }
 0x165   : > { %v966_v62 = vpop.permute.xlu0 %965  ;;  %v968_v63 = vpop.permute.xlu1 %967 }
 0x166   : > { %1054 = vst.msk [vmem:[#allocation3 + $0x40] sm:$0xff] %vm1045_vm5, %v966_v62  ;;  %1055 = vst.msk [vmem:[#allocation3 + $0x48] sm:$0xff] %vm1045_vm5, %v968_v63 }
 0x167   : > { %1793 = vrot.lane.b32.xlu0 %v4840_v25, %s4657_s9  ;;  %1795 = vrot.lane.b32.xlu1 %v4843_v26, %s4657_s9  ;;  %v4170_v25 = vld [vmem:[%s4733_s6 + $0x62] sm:$0xff] }
 0x169   : > { %v970_v13 = vpop.permute.xlu0 %969  ;;  %v972_v5 = vpop.permute.xlu1 %971 }
 0x16a   : > { %1056 = vst.msk [vmem:[#allocation3 + $0x50] sm:$0xff] %vm1045_vm5, %v970_v13  ;;  %1057 = vst.msk [vmem:[#allocation3 + $0x58] sm:$0xff] %vm1045_vm5, %v972_v5  ;;  %v4144_v5 = vld [vmem:[%s4733_s6 + $0xa9] sm:$0xff] }
 0x16b   : > { %1985 = vrot.lane.b32.xlu0 %v4138_v1, %s4658_s10  ;;  %1412 = vrot.lane.b32.xlu1 %v4138_v1, %s4655_s7 }
 0x16d   : > { %v974_v26 = vpop.permute.xlu0 %973  ;;  %v976_v8 = vpop.permute.xlu1 %975 }
 0x16e   : > { %1058 = vst.msk [vmem:[#allocation3 + $0x60] sm:$0xff] %vm1045_vm5, %v974_v26  ;;  %1059 = vst.msk [vmem:[#allocation3 + $0x68] sm:$0xff] %vm1045_vm5, %v976_v8  ;;  %v4145_v8 = vld [vmem:[%s4733_s6 + $0xb1] sm:$0xff] }
 0x16f   : > { %1987 = vrot.lane.b32.xlu0 %v4139_v7, %s4658_s10  ;;  %2177 = vrot.lane.b32.xlu1 %v4170_v25, %s4659_s24 }
 0x171   : > { %v978_v10 = vpop.permute.xlu0 %977  ;;  %v980_v11 = vpop.permute.xlu1 %979 }
 0x172   : > { %1060 = vst.msk [vmem:[#allocation3 + $0x70] sm:$0xff] %vm1045_vm5, %v978_v10  ;;  %1061 = vst.msk [vmem:[#allocation3 + $0x78] sm:$0xff] %vm1045_vm5, %v980_v11 }
 0x173   : > { %1414 = vrot.lane.b32.xlu0 %v4139_v7, %s4655_s7  ;;  %1604 = vrot.lane.b32.xlu1 %v4170_v25, %s4656_s8 }
 0x175   : > { %v982_v16 = vpop.permute.xlu0 %981  ;;  %v984_v19 = vpop.permute.xlu1 %983 }
 0x176   : > { %1062 = vst.msk [vmem:[#allocation3 + $0x80] sm:$0xff] %vm1045_vm5, %v982_v16  ;;  %1063 = vst.msk [vmem:[#allocation3 + $0x88] sm:$0xff] %vm1045_vm5, %v984_v19 }
 0x177   : > { %2179 = vrot.lane.b32.xlu0 %v4171_v15, %s4659_s24  ;;  %1606 = vrot.lane.b32.xlu1 %v4171_v15, %s4656_s8  ;;  %v4176_v15 = vld [vmem:[%s4733_s6 + $0xaa] sm:$0xff] }
 0x179   : > { %v986_v30 = vpop.permute.xlu0 %985  ;;  %v988_v2 = vpop.permute.xlu1 %987 }
 0x17a   : > { %1064 = vst.msk [vmem:[#allocation3 + $0x90] sm:$0xff] %vm1045_vm5, %v986_v30  ;;  %1065 = vst.msk [vmem:[#allocation3 + $0x98] sm:$0xff] %vm1045_vm5, %v988_v2  ;;  %v4177_v30 = vld [vmem:[%s4733_s6 + $0xb2] sm:$0xff] }
 0x17b   : > { %1797 = vrot.lane.b32.xlu0 %v4852_v27, %s4657_s9  ;;  %1799 = vrot.lane.b32.xlu1 %v4855_v28, %s4657_s9  ;;  %v5556_v28 = vld [vmem:[%s4733_s6 + $0x108] sm:$0xff] }
 0x17c   : > { %1324 = vst.msk [vmem:[#allocation3 + $0x1a0] sm:$0xff] %vm272_vm1, %v5556_v28 }
 0x17d   : > { %v990_v43 = vpop.permute.xlu0 %989  ;;  %v992_v47 = vpop.permute.xlu1 %991 }
 0x17e   : > { %1066 = vst.msk [vmem:[#allocation3 + $0xa0] sm:$0xff] %vm1045_vm5, %v990_v43  ;;  %1067 = vst.msk [vmem:[#allocation3 + $0xa8] sm:$0xff] %vm1045_vm5, %v992_v47  ;;  %v5659_v43 = vld [vmem:[%s4733_s6 + $0x140] sm:$0xff] }
 0x17f   : > { %1989 = vrot.lane.b32.xlu0 %v4140_v4, %s4658_s10  ;;  %1416 = vrot.lane.b32.xlu1 %v4140_v4, %s4655_s7  ;;  %1329 = vst.msk [vmem:[#allocation3 + $0x1c8] sm:$0xff] %vm272_vm1, %v5659_v43 }
 0x181   : > { %v994_v52 = vpop.permute.xlu0 %993  ;;  %v996_v27 = vpop.permute.xlu1 %995 }
 0x182   : > { %1068 = vst.msk [vmem:[#allocation3 + $0xb0] sm:$0xff] %vm1045_vm5, %v994_v52  ;;  %1069 = vst.msk [vmem:[#allocation3 + $0xb8] sm:$0xff] %vm1045_vm5, %v996_v27  ;;  %v4146_v27 = vld [vmem:[%s4733_s6 + $0xc1] sm:$0xff] }
 0x183   : > { %1991 = vrot.lane.b32.xlu0 %v4141_v48, %s4658_s10  ;;  %2181 = vrot.lane.b32.xlu1 %v4172_v51, %s4659_s24 }
 0x185   : > { %v998_v0 = vpop.permute.xlu0 %997  ;;  %v1000_v20 = vpop.permute.xlu1 %999 }
 0x186   : > { %1070 = vst.msk [vmem:[#allocation3 + $0xc0] sm:$0xff] %vm1045_vm5, %v998_v0  ;;  %1071 = vst.msk [vmem:[#allocation3 + $0xc8] sm:$0xff] %vm1045_vm5, %v1000_v20 }
 0x187   : > { %1418 = vrot.lane.b32.xlu0 %v4141_v48, %s4655_s7  ;;  %1608 = vrot.lane.b32.xlu1 %v4172_v51, %s4656_s8 }
 0x189   : > { %v1002_v56 = vpop.permute.xlu0 %1001  ;;  %v1004_v59 = vpop.permute.xlu1 %1003 }
 0x18a   : > { %1072 = vst.msk [vmem:[#allocation3 + $0xd0] sm:$0xff] %vm1045_vm5, %v1002_v56  ;;  %1073 = vst.msk [vmem:[#allocation3 + $0xd8] sm:$0xff] %vm1045_vm5, %v1004_v59 }
 0x18b   : > { %2183 = vrot.lane.b32.xlu0 %v4173_v55, %s4659_s24  ;;  %1610 = vrot.lane.b32.xlu1 %v4173_v55, %s4656_s8 }
 0x18d   : > { %v1006_v61 = vpop.permute.xlu0 %1005  ;;  %v1008_v17 = vpop.permute.xlu1 %1007 }
 0x18e   : > { %1074 = vst.msk [vmem:[#allocation3 + $0xe0] sm:$0xff] %vm1045_vm5, %v1006_v61  ;;  %1075 = vst.msk [vmem:[#allocation3 + $0xe8] sm:$0xff] %vm1045_vm5, %v1008_v17  ;;  %v5691_v17 = vld [vmem:[%s4733_s6 + $0x150] sm:$0xff] }
 0x18f   : > { %1801 = vrot.lane.b32.xlu0 %v4858_v29, %s4657_s9  ;;  %1803 = vrot.lane.b32.xlu1 %v4873_v32, %s4657_s9  ;;  %1330 = vst.msk [vmem:[#allocation3 + $0x1d0] sm:$0xff] %vm272_vm1, %v5691_v17 }
 0x191   : > { %v1010_v34 = vpop.permute.xlu0 %1009  ;;  %v1012_v35 = vpop.permute.xlu1 %1011 }
 0x192   : > { %1076 = vst.msk [vmem:[#allocation3 + $0xf0] sm:$0xff] %vm1045_vm5, %v1010_v34  ;;  %1077 = vst.msk [vmem:[#allocation3 + $0xf8] sm:$0xff] %vm1045_vm5, %v1012_v35 }
 0x193   : > { %1993 = vrot.lane.b32.xlu0 %v4142_v33, %s4658_s10  ;;  %1420 = vrot.lane.b32.xlu1 %v4142_v33, %s4655_s7  ;;  %v4179_v33 = vld [vmem:[%s4733_s6 + $0xca] sm:$0xff] }
 0x195   : > { %v1143_v29 = vpop.permute.xlu0 %1142  ;;  %v1145_v39 = vpop.permute.xlu1 %1144 }
 0x196   : > { %1239 = vst.msk [vmem:[#allocation3] sm:$0xff] %vm1238_vm6, %v1143_v29  ;;  %1240 = vst.msk [vmem:[#allocation3 + $0x8] sm:$0xff] %vm1238_vm6, %v1145_v39 }
 0x197   : > { %1995 = vrot.lane.b32.xlu0 %v4143_v36, %s4658_s10  ;;  %2185 = vrot.lane.b32.xlu1 %v4174_v38, %s4659_s24 }
 0x199   : > { %v1147_v32 = vpop.permute.xlu0 %1146  ;;  %v1149_v40 = vpop.permute.xlu1 %1148 }
 0x19a   : > { %1241 = vst.msk [vmem:[#allocation3 + $0x10] sm:$0xff] %vm1238_vm6, %v1147_v32  ;;  %1242 = vst.msk [vmem:[#allocation3 + $0x18] sm:$0xff] %vm1238_vm6, %v1149_v40 }
 0x19b   : > { %1422 = vrot.lane.b32.xlu0 %v4143_v36, %s4655_s7  ;;  %1612 = vrot.lane.b32.xlu1 %v4174_v38, %s4656_s8  ;;  %v5701_v36 = vld [vmem:[%s4733_s6 + $0x158] sm:$0xff] }
 0x19c   : > { %1331 = vst.msk [vmem:[#allocation3 + $0x1d8] sm:$0xff] %vm272_vm1, %v5701_v36 }
 0x19d   : > { %v1151_v42 = vpop.permute.xlu0 %1150  ;;  %v1153_v45 = vpop.permute.xlu1 %1152  ;;  %v2299_v46 = vld [vmem:[#allocation3] sm:$0xff]  ;;  %v2300_v50 = vld [vmem:[#allocation3 + $0x8] sm:$0xff] }
 0x19e   : > { %1243 = vst.msk [vmem:[#allocation3 + $0x20] sm:$0xff] %vm1238_vm6, %v1151_v42  ;;  %1244 = vst.msk [vmem:[#allocation3 + $0x28] sm:$0xff] %vm1238_vm6, %v1153_v45  ;;  %4453 = vmatprep.mubr.msk.f32.mxu0 %vm2334_vm7, %v2299_v46 }
 0x19f   : > { %2187 = vrot.lane.b32.xlu0 %v4175_v41, %s4659_s24  ;;  %4454 = vmatmul.mubr.msk.f32.vlgmr.msra.gmra.mrb[0].mxu0 %vm2334_vm7, %v2300_v50 }
 0x1a0   : > { %1162 = vrot.lane.b32.xlu1 %v4174_v38, %s4659_s24 }
 0x1a1   : > { %v1155_v18 = vpop.permute.xlu0 %1154  ;;  %v1157_v53 = vpop.permute.xlu1 %1156  ;;  %v2301_v57 = vld [vmem:[#allocation3 + $0x10] sm:$0xff]  ;;  %v2302_v58 = vld [vmem:[#allocation3 + $0x18] sm:$0xff] }
 0x1a2   : > { %1245 = vst.msk [vmem:[#allocation3 + $0x30] sm:$0xff] %vm1238_vm6, %v1155_v18  ;;  %1246 = vst.msk [vmem:[#allocation3 + $0x38] sm:$0xff] %vm1238_vm6, %v1157_v53  ;;  %4456 = vmatprep.mubr.msk.f32.mxu0 %vm2334_vm7, %v2301_v57  ;;  %v4180_v53 = vld [vmem:[%s4733_s6 + $0xda] sm:$0xff] }
 0x1a3   : > { %1614 = vrot.lane.b32.xlu0 %v4175_v41, %s4656_s8  ;;  %4457 = vmatmul.mubr.msk.f32.gmra.mrb[2].mxu0 %vm2334_vm7, %v2302_v58  ;;  %v5733_v58 = vld [vmem:[%s4733_s6 + $0x168] sm:$0xff] }
 0x1a4   : > { %1805 = vrot.lane.b32.xlu1 %v5353_v49, %s4657_s9  ;;  %1332 = vst.msk [vmem:[#allocation3 + $0x1e0] sm:$0xff] %vm272_vm1, %v5733_v58 }
 0x1a5   : > { %v1159_v62 = vpop.permute.xlu0 %1158  ;;  %v1161_v63 = vpop.permute.xlu1 %1160  ;;  %v2303_v1 = vld [vmem:[#allocation3 + $0x20] sm:$0xff]  ;;  %v2304_v13 = vld [vmem:[#allocation3 + $0x28] sm:$0xff] }
 0x1a6   : > { %1247 = vst.msk [vmem:[#allocation3 + $0x40] sm:$0xff] %vm1238_vm6, %v1159_v62  ;;  %1248 = vst.msk [vmem:[#allocation3 + $0x48] sm:$0xff] %vm1238_vm6, %v1161_v63  ;;  %4459 = vmatprep.mubr.msk.f32.mxu0 %vm2334_vm7, %v2303_v1  ;;  %v4181_v62 = vld [vmem:[%s4733_s6 + $0xe2] sm:$0xff] }
 0x1a7   : > { %1164 = vrot.lane.b32.xlu0 %v4175_v41, %s4659_s24  ;;  %4460 = vmatmul.mubr.msk.f32.gmra.mrb[4].mxu0 %vm2334_vm7, %v2304_v13  ;;  %v4148_v41 = vld [vmem:[%s4733_s6 + $0xd9] sm:$0xff]  ;;  %v5743_v13 = vld [vmem:[%s4733_s6 + $0x170] sm:$0xff] }
 0x1a8   : > { %1807 = vrot.lane.b32.xlu1 %v5364_v54, %s4657_s9  ;;  %1333 = vst.msk [vmem:[#allocation3 + $0x1e8] sm:$0xff] %vm272_vm1, %v5743_v13 }
 0x1a9   : > { %v1401_v49 = vpop.permute.xlu0 %1400  ;;  %v1403_v7 = vpop.permute.xlu1 %1402  ;;  %v2305_v25 = vld [vmem:[#allocation3 + $0x30] sm:$0xff]  ;;  %v2306_v26 = vld [vmem:[#allocation3 + $0x38] sm:$0xff] }
 0x1aa   : > { %1496 = vst.msk [vmem:[#allocation3 + $0x100] sm:$0xff] %vm465_vm2, %v1401_v49  ;;  %1497 = vst.msk [vmem:[#allocation3 + $0x108] sm:$0xff] %vm465_vm2, %v1403_v7  ;;  %4462 = vmatprep.mubr.msk.f32.mxu0 %vm2334_vm7, %v2305_v25 }
 0x1ab   : > { %1997 = vrot.lane.b32.xlu0 %v4144_v5, %s4658_s10  ;;  %4463 = vmatmul.mubr.msk.f32.gmra.mrb[6].mxu0 %vm2334_vm7, %v2306_v26 }
 0x1ac   : > { %1424 = vrot.lane.b32.xlu1 %v4144_v5, %s4655_s7 }
 0x1ad   : > { %v1593_v54 = vpop.permute.xlu0 %1592  ;;  %v1595_v10 = vpop.permute.xlu1 %1594  ;;  %v2307_v11 = vld [vmem:[#allocation3 + $0x40] sm:$0xff]  ;;  %v2308_v12 = vld [vmem:[#allocation3 + $0x48] sm:$0xff] }
 0x1ae   : > { %1688 = vst.msk [vmem:[#allocation3 + $0x100] sm:$0xff] %vm658_vm3, %v1593_v54  ;;  %1689 = vst.msk [vmem:[#allocation3 + $0x108] sm:$0xff] %vm658_vm3, %v1595_v10  ;;  %4465 = vmatprep.mubr.msk.f32.mxu0 %vm2334_vm7, %v2307_v11 }
 0x1af   : > { %1999 = vrot.lane.b32.xlu0 %v4145_v8, %s4658_s10  ;;  %4466 = vmatmul.mubr.msk.f32.gmra.mrb[8].mxu0 %vm2334_vm7, %v2308_v12 }
 0x1b0   : > { %2189 = vrot.lane.b32.xlu1 %v4176_v15, %s4659_s24 }
 0x1b1   : > { %v1786_v16 = vpop.permute.xlu0 %1785  ;;  %v1788_v19 = vpop.permute.xlu1 %1787 }
 0x1b2   : > { %1881 = vst.msk [vmem:[#allocation3 + $0x100] sm:$0xff] %vm852_vm4, %v1786_v16  ;;  %1882 = vst.msk [vmem:[#allocation3 + $0x108] sm:$0xff] %vm852_vm4, %v1788_v19 }
 0x1b3   : > { %1426 = vrot.lane.b32.xlu0 %v4145_v8, %s4655_s7  ;;  %v4150_v8 = vld [vmem:[%s4733_s6 + $0xf1] sm:$0xff] }
 0x1b4   : > { %1616 = vrot.lane.b32.xlu1 %v4176_v15, %s4656_s8 }
 0x1b5   : > { %v1978_v2 = vpop.permute.xlu0 %1977  ;;  %v1405_v4 = vpop.permute.xlu1 %1404 }
 0x1b6   : > { %2073 = vst.msk [vmem:[#allocation3 + $0x100] sm:$0xff] %vm1045_vm5, %v1978_v2  ;;  %v4183_v2 = vld [vmem:[%s4733_s6 + $0xfa] sm:$0xff] }
 0x1b7   : > { %1498 = vst.msk [vmem:[#allocation3 + $0x110] sm:$0xff] %vm465_vm2, %v1405_v4  ;;  %2191 = vrot.lane.b32.xlu0 %v4177_v30, %s4659_s24 }
 0x1b8   : > { %1166 = vrot.lane.b32.xlu1 %v4176_v15, %s4659_s24 }
 0x1b9   : > { %v1980_v47 = vpop.permute.xlu0 %1979  ;;  %v2170_v48 = vpop.permute.xlu1 %2169 }
 0x1ba   : > { %2074 = vst.msk [vmem:[#allocation3 + $0x108] sm:$0xff] %vm1045_vm5, %v1980_v47 }
 0x1bb   : > { %2265 = vst.msk [vmem:[#allocation3 + $0x100] sm:$0xff] %vm1238_vm6, %v2170_v48  ;;  %1618 = vrot.lane.b32.xlu0 %v4177_v30, %s4656_s8 }
 0x1bc   : > { %1809 = vrot.lane.b32.xlu1 %v5405_v31, %s4657_s9  ;;  %v4147_v31 = vld [vmem:[%s4733_s6 + $0xc9] sm:$0xff] }
 0x1bd   : > { %v1407_v51 = vpop.permute.xlu0 %1406  ;;  %v1597_v52 = vpop.permute.xlu1 %1596 }
 0x1be   : > { %1499 = vst.msk [vmem:[#allocation3 + $0x118] sm:$0xff] %vm465_vm2, %v1407_v51  ;;  %v5786_v51 = vld [vmem:[%s4733_s6 + $0x188] sm:$0xff] }
 0x1bf   : > { %1690 = vst.msk [vmem:[#allocation3 + $0x110] sm:$0xff] %vm658_vm3, %v1597_v52  ;;  %1168 = vrot.lane.b32.xlu0 %v4177_v30, %s4659_s24  ;;  %v5775_v30 = vld [vmem:[%s4733_s6 + $0x180] sm:$0xff] }
 0x1c0   : > { %1811 = vrot.lane.b32.xlu1 %v5418_v44, %s4657_s9  ;;  %v4178_v44 = vld [vmem:[%s4733_s6 + $0xc2] sm:$0xff]  ;;  %1334 = vst.msk [vmem:[#allocation3 + $0x1f0] sm:$0xff] %vm272_vm1, %v5775_v30  ;;  %1335 = vst.msk [vmem:[#allocation3 + $0x1f8] sm:$0xff] %vm272_vm1, %v5786_v51 }
 0x1c1   : > { %v2172_v0 = vpop.permute.xlu0 %2171  ;;  %v1599_v20 = vpop.permute.xlu1 %1598 }
 0x1c2   : > { %v2864_v21 = vld [vmem:[#allocation3 + $0x100] sm:$0xff]  ;;  %2266 = vst.msk [vmem:[#allocation3 + $0x108] sm:$0xff] %vm1238_vm6, %v2172_v0 }
 0x1c3   : > { %1691 = vst.msk [vmem:[#allocation3 + $0x118] sm:$0xff] %vm658_vm3, %v1599_v20  ;;  %4507 = vmatprep.mubr.msk.f32.mxu1 %vm2334_vm7, %v2864_v21  ;;  %2001 = vrot.lane.b32.xlu0 %v4146_v27, %s4658_s10 }
 0x1c4   : > { %1428 = vrot.lane.b32.xlu1 %v4146_v27, %s4655_s7 }
 0x1c5   : > { %v1790_v55 = vpop.permute.xlu0 %1789  ;;  %v1792_v56 = vpop.permute.xlu1 %1791 }
 0x1c6   : > { %1883 = vst.msk [vmem:[#allocation3 + $0x110] sm:$0xff] %vm852_vm4, %v1790_v55  ;;  %1884 = vst.msk [vmem:[#allocation3 + $0x118] sm:$0xff] %vm852_vm4, %v1792_v56 }
 0x1c7   : > { %2003 = vrot.lane.b32.xlu0 %v4147_v31, %s4658_s10 }
 0x1c8   : > { %2193 = vrot.lane.b32.xlu1 %v4178_v44, %s4659_s24 }
 0x1c9   : > { %v1982_v59 = vpop.permute.xlu0 %1981  ;;  %v1409_v60 = vpop.permute.xlu1 %1408  ;;  %v2865_v61 = vld [vmem:[#allocation3 + $0x108] sm:$0xff] }
 0x1ca   : > { %2075 = vst.msk [vmem:[#allocation3 + $0x110] sm:$0xff] %vm1045_vm5, %v1982_v59  ;;  %4508 = vmatmul.mubr.msk.f32.vlgmr.msra.gmra.mrb[0].mxu1 %vm2334_vm7, %v2865_v61 }
 0x1cb   : > { %1500 = vst.msk [vmem:[#allocation3 + $0x120] sm:$0xff] %vm465_vm2, %v1409_v60  ;;  %1430 = vrot.lane.b32.xlu0 %v4147_v31, %s4655_s7  ;;  %v4152_v31 = vld [vmem:[%s4733_s6 + $0x109] sm:$0xff] }
 0x1cc   : > { %1620 = vrot.lane.b32.xlu1 %v4178_v44, %s4656_s8  ;;  %v4184_v60 = vld [vmem:[%s4733_s6 + $0x10a] sm:$0xff] }
 0x1cd   : > { %v1984_v34 = vpop.permute.xlu0 %1983  ;;  %v2174_v35 = vpop.permute.xlu1 %2173 }
 0x1ce   : > { %2076 = vst.msk [vmem:[#allocation3 + $0x118] sm:$0xff] %vm1045_vm5, %v1984_v34  ;;  %v4185_v34 = vld [vmem:[%s4733_s6 + $0x112] sm:$0xff] }
 0x1cf   : > { %2267 = vst.msk [vmem:[#allocation3 + $0x110] sm:$0xff] %vm1238_vm6, %v2174_v35  ;;  %2195 = vrot.lane.b32.xlu0 %v4179_v33, %s4659_s24 }
 0x1d0   : > { %1170 = vrot.lane.b32.xlu1 %v4178_v44, %s4659_s24 }
 0x1d1   : > { %v1411_v38 = vpop.permute.xlu0 %1410  ;;  %v1601_v29 = vpop.permute.xlu1 %1600 }
 0x1d2   : > { %1501 = vst.msk [vmem:[#allocation3 + $0x128] sm:$0xff] %vm465_vm2, %v1411_v38 }
 0x1d3   : > { %1692 = vst.msk [vmem:[#allocation3 + $0x120] sm:$0xff] %vm658_vm3, %v1601_v29  ;;  %1622 = vrot.lane.b32.xlu0 %v4179_v33, %s4656_s8 }
 0x1d4   : > { %1813 = vrot.lane.b32.xlu1 %v5464_v37, %s4657_s9  ;;  %v4149_v37 = vld [vmem:[%s4733_s6 + $0xe1] sm:$0xff] }
 0x1d5   : > { %v2176_v39 = vpop.permute.xlu0 %2175  ;;  %v1603_v32 = vpop.permute.xlu1 %1602 }
 0x1d6   : > { %v2866_v40 = vld [vmem:[#allocation3 + $0x110] sm:$0xff]  ;;  %2268 = vst.msk [vmem:[#allocation3 + $0x118] sm:$0xff] %vm1238_vm6, %v2176_v39 }
 0x1d7   : > { %1693 = vst.msk [vmem:[#allocation3 + $0x128] sm:$0xff] %vm658_vm3, %v1603_v32  ;;  %4510 = vmatprep.mubr.msk.f32.mxu1 %vm2334_vm7, %v2866_v40  ;;  %1172 = vrot.lane.b32.xlu0 %v4179_v33, %s4659_s24 }
 0x1d8   : > { %1815 = vrot.lane.b32.xlu1 %v5474_v23, %s4657_s9 }
 0x1d9   : > { %v1794_v42 = vpop.permute.xlu0 %1793  ;;  %v1796_v45 = vpop.permute.xlu1 %1795 }
 0x1da   : > { %1885 = vst.msk [vmem:[#allocation3 + $0x120] sm:$0xff] %vm852_vm4, %v1794_v42  ;;  %1886 = vst.msk [vmem:[#allocation3 + $0x128] sm:$0xff] %vm852_vm4, %v1796_v45  ;;  %v4154_v45 = vld [vmem:[%s4733_s6 + $0x121] sm:$0xff] }
 0x1db   : > { %2005 = vrot.lane.b32.xlu0 %v4148_v41, %s4658_s10 }
 0x1dc   : > { %1432 = vrot.lane.b32.xlu1 %v4148_v41, %s4655_s7 }
 0x1dd   : > { %v1986_v46 = vpop.permute.xlu0 %1985  ;;  %v1413_v50 = vpop.permute.xlu1 %1412  ;;  %v2867_v18 = vld [vmem:[#allocation3 + $0x118] sm:$0xff] }
 0x1de   : > { %2077 = vst.msk [vmem:[#allocation3 + $0x120] sm:$0xff] %vm1045_vm5, %v1986_v46  ;;  %4511 = vmatmul.mubr.msk.f32.gmra.mrb[2].mxu1 %vm2334_vm7, %v2867_v18 }
 0x1df   : > { %1502 = vst.msk [vmem:[#allocation3 + $0x130] sm:$0xff] %vm465_vm2, %v1413_v50  ;;  %2007 = vrot.lane.b32.xlu0 %v4149_v37, %s4658_s10 }
 0x1e0   : > { %2197 = vrot.lane.b32.xlu1 %v4180_v53, %s4659_s24 }
 0x1e1   : > { %v1988_v23 = vpop.permute.xlu0 %1987  ;;  %v2178_v57 = vpop.permute.xlu1 %2177 }
 0x1e2   : > { %2078 = vst.msk [vmem:[#allocation3 + $0x128] sm:$0xff] %vm1045_vm5, %v1988_v23 }
 0x1e3   : > { %2269 = vst.msk [vmem:[#allocation3 + $0x120] sm:$0xff] %vm1238_vm6, %v2178_v57  ;;  %1434 = vrot.lane.b32.xlu0 %v4149_v37, %s4655_s7 }
 0x1e4   : > { %1624 = vrot.lane.b32.xlu1 %v4180_v53, %s4656_s8 }
 0x1e5   : > { %v1415_v63 = vpop.permute.xlu0 %1414  ;;  %v1605_v1 = vpop.permute.xlu1 %1604 }
 0x1e6   : > { %1503 = vst.msk [vmem:[#allocation3 + $0x138] sm:$0xff] %vm465_vm2, %v1415_v63  ;;  %v4187_v63 = vld [vmem:[%s4733_s6 + $0x12a] sm:$0xff] }
 0x1e7   : > { %1694 = vst.msk [vmem:[#allocation3 + $0x130] sm:$0xff] %vm658_vm3, %v1605_v1  ;;  %2199 = vrot.lane.b32.xlu0 %v4181_v62, %s4659_s24 }
 0x1e8   : > { %1174 = vrot.lane.b32.xlu1 %v4180_v53, %s4659_s24  ;;  %v4186_v53 = vld [vmem:[%s4733_s6 + $0x122] sm:$0xff] }
 0x1e9   : > { %v2180_v5 = vpop.permute.xlu0 %2179  ;;  %v1607_v49 = vpop.permute.xlu1 %1606 }
 0x1ea   : > { %v2868_v7 = vld [vmem:[#allocation3 + $0x120] sm:$0xff]  ;;  %2270 = vst.msk [vmem:[#allocation3 + $0x128] sm:$0xff] %vm1238_vm6, %v2180_v5 }
 0x1eb   : > { %1695 = vst.msk [vmem:[#allocation3 + $0x138] sm:$0xff] %vm658_vm3, %v1607_v49  ;;  %4513 = vmatprep.mubr.msk.f32.mxu1 %vm2334_vm7, %v2868_v7  ;;  %1626 = vrot.lane.b32.xlu0 %v4181_v62, %s4656_s8 }
 0x1ec   : > { %1817 = vrot.lane.b32.xlu1 %v5510_v6, %s4657_s9  ;;  %v4151_v6 = vld [vmem:[%s4733_s6 + $0xf9] sm:$0xff] }
 0x1ed   : > { %v1798_v25 = vpop.permute.xlu0 %1797  ;;  %v1800_v26 = vpop.permute.xlu1 %1799 }
 0x1ee   : > { %1887 = vst.msk [vmem:[#allocation3 + $0x130] sm:$0xff] %vm852_vm4, %v1798_v25  ;;  %1888 = vst.msk [vmem:[#allocation3 + $0x138] sm:$0xff] %vm852_vm4, %v1800_v26 }
 0x1ef   : > { %1176 = vrot.lane.b32.xlu0 %v4181_v62, %s4659_s24 }
 0x1f0   : > { %1819 = vrot.lane.b32.xlu1 %v5521_v9, %s4657_s9  ;;  %v4182_v9 = vld [vmem:[%s4733_s6 + $0xf2] sm:$0xff] }
 0x1f1   : > { %v1990_v54 = vpop.permute.xlu0 %1989  ;;  %v1417_v10 = vpop.permute.xlu1 %1416  ;;  %v2869_v11 = vld [vmem:[#allocation3 + $0x128] sm:$0xff] }
 0x1f2   : > { %2079 = vst.msk [vmem:[#allocation3 + $0x130] sm:$0xff] %vm1045_vm5, %v1990_v54  ;;  %4514 = vmatmul.mubr.msk.f32.gmra.mrb[4].mxu1 %vm2334_vm7, %v2869_v11 }
 0x1f3   : > { %1504 = vst.msk [vmem:[#allocation3 + $0x140] sm:$0xff] %vm465_vm2, %v1417_v10  ;;  %2009 = vrot.lane.b32.xlu0 %v4150_v8, %s4658_s10  ;;  %v4156_v10 = vld [vmem:[%s4733_s6 + $0x139] sm:$0xff] }
 0x1f4   : > { %1436 = vrot.lane.b32.xlu1 %v4150_v8, %s4655_s7 }
 0x1f5   : > { %v1992_v12 = vpop.permute.xlu0 %1991  ;;  %v2182_v15 = vpop.permute.xlu1 %2181 }
 0x1f6   : > { %2080 = vst.msk [vmem:[#allocation3 + $0x138] sm:$0xff] %vm1045_vm5, %v1992_v12 }
 0x1f7   : > { %2271 = vst.msk [vmem:[#allocation3 + $0x130] sm:$0xff] %vm1238_vm6, %v2182_v15  ;;  %2011 = vrot.lane.b32.xlu0 %v4151_v6, %s4658_s10 }
 0x1f8   : > { %2201 = vrot.lane.b32.xlu1 %v4182_v9, %s4659_s24 }
 0x1f9   : > { %v1419_v16 = vpop.permute.xlu0 %1418  ;;  %v1609_v19 = vpop.permute.xlu1 %1608 }
 0x1fa   : > { %1505 = vst.msk [vmem:[#allocation3 + $0x148] sm:$0xff] %vm465_vm2, %v1419_v16 }
 0x1fb   : > { %1696 = vst.msk [vmem:[#allocation3 + $0x140] sm:$0xff] %vm658_vm3, %v1609_v19  ;;  %1438 = vrot.lane.b32.xlu0 %v4151_v6, %s4655_s7 }
 0x1fc   : > { %1628 = vrot.lane.b32.xlu1 %v4182_v9, %s4656_s8 }
 0x1fd   : > { %v2184_v4 = vpop.permute.xlu0 %2183  ;;  %v1611_v47 = vpop.permute.xlu1 %1610 }
 0x1fe   : > { %v2870_v48 = vld [vmem:[#allocation3 + $0x130] sm:$0xff]  ;;  %2272 = vst.msk [vmem:[#allocation3 + $0x138] sm:$0xff] %vm1238_vm6, %v2184_v4  ;;  %v4189_v4 = vld [vmem:[%s4733_s6 + $0x142] sm:$0xff] }
 0x1ff   : > { %1697 = vst.msk [vmem:[#allocation3 + $0x148] sm:$0xff] %vm658_vm3, %v1611_v47  ;;  %4516 = vmatprep.mubr.msk.f32.mxu1 %vm2334_vm7, %v2870_v48  ;;  %2203 = vrot.lane.b32.xlu0 %v4183_v2, %s4659_s24 }
 0x200   : > { %1178 = vrot.lane.b32.xlu1 %v4182_v9, %s4659_s24  ;;  %v4188_v9 = vld [vmem:[%s4733_s6 + $0x13a] sm:$0xff] }
 0x201   : > { %v1802_v52 = vpop.permute.xlu0 %1801  ;;  %v1804_v27 = vpop.permute.xlu1 %1803 }
 0x202   : > { %1889 = vst.msk [vmem:[#allocation3 + $0x140] sm:$0xff] %vm852_vm4, %v1802_v52  ;;  %1890 = vst.msk [vmem:[#allocation3 + $0x148] sm:$0xff] %vm852_vm4, %v1804_v27 }
 0x203   : > { %1630 = vrot.lane.b32.xlu0 %v4183_v2, %s4656_s8 }
 0x204   : > { %1821 = vrot.lane.b32.xlu1 %v5556_v28, %s4657_s9  ;;  %v4153_v28 = vld [vmem:[%s4733_s6 + $0x111] sm:$0xff] }
 0x205   : > { %v1994_v0 = vpop.permute.xlu0 %1993  ;;  %v1421_v20 = vpop.permute.xlu1 %1420  ;;  %v2871_v21 = vld [vmem:[#allocation3 + $0x138] sm:$0xff] }
 0x206   : > { %2081 = vst.msk [vmem:[#allocation3 + $0x140] sm:$0xff] %vm1045_vm5, %v1994_v0  ;;  %4517 = vmatmul.mubr.msk.f32.gmra.mrb[6].mxu1 %vm2334_vm7, %v2871_v21 }
 0x207   : > { %1506 = vst.msk [vmem:[#allocation3 + $0x150] sm:$0xff] %vm465_vm2, %v1421_v20  ;;  %1180 = vrot.lane.b32.xlu0 %v4183_v2, %s4659_s24 }
 0x208   : > { %1823 = vrot.lane.b32.xlu1 %v5567_v3, %s4657_s9 }
 0x209   : > { %v1996_v55 = vpop.permute.xlu0 %1995  ;;  %v2186_v56 = vpop.permute.xlu1 %2185 }
 0x20a   : > { %2082 = vst.msk [vmem:[#allocation3 + $0x148] sm:$0xff] %vm1045_vm5, %v1996_v55  ;;  %v4158_v55 = vld [vmem:[%s4733_s6 + $0x151] sm:$0xff] }
 0x20b   : > { %2273 = vst.msk [vmem:[#allocation3 + $0x140] sm:$0xff] %vm1238_vm6, %v2186_v56  ;;  %2013 = vrot.lane.b32.xlu0 %v4152_v31, %s4658_s10 }
 0x20c   : > { %1440 = vrot.lane.b32.xlu1 %v4152_v31, %s4655_s7 }
 0x20d   : > { %v1423_v44 = vpop.permute.xlu0 %1422  ;;  %v1613_v59 = vpop.permute.xlu1 %1612 }
 0x20e   : > { %1507 = vst.msk [vmem:[#allocation3 + $0x158] sm:$0xff] %vm465_vm2, %v1423_v44 }
 0x20f   : > { %1698 = vst.msk [vmem:[#allocation3 + $0x150] sm:$0xff] %vm658_vm3, %v1613_v59  ;;  %2015 = vrot.lane.b32.xlu0 %v4153_v28, %s4658_s10 }
 0x210   : > { %2205 = vrot.lane.b32.xlu1 %v4184_v60, %s4659_s24 }
 0x211   : > { %v2188_v3 = vpop.permute.xlu0 %2187 }
 0x212   : > { %v2872_v61 = vld [vmem:[#allocation3 + $0x140] sm:$0xff]  ;;  %2274 = vst.msk [vmem:[#allocation3 + $0x148] sm:$0xff] %vm1238_vm6, %v2188_v3  ;;  %v1163_v33 = vpop.permute.xlu1 %1162 }
 0x213   : > { %4519 = vmatprep.mubr.msk.f32.mxu1 %vm2334_vm7, %v2872_v61  ;;  %1249 = vst.msk [vmem:[#allocation3 + $0x50] sm:$0xff] %vm1238_vm6, %v1163_v33  ;;  %1442 = vrot.lane.b32.xlu0 %v4153_v28, %s4655_s7 }
 0x214   : > { %1632 = vrot.lane.b32.xlu1 %v4184_v60, %s4656_s8 }
 0x215   : > { %v1615_v35 = vpop.permute.xlu0 %1614 }
 0x216   : > { %1699 = vst.msk [vmem:[#allocation3 + $0x158] sm:$0xff] %vm658_vm3, %v1615_v35  ;;  %v1806_v38 = vpop.permute.xlu1 %1805 }
 0x217   : > { %1891 = vst.msk [vmem:[#allocation3 + $0x150] sm:$0xff] %vm852_vm4, %v1806_v38  ;;  %2207 = vrot.lane.b32.xlu0 %v4185_v34, %s4659_s24 }
 0x218   : > { %1182 = vrot.lane.b32.xlu1 %v4184_v60, %s4659_s24  ;;  %v4190_v60 = vld [vmem:[%s4733_s6 + $0x152] sm:$0xff] }
 0x219   : > { %v1165_v29 = vpop.permute.xlu0 %1164  ;;  %v2873_v39 = vld [vmem:[#allocation3 + $0x148] sm:$0xff] }
 0x21a   : > { %1250 = vst.msk [vmem:[#allocation3 + $0x58] sm:$0xff] %vm1238_vm6, %v1165_v29  ;;  %v1808_v32 = vpop.permute.xlu1 %1807  ;;  %4520 = vmatmul.mubr.msk.f32.gmra.mrb[8].mxu1 %vm2334_vm7, %v2873_v39  ;;  %v2309_v40 = vld [vmem:[#allocation3 + $0x50] sm:$0xff] }
 0x21b   : > { %1892 = vst.msk [vmem:[#allocation3 + $0x158] sm:$0xff] %vm852_vm4, %v1808_v32  ;;  %1634 = vrot.lane.b32.xlu0 %v4185_v34, %s4656_s8  ;;  %4468 = vmatprep.mubr.msk.f32.mxu0 %vm2334_vm7, %v2309_v40 }
 0x21c   : > { %1825 = vrot.lane.b32.xlu1 %v5600_v24, %s4657_s9  ;;  %v4155_v24 = vld [vmem:[%s4733_s6 + $0x129] sm:$0xff] }
 0x21d   : > { %v1998_v41 = vpop.permute.xlu0 %1997 }
 0x21e   : > { %2083 = vst.msk [vmem:[#allocation3 + $0x150] sm:$0xff] %vm1045_vm5, %v1998_v41  ;;  %v1425_v42 = vpop.permute.xlu1 %1424 }
 0x21f   : > { %1508 = vst.msk [vmem:[#allocation3 + $0x160] sm:$0xff] %vm465_vm2, %v1425_v42  ;;  %1184 = vrot.lane.b32.xlu0 %v4185_v34, %s4659_s24  ;;  %v4191_v34 = vld [vmem:[%s4733_s6 + $0x15a] sm:$0xff] }
 0x220   : > { %1827 = vrot.lane.b32.xlu1 %v5611_v14, %s4657_s9 }
 0x221   : > { %v2000_v37 = vpop.permute.xlu0 %1999  ;;  %v2310_v46 = vld [vmem:[#allocation3 + $0x58] sm:$0xff] }
 0x222   : > { %2084 = vst.msk [vmem:[#allocation3 + $0x158] sm:$0xff] %vm1045_vm5, %v2000_v37  ;;  %v2190_v50 = vpop.permute.xlu1 %2189  ;;  %4469 = vmatmul.mubr.msk.f32.gmra.mrb[10].mxu0 %vm2334_vm7, %v2310_v46 }
 0x223   : > { %2275 = vst.msk [vmem:[#allocation3 + $0x150] sm:$0xff] %vm1238_vm6, %v2190_v50  ;;  %2017 = vrot.lane.b32.xlu0 %v4154_v45, %s4658_s10  ;;  %v4161_v50 = vld [vmem:[%s4733_s6 + $0x171] sm:$0xff] }
 0x224   : > { %1444 = vrot.lane.b32.xlu1 %v4154_v45, %s4655_s7  ;;  %v4160_v45 = vld [vmem:[%s4733_s6 + $0x169] sm:$0xff] }
 0x225   : > { %v1427_v18 = vpop.permute.xlu0 %1426 }
 0x226   : > { %1509 = vst.msk [vmem:[#allocation3 + $0x168] sm:$0xff] %vm465_vm2, %v1427_v18  ;;  %v1617_v14 = vpop.permute.xlu1 %1616  ;;  %v4192_v18 = vld [vmem:[%s4733_s6 + $0x16a] sm:$0xff] }
 0x227   : > { %1700 = vst.msk [vmem:[#allocation3 + $0x160] sm:$0xff] %vm658_vm3, %v1617_v14  ;;  %2019 = vrot.lane.b32.xlu0 %v4155_v24, %s4658_s10 }
 0x228   : > { %2209 = vrot.lane.b32.xlu1 %v4186_v53, %s4659_s24 }
 0x229   : > { %v2192_v23 = vpop.permute.xlu0 %2191 }
 0x22a   : > { %2276 = vst.msk [vmem:[#allocation3 + $0x158] sm:$0xff] %vm1238_vm6, %v2192_v23  ;;  %v1167_v57 = vpop.permute.xlu1 %1166  ;;  %v2874_v62 = vld [vmem:[#allocation3 + $0x150] sm:$0xff] }
 0x22b   : > { %1251 = vst.msk [vmem:[#allocation3 + $0x60] sm:$0xff] %vm1238_vm6, %v1167_v57  ;;  %1446 = vrot.lane.b32.xlu0 %v4155_v24, %s4655_s7  ;;  %4522 = vmatprep.mubr.msk.f32.mxu1 %vm2334_vm7, %v2874_v62 }
 0x22c   : > { %1636 = vrot.lane.b32.xlu1 %v4186_v53, %s4656_s8 }
 0x22d   : > { %v1619_v1 = vpop.permute.xlu0 %1618 }
 0x22e   : > { %1701 = vst.msk [vmem:[#allocation3 + $0x168] sm:$0xff] %vm658_vm3, %v1619_v1  ;;  %v1810_v5 = vpop.permute.xlu1 %1809 }
 0x22f   : > { %1893 = vst.msk [vmem:[#allocation3 + $0x160] sm:$0xff] %vm852_vm4, %v1810_v5  ;;  %2211 = vrot.lane.b32.xlu0 %v4187_v63, %s4659_s24 }
 0x230   : > { %1186 = vrot.lane.b32.xlu1 %v4186_v53, %s4659_s24 }
 0x231   : > { %v1169_v49 = vpop.permute.xlu0 %1168  ;;  %v2875_v7 = vld [vmem:[#allocation3 + $0x158] sm:$0xff] }
 0x232   : > { %1252 = vst.msk [vmem:[#allocation3 + $0x68] sm:$0xff] %vm1238_vm6, %v1169_v49  ;;  %v1812_v25 = vpop.permute.xlu1 %1811  ;;  %4523 = vmatmul.mubr.msk.f32.gmra.mrb[10].mxu1 %vm2334_vm7, %v2875_v7  ;;  %v2311_v26 = vld [vmem:[#allocation3 + $0x60] sm:$0xff]  ;;  %v4193_v7 = vld [vmem:[%s4733_s6 + $0x172] sm:$0xff] }
 0x233   : > { %1894 = vst.msk [vmem:[#allocation3 + $0x168] sm:$0xff] %vm852_vm4, %v1812_v25  ;;  %1638 = vrot.lane.b32.xlu0 %v4187_v63, %s4656_s8  ;;  %4471 = vmatprep.mubr.msk.f32.mxu0 %vm2334_vm7, %v2311_v26 }
 0x234   : > { %1829 = vrot.lane.b32.xlu1 %v5649_v22, %s4657_s9  ;;  %v4157_v22 = vld [vmem:[%s4733_s6 + $0x141] sm:$0xff] }
 0x235   : > { %v2002_v8 = vpop.permute.xlu0 %2001 }
 0x236   : > { %2085 = vst.msk [vmem:[#allocation3 + $0x160] sm:$0xff] %vm1045_vm5, %v2002_v8  ;;  %v1429_v54 = vpop.permute.xlu1 %1428 }
 0x237   : > { %1510 = vst.msk [vmem:[#allocation3 + $0x170] sm:$0xff] %vm465_vm2, %v1429_v54  ;;  %1188 = vrot.lane.b32.xlu0 %v4187_v63, %s4659_s24 }
 0x238   : > { %1831 = vrot.lane.b32.xlu1 %v5659_v43, %s4657_s9 }
 0x239   : > { %v2004_v11 = vpop.permute.xlu0 %2003  ;;  %v2312_v6 = vld [vmem:[#allocation3 + $0x68] sm:$0xff] }
 0x23a   : > { %2086 = vst.msk [vmem:[#allocation3 + $0x168] sm:$0xff] %vm1045_vm5, %v2004_v11  ;;  %v2194_v12 = vpop.permute.xlu1 %2193  ;;  %4472 = vmatmul.mubr.msk.f32.gmra.mrb[12].mxu0 %vm2334_vm7, %v2312_v6 }
 0x23b   : > { %2277 = vst.msk [vmem:[#allocation3 + $0x160] sm:$0xff] %vm1238_vm6, %v2194_v12  ;;  %2021 = vrot.lane.b32.xlu0 %v4156_v10, %s4658_s10 }
 0x23c   : > { %1448 = vrot.lane.b32.xlu1 %v4156_v10, %s4655_s7 }
 0x23d   : > { %v1431_v15 = vpop.permute.xlu0 %1430 }
 0x23e   : > { %1511 = vst.msk [vmem:[#allocation3 + $0x178] sm:$0xff] %vm465_vm2, %v1431_v15  ;;  %v1621_v43 = vpop.permute.xlu1 %1620 }
 0x23f   : > { %1702 = vst.msk [vmem:[#allocation3 + $0x170] sm:$0xff] %vm658_vm3, %v1621_v43  ;;  %2023 = vrot.lane.b32.xlu0 %v4157_v22, %s4658_s10 }
 0x240   : > { %2213 = vrot.lane.b32.xlu1 %v4188_v9, %s4659_s24 }
 0x241   : > { %v2196_v16 = vpop.permute.xlu0 %2195 }
 0x242   : > { %2278 = vst.msk [vmem:[#allocation3 + $0x168] sm:$0xff] %vm1238_vm6, %v2196_v16  ;;  %v1171_v19 = vpop.permute.xlu1 %1170  ;;  %v2876_v2 = vld [vmem:[#allocation3 + $0x160] sm:$0xff] }
 0x243   : > { %1253 = vst.msk [vmem:[#allocation3 + $0x70] sm:$0xff] %vm1238_vm6, %v1171_v19  ;;  %1450 = vrot.lane.b32.xlu0 %v4157_v22, %s4655_s7  ;;  %4525 = vmatprep.mubr.msk.f32.mxu1 %vm2334_vm7, %v2876_v2 }
 0x244   : > { %1640 = vrot.lane.b32.xlu1 %v4188_v9, %s4656_s8 }
 0x245   : > { %v1623_v47 = vpop.permute.xlu0 %1622 }
 0x246   : > { %1703 = vst.msk [vmem:[#allocation3 + $0x178] sm:$0xff] %vm658_vm3, %v1623_v47  ;;  %v1814_v48 = vpop.permute.xlu1 %1813 }
 0x247   : > { %1895 = vst.msk [vmem:[#allocation3 + $0x170] sm:$0xff] %vm852_vm4, %v1814_v48  ;;  %2215 = vrot.lane.b32.xlu0 %v4189_v4, %s4659_s24 }
 0x248   : > { %1190 = vrot.lane.b32.xlu1 %v4188_v9, %s4659_s24 }
 0x249   : > { %v1173_v52 = vpop.permute.xlu0 %1172  ;;  %v2877_v27 = vld [vmem:[#allocation3 + $0x168] sm:$0xff] }
 0x24a   : > { %1254 = vst.msk [vmem:[#allocation3 + $0x78] sm:$0xff] %vm1238_vm6, %v1173_v52  ;;  %v1816_v0 = vpop.permute.xlu1 %1815  ;;  %4526 = vmatmul.mubr.msk.f32.gmra.mrb[12].mxu1 %vm2334_vm7, %v2877_v27  ;;  %v2313_v20 = vld [vmem:[#allocation3 + $0x70] sm:$0xff] }
 0x24b   : > { %1896 = vst.msk [vmem:[#allocation3 + $0x178] sm:$0xff] %vm852_vm4, %v1816_v0  ;;  %1642 = vrot.lane.b32.xlu0 %v4189_v4, %s4656_s8  ;;  %4474 = vmatprep.mubr.msk.f32.mxu0 %vm2334_vm7, %v2313_v20 }
 0x24c   : > { %1833 = vrot.lane.b32.xlu1 %v5691_v17, %s4657_s9  ;;  %v4159_v17 = vld [vmem:[%s4733_s6 + $0x159] sm:$0xff] }
 0x24d   : > { %v2006_v21 = vpop.permute.xlu0 %2005 }
 0x24e   : > { %2087 = vst.msk [vmem:[#allocation3 + $0x170] sm:$0xff] %vm1045_vm5, %v2006_v21  ;;  %v1433_v31 = vpop.permute.xlu1 %1432 }
 0x24f   : > { %1512 = vst.msk [vmem:[#allocation3 + $0x180] sm:$0xff] %vm465_vm2, %v1433_v31  ;;  %1192 = vrot.lane.b32.xlu0 %v4189_v4, %s4659_s24 }
 0x250   : > { %1835 = vrot.lane.b32.xlu1 %v5701_v36, %s4657_s9 }
 0x251   : > { %v2008_v56 = vpop.permute.xlu0 %2007  ;;  %v2314_v28 = vld [vmem:[#allocation3 + $0x78] sm:$0xff] }
 0x252   : > { %2088 = vst.msk [vmem:[#allocation3 + $0x178] sm:$0xff] %vm1045_vm5, %v2008_v56  ;;  %v2198_v44 = vpop.permute.xlu1 %2197  ;;  %4475 = vmatmul.mubr.msk.f32.gmra.mrb[14].mxu0 %vm2334_vm7, %v2314_v28 }
 0x253   : > { %2279 = vst.msk [vmem:[#allocation3 + $0x170] sm:$0xff] %vm1238_vm6, %v2198_v44  ;;  %2025 = vrot.lane.b32.xlu0 %v4158_v55, %s4658_s10 }
 0x254   : > { %1452 = vrot.lane.b32.xlu1 %v4158_v55, %s4655_s7 }
 0x255   : > { %v1435_v59 = vpop.permute.xlu0 %1434 }
 0x256   : > { %1513 = vst.msk [vmem:[#allocation3 + $0x188] sm:$0xff] %vm465_vm2, %v1435_v59  ;;  %v1625_v36 = vpop.permute.xlu1 %1624 }
 0x257   : > { %1704 = vst.msk [vmem:[#allocation3 + $0x180] sm:$0xff] %vm658_vm3, %v1625_v36  ;;  %2027 = vrot.lane.b32.xlu0 %v4159_v17, %s4658_s10 }
 0x258   : > { %2217 = vrot.lane.b32.xlu1 %v4190_v60, %s4659_s24 }
 0x259   : > { %v2200_v3 = vpop.permute.xlu0 %2199 }
 0x25a   : > { %2280 = vst.msk [vmem:[#allocation3 + $0x178] sm:$0xff] %vm1238_vm6, %v2200_v3  ;;  %v1175_v61 = vpop.permute.xlu1 %1174  ;;  %v2878_v33 = vld [vmem:[#allocation3 + $0x170] sm:$0xff] }
 0x25b   : > { %1255 = vst.msk [vmem:[#allocation3 + $0x80] sm:$0xff] %vm1238_vm6, %v1175_v61  ;;  %1454 = vrot.lane.b32.xlu0 %v4159_v17, %s4655_s7  ;;  %4528 = vmatprep.mubr.msk.f32.mxu1 %vm2334_vm7, %v2878_v33 }
 0x25c   : > { %1644 = vrot.lane.b32.xlu1 %v4190_v60, %s4656_s8 }
 0x25d   : > { %v1627_v35 = vpop.permute.xlu0 %1626 }
 0x25e   : > { %1705 = vst.msk [vmem:[#allocation3 + $0x188] sm:$0xff] %vm658_vm3, %v1627_v35  ;;  %v1818_v38 = vpop.permute.xlu1 %1817 }
 0x25f   : > { %1897 = vst.msk [vmem:[#allocation3 + $0x180] sm:$0xff] %vm852_vm4, %v1818_v38  ;;  %2219 = vrot.lane.b32.xlu0 %v4191_v34, %s4659_s24 }
 0x260   : > { %1194 = vrot.lane.b32.xlu1 %v4190_v60, %s4659_s24 }
 0x261   : > { %v1177_v29 = vpop.permute.xlu0 %1176  ;;  %v2879_v39 = vld [vmem:[#allocation3 + $0x178] sm:$0xff] }
 0x262   : > { %1256 = vst.msk [vmem:[#allocation3 + $0x88] sm:$0xff] %vm1238_vm6, %v1177_v29  ;;  %v1820_v32 = vpop.permute.xlu1 %1819  ;;  %4529 = vmatmul.mubr.msk.f32.gmra.mrb[14].mxu1 %vm2334_vm7, %v2879_v39  ;;  %v2315_v40 = vld [vmem:[#allocation3 + $0x80] sm:$0xff] }
 0x263   : > { %1898 = vst.msk [vmem:[#allocation3 + $0x188] sm:$0xff] %vm852_vm4, %v1820_v32  ;;  %1646 = vrot.lane.b32.xlu0 %v4191_v34, %s4656_s8  ;;  %4477 = vmatprep.mubr.msk.f32.mxu0 %vm2334_vm7, %v2315_v40  ;;  %v4162_v39 = vld [vmem:[%s4733_s6 + $0x181] sm:$0xff] }
 0x264   : > { %1837 = vrot.lane.b32.xlu1 %v5733_v58, %s4657_s9 }
 0x265   : > { %v2010_v41 = vpop.permute.xlu0 %2009 }
 0x266   : > { %2089 = vst.msk [vmem:[#allocation3 + $0x180] sm:$0xff] %vm1045_vm5, %v2010_v41  ;;  %v1437_v42 = vpop.permute.xlu1 %1436 }
 0x267   : > { %1514 = vst.msk [vmem:[#allocation3 + $0x190] sm:$0xff] %vm465_vm2, %v1437_v42  ;;  %1196 = vrot.lane.b32.xlu0 %v4191_v34, %s4659_s24 }
 0x268   : > { %1839 = vrot.lane.b32.xlu1 %v5743_v13, %s4657_s9 }
 0x269   : > { %v2012_v37 = vpop.permute.xlu0 %2011  ;;  %v2316_v46 = vld [vmem:[#allocation3 + $0x88] sm:$0xff] }
 0x26a   : > { %2090 = vst.msk [vmem:[#allocation3 + $0x188] sm:$0xff] %vm1045_vm5, %v2012_v37  ;;  %v2202_v58 = vpop.permute.xlu1 %2201  ;;  %4478 = vmatmul.mubr.msk.f32.gmra.mrb[16].mxu0 %vm2334_vm7, %v2316_v46 }
 0x26b   : > { %2281 = vst.msk [vmem:[#allocation3 + $0x180] sm:$0xff] %vm1238_vm6, %v2202_v58  ;;  %2029 = vrot.lane.b32.xlu0 %v4160_v45, %s4658_s10 }
 0x26c   : > { %1456 = vrot.lane.b32.xlu1 %v4160_v45, %s4655_s7 }
 0x26d   : > { %v1439_v24 = vpop.permute.xlu0 %1438 }
 0x26e   : > { %1515 = vst.msk [vmem:[#allocation3 + $0x198] sm:$0xff] %vm465_vm2, %v1439_v24  ;;  %v1629_v13 = vpop.permute.xlu1 %1628 }
 0x26f   : > { %1706 = vst.msk [vmem:[#allocation3 + $0x190] sm:$0xff] %vm658_vm3, %v1629_v13  ;;  %2031 = vrot.lane.b32.xlu0 %v4161_v50, %s4658_s10 }
 0x270   : > { %2221 = vrot.lane.b32.xlu1 %v4192_v18, %s4659_s24 }
 0x271   : > { %v2204_v53 = vpop.permute.xlu0 %2203 }
 0x272   : > { %2282 = vst.msk [vmem:[#allocation3 + $0x188] sm:$0xff] %vm1238_vm6, %v2204_v53  ;;  %v1179_v14 = vpop.permute.xlu1 %1178  ;;  %v4455_v23 = vpop.f32.mrb[0].mxu0  ;;  %v2880_v57 = vld [vmem:[#allocation3 + $0x180] sm:$0xff] }
 0x273   : > { %1257 = vst.msk [vmem:[#allocation3 + $0x90] sm:$0xff] %vm1238_vm6, %v1179_v14  ;;  %v2693_v62 = vsel %vm2659_vm8, %v4455_v23, 0.0  ;;  %v2763_v63 = vmul.f32 %v4455_v23, %v4455_v23  ;;  %1458 = vrot.lane.b32.xlu0 %v4161_v50, %s4655_s7  ;;  %v2497_v1 = vpop.f32.mrb[1].mxu0  ;;  %4531 = vmatprep.mubr.msk.f32.mxu1 %vm2334_vm7, %v2880_v57 }
 0x274   : > { %2661 = vst.msk [vmem:[%s5952_s12 + $0x8] sm:$0xff] %vm2659_vm8, %v4455_v23  ;;  %2660 = vst.msk [vmem:[%s5952_s12] sm:$0xff] %vm2659_vm8, %v2497_v1  ;;  %v2692_v5 = vsel %vm2659_vm8, %v2497_v1, 0.0  ;;  %v2762_v49 = vmul.f32 %v2497_v1, %v2497_v1  ;;  %1648 = vrot.lane.b32.xlu1 %v4192_v18, %s4656_s8  ;;  %v4163_v23 = vld [vmem:[%s4733_s6 + $0x189] sm:$0xff] }
 0x275   : > { %v2795_v25 = vsel %vm2659_vm8, %v2763_v63, 0.0  ;;  %v2694_v26 = vadd.f32 %v2693_v62, %v2692_v5  ;;  %v1631_v8 = vpop.permute.xlu0 %1630  ;;  %v4194_v1 = vld [vmem:[%s4733_s6 + $0x182] sm:$0xff] }
 0x276   : > { %v2794_v54 = vsel %vm2659_vm8, %v2762_v49, 0.0  ;;  %1707 = vst.msk [vmem:[#allocation3 + $0x198] sm:$0xff] %vm658_vm3, %v1631_v8  ;;  %v1822_v10 = vpop.permute.xlu1 %1821  ;;  %v4458_v11 = vpop.f32.mrb[2].mxu0 }
 0x277   : > { %v2796_v6 = vadd.f32 %v2795_v25, %v2794_v54  ;;  %1899 = vst.msk [vmem:[#allocation3 + $0x190] sm:$0xff] %vm852_vm4, %v1822_v10  ;;  %2223 = vrot.lane.b32.xlu0 %v4193_v7, %s4659_s24  ;;  %v2507_v12 = vpop.f32.mrb[3].mxu0  ;;  %v2765_v22 = vmul.f32 %v4458_v11, %v4458_v11  ;;  %v2697_v2 = vsel %vm2659_vm8, %v4458_v11, 0.0 }
 0x278   : > { %2663 = vst.msk [vmem:[%s5952_s12 + $0x18] sm:$0xff] %vm2659_vm8, %v4458_v11  ;;  %2662 = vst.msk [vmem:[%s5952_s12 + $0x10] sm:$0xff] %vm2659_vm8, %v2507_v12  ;;  %v2695_v15 = vsel %vm2659_vm8, %v2507_v12, 0.0  ;;  %v2764_v9 = vmul.f32 %v2507_v12, %v2507_v12  ;;  %1198 = vrot.lane.b32.xlu1 %v4192_v18, %s4659_s24  ;;  %v4195_v12 = vld [vmem:[%s4733_s6 + $0x18a] sm:$0xff] }
 0x279   : > { %v2696_v43 = vadd.f32 %v2695_v15, %v2694_v26  ;;  %v1181_v16 = vpop.permute.xlu0 %1180  ;;  %v2881_v19 = vld [vmem:[#allocation3 + $0x188] sm:$0xff]  ;;  %v2799_v21 = vsel %vm2659_vm8, %v2765_v22, 0.0 }
 0x27a   : > { %v2797_v4 = vsel %vm2659_vm8, %v2764_v9, 0.0  ;;  %1258 = vst.msk [vmem:[#allocation3 + $0x98] sm:$0xff] %vm1238_vm6, %v1181_v16  ;;  %v1824_v47 = vpop.permute.xlu1 %1823  ;;  %v4461_v48 = vpop.f32.mrb[4].mxu0  ;;  %4532 = vmatmul.mubr.msk.f32.gmra.mrb[16].mxu1 %vm2334_vm7, %v2881_v19  ;;  %v2317_v52 = vld [vmem:[#allocation3 + $0x90] sm:$0xff]  ;;  %v4132_v16 = vld [vmem:[%s4733_s6 + $0x198] sm:$0xff] }
 0x27b   : > { %v2798_v27 = vadd.f32 %v2797_v4, %v2796_v6  ;;  %1900 = vst.msk [vmem:[#allocation3 + $0x198] sm:$0xff] %vm852_vm4, %v1824_v47  ;;  %1650 = vrot.lane.b32.xlu0 %v4193_v7, %s4656_s8  ;;  %v2517_v0 = vpop.f32.mrb[5].mxu0  ;;  %v2698_v20 = vadd.f32 %v2697_v2, %v2696_v43  ;;  %4480 = vmatprep.mubr.msk.f32.mxu0 %vm2334_vm7, %v2317_v52  ;;  %v2701_v59 = vsel %vm2659_vm8, %v4461_v48, 0.0  ;;  %v4133_v47 = vld [vmem:[%s4733_s6 + $0x1a0] sm:$0xff] }
 0x27c   : > { %2665 = vst.msk [vmem:[%s5952_s12 + $0x28] sm:$0xff] %vm2659_vm8, %v4461_v48  ;;  %v2767_v31 = vmul.f32 %v4461_v48, %v4461_v48  ;;  %2664 = vst.msk [vmem:[%s5952_s12 + $0x20] sm:$0xff] %vm2659_vm8, %v2517_v0  ;;  %v2699_v55 = vsel %vm2659_vm8, %v2517_v0, 0.0  ;;  %v2766_v56 = vmul.f32 %v2517_v0, %v2517_v0  ;;  %1841 = vrot.lane.b32.xlu1 %v5775_v30, %s4657_s9  ;;  %v4164_v52 = vld [vmem:[%s4733_s6 + $0x199] sm:$0xff] }
 0x27d   : > { %v2700_v28 = vadd.f32 %v2699_v55, %v2698_v20  ;;  %v2800_v44 = vadd.f32 %v2799_v21, %v2798_v27  ;;  %v2014_v17 = vpop.permute.xlu0 %2013  ;;  %v4165_v20 = vld [vmem:[%s4733_s6 + $0x1a1] sm:$0xff] }
 0x27e   : > { %v2801_v60 = vsel %vm2659_vm8, %v2766_v56, 0.0  ;;  %2091 = vst.msk [vmem:[#allocation3 + $0x190] sm:$0xff] %vm1045_vm5, %v2014_v17  ;;  %v1441_v36 = vpop.permute.xlu1 %1440  ;;  %v4464_v3 = vpop.f32.mrb[6].mxu0  ;;  %v2803_v34 = vsel %vm2659_vm8, %v2767_v31, 0.0  ;;  %v4196_v31 = vld [vmem:[%s4733_s6 + $0x19a] sm:$0xff] }
 0x27f   : > { %v2802_v61 = vadd.f32 %v2801_v60, %v2800_v44  ;;  %1516 = vst.msk [vmem:[#allocation3 + $0x1a0] sm:$0xff] %vm465_vm2, %v1441_v36  ;;  %1200 = vrot.lane.b32.xlu0 %v4193_v7, %s4659_s24  ;;  %v2527_v30 = vpop.f32.mrb[7].mxu0  ;;  %v2702_v33 = vadd.f32 %v2701_v59, %v2700_v28  ;;  %v2769_v35 = vmul.f32 %v4464_v3, %v4464_v3  ;;  %v2705_v45 = vsel %vm2659_vm8, %v4464_v3, 0.0  ;;  %v4197_v28 = vld [vmem:[%s4733_s6 + $0x1a2] sm:$0xff] }
 0x280   : > { %2667 = vst.msk [vmem:[%s5952_s12 + $0x38] sm:$0xff] %vm2659_vm8, %v4464_v3  ;;  %2666 = vst.msk [vmem:[%s5952_s12 + $0x30] sm:$0xff] %vm2659_vm8, %v2527_v30  ;;  %v2703_v38 = vsel %vm2659_vm8, %v2527_v30, 0.0  ;;  %v2768_v29 = vmul.f32 %v2527_v30, %v2527_v30  ;;  %1843 = vrot.lane.b32.xlu1 %v5786_v51, %s4657_s9 }
 0x281   : > { %v2704_v32 = vadd.f32 %v2703_v38, %v2702_v33  ;;  %v2804_v40 = vadd.f32 %v2803_v34, %v2802_v61  ;;  %v2016_v41 = vpop.permute.xlu0 %2015  ;;  %v2318_v42 = vld [vmem:[#allocation3 + $0x98] sm:$0xff]  ;;  %v2807_v18 = vsel %vm2659_vm8, %v2769_v35, 0.0 }
 0x282   : > { %v2805_v37 = vsel %vm2659_vm8, %v2768_v29, 0.0  ;;  %2092 = vst.msk [vmem:[#allocation3 + $0x198] sm:$0xff] %vm1045_vm5, %v2016_v41  ;;  %v2206_v46 = vpop.permute.xlu1 %2205  ;;  %v4467_v58 = vpop.f32.mrb[8].mxu0  ;;  %4481 = vmatmul.mubr.msk.f32.gmra.mrb[18].mxu0 %vm2334_vm7, %v2318_v42 }
 0x283   : > { %v2806_v50 = vadd.f32 %v2805_v37, %v2804_v40  ;;  %2283 = vst.msk [vmem:[#allocation3 + $0x190] sm:$0xff] %vm1238_vm6, %v2206_v46  ;;  %2033 = vrot.lane.b32.xlu0 %v4162_v39, %s4658_s10  ;;  %v2537_v51 = vpop.f32.mrb[9].mxu0  ;;  %v2706_v24 = vadd.f32 %v2705_v45, %v2704_v32  ;;  %v2771_v13 = vmul.f32 %v4467_v58, %v4467_v58  ;;  %v2709_v5 = vsel %vm2659_vm8, %v4467_v58, 0.0 }
 0x284   : > { %2669 = vst.msk [vmem:[%s5952_s12 + $0x48] sm:$0xff] %vm2659_vm8, %v4467_v58  ;;  %2668 = vst.msk [vmem:[%s5952_s12 + $0x40] sm:$0xff] %vm2659_vm8, %v2537_v51  ;;  %v2707_v53 = vsel %vm2659_vm8, %v2537_v51, 0.0  ;;  %v2770_v14 = vmul.f32 %v2537_v51, %v2537_v51  ;;  %1460 = vrot.lane.b32.xlu1 %v4162_v39, %s4655_s7 }
 0x285   : > { %v2708_v57 = vadd.f32 %v2707_v53, %v2706_v24  ;;  %v2808_v62 = vadd.f32 %v2807_v18, %v2806_v50  ;;  %v1443_v63 = vpop.permute.xlu0 %1442  ;;  %v2811_v8 = vsel %vm2659_vm8, %v2771_v13, 0.0 }
 0x286   : > { %v2809_v49 = vsel %vm2659_vm8, %v2770_v14, 0.0  ;;  %1517 = vst.msk [vmem:[#allocation3 + $0x1a8] sm:$0xff] %vm465_vm2, %v1443_v63  ;;  %v1633_v7 = vpop.permute.xlu1 %1632 }
 0x287   : > { %v2810_v25 = vadd.f32 %v2809_v49, %v2808_v62  ;;  %1708 = vst.msk [vmem:[#allocation3 + $0x1a0] sm:$0xff] %vm658_vm3, %v1633_v7  ;;  %2035 = vrot.lane.b32.xlu0 %v4163_v23, %s4658_s10  ;;  %v6024_v26 = vadd.f32 %v2709_v5, %v2708_v57 }
 0x288   : > { %2225 = vrot.lane.b32.xlu1 %v4194_v1, %s4659_s24 }
 0x289   : > { %v2208_v54 = vpop.permute.xlu0 %2207  ;;  %v6028_v10 = vadd.f32 %v2811_v8, %v2810_v25 }
 0x28a   : > { %2284 = vst.msk [vmem:[#allocation3 + $0x198] sm:$0xff] %vm1238_vm6, %v2208_v54  ;;  %v1183_v11 = vpop.permute.xlu1 %1182  ;;  %v2882_v6 = vld [vmem:[#allocation3 + $0x190] sm:$0xff] }
 0x28b   : > { %1259 = vst.msk [vmem:[#allocation3 + $0xa0] sm:$0xff] %vm1238_vm6, %v1183_v11  ;;  %1462 = vrot.lane.b32.xlu0 %v4163_v23, %s4655_s7  ;;  %4534 = vmatprep.mubr.msk.f32.mxu1 %vm2334_vm7, %v2882_v6 }
 0x28c   : > { %1652 = vrot.lane.b32.xlu1 %v4194_v1, %s4656_s8 }
 0x28d   : > { %v1635_v22 = vpop.permute.xlu0 %1634 }
 0x28e   : > { %1709 = vst.msk [vmem:[#allocation3 + $0x1a8] sm:$0xff] %vm658_vm3, %v1635_v22  ;;  %v1826_v15 = vpop.permute.xlu1 %1825 }
 0x28f   : > { %1901 = vst.msk [vmem:[#allocation3 + $0x1a0] sm:$0xff] %vm852_vm4, %v1826_v15  ;;  %2227 = vrot.lane.b32.xlu0 %v4195_v12, %s4659_s24 }
 0x290   : > { %1202 = vrot.lane.b32.xlu1 %v4194_v1, %s4659_s24 }
 0x291   : > { %v1185_v9 = vpop.permute.xlu0 %1184  ;;  %v2883_v43 = vld [vmem:[#allocation3 + $0x198] sm:$0xff] }
 0x292   : > { %1260 = vst.msk [vmem:[#allocation3 + $0xa8] sm:$0xff] %vm1238_vm6, %v1185_v9  ;;  %v1828_v19 = vpop.permute.xlu1 %1827  ;;  %4535 = vmatmul.mubr.msk.f32.gmra.mrb[18].mxu1 %vm2334_vm7, %v2883_v43  ;;  %v2319_v2 = vld [vmem:[#allocation3 + $0xa0] sm:$0xff] }
 0x293   : > { %1902 = vst.msk [vmem:[#allocation3 + $0x1a8] sm:$0xff] %vm852_vm4, %v1828_v19  ;;  %1654 = vrot.lane.b32.xlu0 %v4195_v12, %s4656_s8  ;;  %4483 = vmatprep.mubr.msk.f32.mxu0 %vm2334_vm7, %v2319_v2 }
 0x294   : > { %1845 = vrot.lane.b32.xlu1 %v4132_v16, %s4657_s9 }
 0x295   : > { %v2018_v4 = vpop.permute.xlu0 %2017 }
 0x296   : > { %2093 = vst.msk [vmem:[#allocation3 + $0x1a0] sm:$0xff] %vm1045_vm5, %v2018_v4  ;;  %v1445_v48 = vpop.permute.xlu1 %1444 }
 0x297   : > { %1518 = vst.msk [vmem:[#allocation3 + $0x1b0] sm:$0xff] %vm465_vm2, %v1445_v48  ;;  %1204 = vrot.lane.b32.xlu0 %v4195_v12, %s4659_s24 }
 0x298   : > { %1847 = vrot.lane.b32.xlu1 %v4133_v47, %s4657_s9 }
 0x299   : > { %v2020_v27 = vpop.permute.xlu0 %2019  ;;  %v2320_v0 = vld [vmem:[#allocation3 + $0xa8] sm:$0xff] }
 0x29a   : > { %2094 = vst.msk [vmem:[#allocation3 + $0x1a8] sm:$0xff] %vm1045_vm5, %v2020_v27  ;;  %v2210_v21 = vpop.permute.xlu1 %2209  ;;  %4484 = vmatmul.mubr.msk.f32.gmra.mrb[20].mxu0 %vm2334_vm7, %v2320_v0 }
 0x29b   : > { %2285 = vst.msk [vmem:[#allocation3 + $0x1a0] sm:$0xff] %vm1238_vm6, %v2210_v21  ;;  %2037 = vrot.lane.b32.xlu0 %v4164_v52, %s4658_s10 }
 0x29c   : > { %2039 = vrot.lane.b32.xlu1 %v4165_v20, %s4658_s10 }
 0x29d   : > { %v1447_v55 = vpop.permute.xlu0 %1446  ;;  %v4509_v56 = vpop.f32.mrb[0].mxu1 }
 0x29e   : > { %1519 = vst.msk [vmem:[#allocation3 + $0x1b8] sm:$0xff] %vm465_vm2, %v1447_v55  ;;  %v3257_v44 = vsel %vm2659_vm8, %v4509_v56, 0.0  ;;  %v3327_v17 = vmul.f32 %v4509_v56, %v4509_v56  ;;  %v1637_v59 = vpop.permute.xlu1 %1636  ;;  %v3062_v60 = vpop.f32.mrb[1].mxu1 }
 0x29f   : > { %4270 = vst.msk [vmem:[%s5952_s12 + $0x108] sm:$0xff] %vm2659_vm8, %v4509_v56  ;;  %4269 = vst.msk [vmem:[%s5952_s12 + $0x100] sm:$0xff] %vm2659_vm8, %v3062_v60  ;;  %v3256_v36 = vsel %vm2659_vm8, %v3062_v60, 0.0  ;;  %v3326_v3 = vmul.f32 %v3062_v60, %v3062_v60  ;;  %2229 = vrot.lane.b32.xlu0 %v4196_v31, %s4659_s24 }
 0x2a0   : > { %1710 = vst.msk [vmem:[#allocation3 + $0x1b0] sm:$0xff] %vm658_vm3, %v1637_v59  ;;  %v3359_v61 = vsel %vm2659_vm8, %v3327_v17, 0.0  ;;  %v3258_v30 = vadd.f32 %v3257_v44, %v3256_v36  ;;  %2231 = vrot.lane.b32.xlu1 %v4197_v28, %s4659_s24 }
 0x2a1   : > { %v3358_v33 = vsel %vm2659_vm8, %v3326_v3, 0.0  ;;  %v2212_v34 = vpop.permute.xlu0 %2211 }
 0x2a2   : > { %v3360_v35 = vadd.f32 %v3359_v61, %v3358_v33  ;;  %2286 = vst.msk [vmem:[#allocation3 + $0x1a8] sm:$0xff] %vm1238_vm6, %v2212_v34  ;;  %v1187_v38 = vpop.permute.xlu1 %1186  ;;  %v2884_v29 = vld [vmem:[#allocation3 + $0x1a0] sm:$0xff] }
 0x2a3   : > { %1261 = vst.msk [vmem:[#allocation3 + $0xb0] sm:$0xff] %vm1238_vm6, %v1187_v38  ;;  %4537 = vmatprep.mubr.msk.f32.mxu1 %vm2334_vm7, %v2884_v29 }
 0x2a5   : > { %v1639_v39 = vpop.permute.xlu0 %1638 }
 0x2a6   : > { %1711 = vst.msk [vmem:[#allocation3 + $0x1b8] sm:$0xff] %vm658_vm3, %v1639_v39  ;;  %v1830_v32 = vpop.permute.xlu1 %1829 }
 0x2a7   : > { %1903 = vst.msk [vmem:[#allocation3 + $0x1b0] sm:$0xff] %vm852_vm4, %v1830_v32 }
 0x2a9   : > { %v1189_v40 = vpop.permute.xlu0 %1188  ;;  %v2885_v41 = vld [vmem:[#allocation3 + $0x1a8] sm:$0xff] }
 0x2aa   : > { %1262 = vst.msk [vmem:[#allocation3 + $0xb8] sm:$0xff] %vm1238_vm6, %v1189_v40  ;;  %v1832_v42 = vpop.permute.xlu1 %1831  ;;  %4538 = vmatmul.mubr.msk.f32.gmra.mrb[20].mxu1 %vm2334_vm7, %v2885_v41  ;;  %v2321_v45 = vld [vmem:[#allocation3 + $0xb0] sm:$0xff] }
 0x2ab   : > { %1904 = vst.msk [vmem:[#allocation3 + $0x1b8] sm:$0xff] %vm852_vm4, %v1832_v42  ;;  %4486 = vmatprep.mubr.msk.f32.mxu0 %vm2334_vm7, %v2321_v45 }
 0x2ad   : > { %v2022_v37 = vpop.permute.xlu0 %2021 }
 0x2ae   : > { %2095 = vst.msk [vmem:[#allocation3 + $0x1b0] sm:$0xff] %vm1045_vm5, %v2022_v37  ;;  %v1449_v46 = vpop.permute.xlu1 %1448 }
 0x2af   : > { %1520 = vst.msk [vmem:[#allocation3 + $0x1c0] sm:$0xff] %vm465_vm2, %v1449_v46 }
 0x2b1   : > { %v2024_v58 = vpop.permute.xlu0 %2023  ;;  %v4512_v50 = vpop.f32.mrb[2].mxu1  ;;  %v2322_v51 = vld [vmem:[#allocation3 + $0xb8] sm:$0xff] }
 0x2b2   : > { %2096 = vst.msk [vmem:[#allocation3 + $0x1b8] sm:$0xff] %vm1045_vm5, %v2024_v58  ;;  %v2214_v24 = vpop.permute.xlu1 %2213  ;;  %4487 = vmatmul.mubr.msk.f32.gmra.mrb[22].mxu0 %vm2334_vm7, %v2322_v51  ;;  %v3072_v18 = vpop.f32.mrb[3].mxu1  ;;  %v3329_v13 = vmul.f32 %v4512_v50, %v4512_v50  ;;  %v3261_v57 = vsel %vm2659_vm8, %v4512_v50, 0.0 }
 0x2b3   : > { %4272 = vst.msk [vmem:[%s5952_s12 + $0x118] sm:$0xff] %vm2659_vm8, %v4512_v50  ;;  %4271 = vst.msk [vmem:[%s5952_s12 + $0x110] sm:$0xff] %vm2659_vm8, %v3072_v18  ;;  %v3259_v53 = vsel %vm2659_vm8, %v3072_v18, 0.0  ;;  %v3328_v14 = vmul.f32 %v3072_v18, %v3072_v18 }
 0x2b4   : > { %2287 = vst.msk [vmem:[#allocation3 + $0x1b0] sm:$0xff] %vm1238_vm6, %v2214_v24  ;;  %v3260_v23 = vadd.f32 %v3259_v53, %v3258_v30  ;;  %v3363_v7 = vsel %vm2659_vm8, %v3329_v13, 0.0 }
 0x2b5   : > { %v3361_v62 = vsel %vm2659_vm8, %v3328_v14, 0.0  ;;  %v1451_v63 = vpop.permute.xlu0 %1450 }
 0x2b6   : > { %v3362_v1 = vadd.f32 %v3361_v62, %v3360_v35  ;;  %1521 = vst.msk [vmem:[#allocation3 + $0x1c8] sm:$0xff] %vm465_vm2, %v1451_v63  ;;  %v1641_v5 = vpop.permute.xlu1 %1640  ;;  %v3262_v49 = vadd.f32 %v3261_v57, %v3260_v23 }
 0x2b7   : > { %1712 = vst.msk [vmem:[#allocation3 + $0x1c0] sm:$0xff] %vm658_vm3, %v1641_v5 }
 0x2b8   : > { %v3364_v25 = vadd.f32 %v3363_v7, %v3362_v1 }
 0x2b9   : > { %v2216_v8 = vpop.permute.xlu0 %2215 }
 0x2ba   : > { %2288 = vst.msk [vmem:[#allocation3 + $0x1b8] sm:$0xff] %vm1238_vm6, %v2216_v8  ;;  %v1191_v54 = vpop.permute.xlu1 %1190 }
 0x2bb   : > { %v2886_v11 = vld [vmem:[#allocation3 + $0x1b0] sm:$0xff]  ;;  %1263 = vst.msk [vmem:[#allocation3 + $0xc0] sm:$0xff] %vm1238_vm6, %v1191_v54 }
 0x2bc   : > { %4540 = vmatprep.mubr.msk.f32.mxu1 %vm2334_vm7, %v2886_v11 }
 0x2bd   : > { %v1643_v6 = vpop.permute.xlu0 %1642 }
 0x2be   : > { %1713 = vst.msk [vmem:[#allocation3 + $0x1c8] sm:$0xff] %vm658_vm3, %v1643_v6  ;;  %v1834_v12 = vpop.permute.xlu1 %1833 }
 0x2bf   : > { %1905 = vst.msk [vmem:[#allocation3 + $0x1c0] sm:$0xff] %vm852_vm4, %v1834_v12 }
 0x2c1   : > { %v1193_v22 = vpop.permute.xlu0 %1192  ;;  %v2887_v15 = vld [vmem:[#allocation3 + $0x1b8] sm:$0xff] }
 0x2c2   : > { %1264 = vst.msk [vmem:[#allocation3 + $0xc8] sm:$0xff] %vm1238_vm6, %v1193_v22  ;;  %v1836_v9 = vpop.permute.xlu1 %1835  ;;  %4541 = vmatmul.mubr.msk.f32.gmra.mrb[22].mxu1 %vm2334_vm7, %v2887_v15  ;;  %v2323_v43 = vld [vmem:[#allocation3 + $0xc0] sm:$0xff] }
 0x2c3   : > { %1906 = vst.msk [vmem:[#allocation3 + $0x1c8] sm:$0xff] %vm852_vm4, %v1836_v9  ;;  %4489 = vmatprep.mubr.msk.f32.mxu0 %vm2334_vm7, %v2323_v43 }
 0x2c5   : > { %v2026_v16 = vpop.permute.xlu0 %2025  ;;  %v4515_v19 = vpop.f32.mrb[4].mxu1 }
 0x2c6   : > { %2097 = vst.msk [vmem:[#allocation3 + $0x1c0] sm:$0xff] %vm1045_vm5, %v2026_v16  ;;  %v1453_v2 = vpop.permute.xlu1 %1452  ;;  %v3082_v4 = vpop.f32.mrb[5].mxu1  ;;  %v3331_v47 = vmul.f32 %v4515_v19, %v4515_v19  ;;  %v3265_v0 = vsel %vm2659_vm8, %v4515_v19, 0.0 }
 0x2c7   : > { %4274 = vst.msk [vmem:[%s5952_s12 + $0x128] sm:$0xff] %vm2659_vm8, %v4515_v19  ;;  %4273 = vst.msk [vmem:[%s5952_s12 + $0x120] sm:$0xff] %vm2659_vm8, %v3082_v4  ;;  %v3263_v48 = vsel %vm2659_vm8, %v3082_v4, 0.0  ;;  %v3330_v52 = vmul.f32 %v3082_v4, %v3082_v4 }
 0x2c8   : > { %1522 = vst.msk [vmem:[#allocation3 + $0x1d0] sm:$0xff] %vm465_vm2, %v1453_v2  ;;  %v3264_v27 = vadd.f32 %v3263_v48, %v3262_v49  ;;  %v3367_v44 = vsel %vm2659_vm8, %v3331_v47, 0.0 }
 0x2c9   : > { %v3365_v20 = vsel %vm2659_vm8, %v3330_v52, 0.0  ;;  %v2028_v21 = vpop.permute.xlu0 %2027  ;;  %v2324_v31 = vld [vmem:[#allocation3 + $0xc8] sm:$0xff] }
 0x2ca   : > { %v3366_v55 = vadd.f32 %v3365_v20, %v3364_v25  ;;  %2098 = vst.msk [vmem:[#allocation3 + $0x1c8] sm:$0xff] %vm1045_vm5, %v2028_v21  ;;  %v2218_v56 = vpop.permute.xlu1 %2217  ;;  %4490 = vmatmul.mubr.msk.f32.gmra.mrb[24].mxu0 %vm2334_vm7, %v2324_v31  ;;  %v3266_v28 = vadd.f32 %v3265_v0, %v3264_v27 }
 0x2cb   : > { %2289 = vst.msk [vmem:[#allocation3 + $0x1c0] sm:$0xff] %vm1238_vm6, %v2218_v56 }
 0x2cc   : > { %v3368_v17 = vadd.f32 %v3367_v44, %v3366_v55 }
 0x2cd   : > { %v1455_v59 = vpop.permute.xlu0 %1454 }
 0x2ce   : > { %1523 = vst.msk [vmem:[#allocation3 + $0x1d8] sm:$0xff] %vm465_vm2, %v1455_v59  ;;  %v1645_v60 = vpop.permute.xlu1 %1644 }
 0x2cf   : > { %1714 = vst.msk [vmem:[#allocation3 + $0x1d0] sm:$0xff] %vm658_vm3, %v1645_v60 }
 0x2d1   : > { %v2220_v36 = vpop.permute.xlu0 %2219 }
 0x2d2   : > { %2290 = vst.msk [vmem:[#allocation3 + $0x1c8] sm:$0xff] %vm1238_vm6, %v2220_v36  ;;  %v1195_v3 = vpop.permute.xlu1 %1194  ;;  %v2888_v61 = vld [vmem:[#allocation3 + $0x1c0] sm:$0xff] }
 0x2d3   : > { %1265 = vst.msk [vmem:[#allocation3 + $0xd0] sm:$0xff] %vm1238_vm6, %v1195_v3  ;;  %4543 = vmatprep.mubr.msk.f32.mxu1 %vm2334_vm7, %v2888_v61 }
 0x2d5   : > { %v1647_v30 = vpop.permute.xlu0 %1646 }
 0x2d6   : > { %1715 = vst.msk [vmem:[#allocation3 + $0x1d8] sm:$0xff] %vm658_vm3, %v1647_v30  ;;  %v1838_v33 = vpop.permute.xlu1 %1837 }
 0x2d7   : > { %1907 = vst.msk [vmem:[#allocation3 + $0x1d0] sm:$0xff] %vm852_vm4, %v1838_v33 }
 0x2d9   : > { %v1197_v34 = vpop.permute.xlu0 %1196  ;;  %v4518_v35 = vpop.f32.mrb[6].mxu1  ;;  %v2889_v38 = vld [vmem:[#allocation3 + $0x1c8] sm:$0xff] }
 0x2da   : > { %1266 = vst.msk [vmem:[#allocation3 + $0xd8] sm:$0xff] %vm1238_vm6, %v1197_v34  ;;  %v1840_v29 = vpop.permute.xlu1 %1839  ;;  %v3092_v39 = vpop.f32.mrb[7].mxu1  ;;  %4544 = vmatmul.mubr.msk.f32.gmra.mrb[24].mxu1 %vm2334_vm7, %v2889_v38  ;;  %v2325_v32 = vld [vmem:[#allocation3 + $0xd0] sm:$0xff]  ;;  %v3333_v40 = vmul.f32 %v4518_v35, %v4518_v35  ;;  %v3269_v37 = vsel %vm2659_vm8, %v4518_v35, 0.0 }
 0x2db   : > { %4276 = vst.msk [vmem:[%s5952_s12 + $0x138] sm:$0xff] %vm2659_vm8, %v4518_v35  ;;  %4275 = vst.msk [vmem:[%s5952_s12 + $0x130] sm:$0xff] %vm2659_vm8, %v3092_v39  ;;  %v3267_v41 = vsel %vm2659_vm8, %v3092_v39, 0.0  ;;  %v3332_v42 = vmul.f32 %v3092_v39, %v3092_v39  ;;  %4492 = vmatprep.mubr.msk.f32.mxu0 %vm2334_vm7, %v2325_v32 }
 0x2dc   : > { %1908 = vst.msk [vmem:[#allocation3 + $0x1d8] sm:$0xff] %vm852_vm4, %v1840_v29  ;;  %v3268_v45 = vadd.f32 %v3267_v41, %v3266_v28  ;;  %v3371_v18 = vsel %vm2659_vm8, %v3333_v40, 0.0 }
 0x2dd   : > { %v3369_v46 = vsel %vm2659_vm8, %v3332_v42, 0.0  ;;  %v2030_v58 = vpop.permute.xlu0 %2029 }
 0x2de   : > { %v3370_v50 = vadd.f32 %v3369_v46, %v3368_v17  ;;  %2099 = vst.msk [vmem:[#allocation3 + $0x1d0] sm:$0xff] %vm1045_vm5, %v2030_v58  ;;  %v1457_v51 = vpop.permute.xlu1 %1456  ;;  %v3270_v24 = vadd.f32 %v3269_v37, %v3268_v45 }
 0x2df   : > { %1524 = vst.msk [vmem:[#allocation3 + $0x1e0] sm:$0xff] %vm465_vm2, %v1457_v51 }
 0x2e0   : > { %v3372_v13 = vadd.f32 %v3371_v18, %v3370_v50 }
 0x2e1   : > { %v2032_v53 = vpop.permute.xlu0 %2031  ;;  %v2326_v14 = vld [vmem:[#allocation3 + $0xd8] sm:$0xff] }
 0x2e2   : > { %2100 = vst.msk [vmem:[#allocation3 + $0x1d8] sm:$0xff] %vm1045_vm5, %v2032_v53  ;;  %v2222_v23 = vpop.permute.xlu1 %2221  ;;  %4493 = vmatmul.mubr.msk.f32.gmra.mrb[26].mxu0 %vm2334_vm7, %v2326_v14 }
 0x2e3   : > { %2291 = vst.msk [vmem:[#allocation3 + $0x1d0] sm:$0xff] %vm1238_vm6, %v2222_v23 }
 0x2e5   : > { %v1459_v57 = vpop.permute.xlu0 %1458 }
 0x2e6   : > { %1525 = vst.msk [vmem:[#allocation3 + $0x1e8] sm:$0xff] %vm465_vm2, %v1459_v57  ;;  %v1649_v62 = vpop.permute.xlu1 %1648 }
 0x2e7   : > { %1716 = vst.msk [vmem:[#allocation3 + $0x1e0] sm:$0xff] %vm658_vm3, %v1649_v62 }
 0x2e9   : > { %v2224_v63 = vpop.permute.xlu0 %2223 }
 0x2ea   : > { %2292 = vst.msk [vmem:[#allocation3 + $0x1d8] sm:$0xff] %vm1238_vm6, %v2224_v63  ;;  %v1199_v1 = vpop.permute.xlu1 %1198  ;;  %v2890_v5 = vld [vmem:[#allocation3 + $0x1d0] sm:$0xff] }
 0x2eb   : > { %1267 = vst.msk [vmem:[#allocation3 + $0xe0] sm:$0xff] %vm1238_vm6, %v1199_v1  ;;  %4546 = vmatprep.mubr.msk.f32.mxu1 %vm2334_vm7, %v2890_v5 }
 0x2ed   : > { %v1651_v49 = vpop.permute.xlu0 %1650  ;;  %v4521_v7 = vpop.f32.mrb[8].mxu1 }
 0x2ee   : > { %1717 = vst.msk [vmem:[#allocation3 + $0x1e8] sm:$0xff] %vm658_vm3, %v1651_v49  ;;  %v1842_v25 = vpop.permute.xlu1 %1841  ;;  %v3102_v8 = vpop.f32.mrb[9].mxu1  ;;  %v3335_v54 = vmul.f32 %v4521_v7, %v4521_v7  ;;  %v3273_v22 = vsel %vm2659_vm8, %v4521_v7, 0.0 }
 0x2ef   : > { %4278 = vst.msk [vmem:[%s5952_s12 + $0x148] sm:$0xff] %vm2659_vm8, %v4521_v7  ;;  %4277 = vst.msk [vmem:[%s5952_s12 + $0x140] sm:$0xff] %vm2659_vm8, %v3102_v8  ;;  %v3271_v11 = vsel %vm2659_vm8, %v3102_v8, 0.0  ;;  %v3334_v6 = vmul.f32 %v3102_v8, %v3102_v8 }
 0x2f0   : > { %1909 = vst.msk [vmem:[#allocation3 + $0x1e0] sm:$0xff] %vm852_vm4, %v1842_v25  ;;  %v3272_v12 = vadd.f32 %v3271_v11, %v3270_v24  ;;  %v3375_v47 = vsel %vm2659_vm8, %v3335_v54, 0.0 }
 0x2f1   : > { %v3373_v15 = vsel %vm2659_vm8, %v3334_v6, 0.0  ;;  %v1201_v9 = vpop.permute.xlu0 %1200  ;;  %v2891_v43 = vld [vmem:[#allocation3 + $0x1d8] sm:$0xff] }
 0x2f2   : > { %v3374_v16 = vadd.f32 %v3373_v15, %v3372_v13  ;;  %1268 = vst.msk [vmem:[#allocation3 + $0xe8] sm:$0xff] %vm1238_vm6, %v1201_v9  ;;  %v1844_v19 = vpop.permute.xlu1 %1843  ;;  %4547 = vmatmul.mubr.msk.f32.gmra.mrb[26].mxu1 %vm2334_vm7, %v2891_v43  ;;  %v2327_v2 = vld [vmem:[#allocation3 + $0xe0] sm:$0xff]  ;;  %v3274_v4 = vadd.f32 %v3273_v22, %v3272_v12 }
 0x2f3   : > { %1910 = vst.msk [vmem:[#allocation3 + $0x1e8] sm:$0xff] %vm852_vm4, %v1844_v19  ;;  %4495 = vmatprep.mubr.msk.f32.mxu0 %vm2334_vm7, %v2327_v2 }
 0x2f4   : > { %v3376_v48 = vadd.f32 %v3375_v47, %v3374_v16 }
 0x2f5   : > { %v2034_v52 = vpop.permute.xlu0 %2033  ;;  %v4470_v27 = vpop.f32.mrb[10].mxu0 }
 0x2f6   : > { %2101 = vst.msk [vmem:[#allocation3 + $0x1e0] sm:$0xff] %vm1045_vm5, %v2034_v52  ;;  %v1461_v0 = vpop.permute.xlu1 %1460  ;;  %v2547_v20 = vpop.f32.mrb[11].mxu0  ;;  %v2773_v21 = vmul.f32 %v4470_v27, %v4470_v27  ;;  %v2713_v28 = vsel %vm2659_vm8, %v4470_v27, 0.0 }
 0x2f7   : > { %2671 = vst.msk [vmem:[%s5952_s12 + $0x58] sm:$0xff] %vm2659_vm8, %v4470_v27  ;;  %2670 = vst.msk [vmem:[%s5952_s12 + $0x50] sm:$0xff] %vm2659_vm8, %v2547_v20  ;;  %v2711_v31 = vsel %vm2659_vm8, %v2547_v20, 0.0  ;;  %v2772_v55 = vmul.f32 %v2547_v20, %v2547_v20 }
 0x2f8   : > { %1526 = vst.msk [vmem:[#allocation3 + $0x1f0] sm:$0xff] %vm465_vm2, %v1461_v0  ;;  %v2712_v56 = vadd.f32 %v2711_v31, %v6024_v26  ;;  %v2815_v61 = vsel %vm2659_vm8, %v2773_v21, 0.0 }
 0x2f9   : > { %v2813_v44 = vsel %vm2659_vm8, %v2772_v55, 0.0  ;;  %v2036_v17 = vpop.permute.xlu0 %2035  ;;  %v2328_v59 = vld [vmem:[#allocation3 + $0xe8] sm:$0xff] }
 0x2fa   : > { %v2814_v60 = vadd.f32 %v2813_v44, %v6028_v10  ;;  %2102 = vst.msk [vmem:[#allocation3 + $0x1e8] sm:$0xff] %vm1045_vm5, %v2036_v17  ;;  %v2226_v36 = vpop.permute.xlu1 %2225  ;;  %4496 = vmatmul.mubr.msk.f32.gmra.mrb[28].mxu0 %vm2334_vm7, %v2328_v59  ;;  %v2714_v3 = vadd.f32 %v2713_v28, %v2712_v56 }
 0x2fb   : > { %2293 = vst.msk [vmem:[#allocation3 + $0x1e0] sm:$0xff] %vm1238_vm6, %v2226_v36 }
 0x2fc   : > { %v2816_v26 = vadd.f32 %v2815_v61, %v2814_v60 }
 0x2fd   : > { %v1463_v30 = vpop.permute.xlu0 %1462 }
 0x2fe   : > { %1527 = vst.msk [vmem:[#allocation3 + $0x1f8] sm:$0xff] %vm465_vm2, %v1463_v30  ;;  %v1653_v33 = vpop.permute.xlu1 %1652 }
 0x2ff   : > { %1718 = vst.msk [vmem:[#allocation3 + $0x1f0] sm:$0xff] %vm658_vm3, %v1653_v33 }
 0x301   : > { %v2228_v10 = vpop.permute.xlu0 %2227 }
 0x302   : > { %2294 = vst.msk [vmem:[#allocation3 + $0x1e8] sm:$0xff] %vm1238_vm6, %v2228_v10  ;;  %v1203_v34 = vpop.permute.xlu1 %1202  ;;  %v2892_v35 = vld [vmem:[#allocation3 + $0x1e0] sm:$0xff] }
 0x303   : > { %1269 = vst.msk [vmem:[#allocation3 + $0xf0] sm:$0xff] %vm1238_vm6, %v1203_v34  ;;  %4549 = vmatprep.mubr.msk.f32.mxu1 %vm2334_vm7, %v2892_v35 }
 0x305   : > { %v1655_v38 = vpop.permute.xlu0 %1654  ;;  %v4524_v29 = vpop.f32.mrb[10].mxu1 }
 0x306   : > { %1719 = vst.msk [vmem:[#allocation3 + $0x1f8] sm:$0xff] %vm658_vm3, %v1655_v38  ;;  %v1846_v39 = vpop.permute.xlu1 %1845  ;;  %v3112_v32 = vpop.f32.mrb[11].mxu1  ;;  %v3337_v40 = vmul.f32 %v4524_v29, %v4524_v29  ;;  %v3277_v37 = vsel %vm2659_vm8, %v4524_v29, 0.0 }
 0x307   : > { %4280 = vst.msk [vmem:[%s5952_s12 + $0x158] sm:$0xff] %vm2659_vm8, %v4524_v29  ;;  %4279 = vst.msk [vmem:[%s5952_s12 + $0x150] sm:$0xff] %vm2659_vm8, %v3112_v32  ;;  %v3275_v41 = vsel %vm2659_vm8, %v3112_v32, 0.0  ;;  %v3336_v42 = vmul.f32 %v3112_v32, %v3112_v32 }
 0x308   : > { %1911 = vst.msk [vmem:[#allocation3 + $0x1f0] sm:$0xff] %vm852_vm4, %v1846_v39  ;;  %v3276_v45 = vadd.f32 %v3275_v41, %v3274_v4  ;;  %v3379_v53 = vsel %vm2659_vm8, %v3337_v40, 0.0 }
 0x309   : > { %v3377_v46 = vsel %vm2659_vm8, %v3336_v42, 0.0  ;;  %v1205_v58 = vpop.permute.xlu0 %1204  ;;  %v2893_v50 = vld [vmem:[#allocation3 + $0x1e8] sm:$0xff] }
 0x30a   : > { %v3378_v51 = vadd.f32 %v3377_v46, %v3376_v48  ;;  %1270 = vst.msk [vmem:[#allocation3 + $0xf8] sm:$0xff] %vm1238_vm6, %v1205_v58  ;;  %v1848_v24 = vpop.permute.xlu1 %1847  ;;  %4550 = vmatmul.mubr.msk.f32.gmra.mrb[28].mxu1 %vm2334_vm7, %v2893_v50  ;;  %v2329_v18 = vld [vmem:[#allocation3 + $0xf0] sm:$0xff]  ;;  %v3278_v13 = vadd.f32 %v3277_v37, %v3276_v45 }
 0x30b   : > { %1912 = vst.msk [vmem:[#allocation3 + $0x1f8] sm:$0xff] %vm852_vm4, %v1848_v24  ;;  %4498 = vmatprep.mubr.msk.f32.mxu0 %vm2334_vm7, %v2329_v18 }
 0x30c   : > { %v3380_v14 = vadd.f32 %v3379_v53, %v3378_v51 }
 0x30d   : > { %v2038_v23 = vpop.permute.xlu0 %2037  ;;  %v4473_v57 = vpop.f32.mrb[12].mxu0 }
 0x30e   : > { %2103 = vst.msk [vmem:[#allocation3 + $0x1f0] sm:$0xff] %vm1045_vm5, %v2038_v23  ;;  %v2040_v62 = vpop.permute.xlu1 %2039  ;;  %v2557_v63 = vpop.f32.mrb[13].mxu0  ;;  %v2775_v1 = vmul.f32 %v4473_v57, %v4473_v57  ;;  %v2717_v25 = vsel %vm2659_vm8, %v4473_v57, 0.0 }
 0x30f   : > { %2673 = vst.msk [vmem:[%s5952_s12 + $0x68] sm:$0xff] %vm2659_vm8, %v4473_v57  ;;  %2672 = vst.msk [vmem:[%s5952_s12 + $0x60] sm:$0xff] %vm2659_vm8, %v2557_v63  ;;  %v2715_v5 = vsel %vm2659_vm8, %v2557_v63, 0.0  ;;  %v2774_v49 = vmul.f32 %v2557_v63, %v2557_v63 }
 0x310   : > { %2104 = vst.msk [vmem:[#allocation3 + $0x1f8] sm:$0xff] %vm1045_vm5, %v2040_v62  ;;  %v2716_v7 = vadd.f32 %v2715_v5, %v2714_v3  ;;  %v2819_v15 = vsel %vm2659_vm8, %v2775_v1, 0.0 }
 0x311   : > { %v2817_v8 = vsel %vm2659_vm8, %v2774_v49, 0.0  ;;  %v2230_v54 = vpop.permute.xlu0 %2229  ;;  %v2330_v11 = vld [vmem:[#allocation3 + $0xf8] sm:$0xff] }
 0x312   : > { %v2818_v6 = vadd.f32 %v2817_v8, %v2816_v26  ;;  %2295 = vst.msk [vmem:[#allocation3 + $0x1f0] sm:$0xff] %vm1238_vm6, %v2230_v54  ;;  %v2232_v12 = vpop.permute.xlu1 %2231  ;;  %4499 = vmatmul.mubr.msk.f32.gmra.mrb[30].mxu0 %vm2334_vm7, %v2330_v11  ;;  %v2718_v22 = vadd.f32 %v2717_v25, %v2716_v7 }
 0x313   : > { %2296 = vst.msk [vmem:[#allocation3 + $0x1f8] sm:$0xff] %vm1238_vm6, %v2232_v12 }
 0x314   : > { %v2820_v9 = vadd.f32 %v2819_v15, %v2818_v6 }
 0x319   : > { %v2894_v43 = vld [vmem:[#allocation3 + $0x1f0] sm:$0xff] }
 0x31a   : > { %4552 = vmatprep.mubr.msk.f32.mxu1 %vm2334_vm7, %v2894_v43  ;;  %v2895_v16 = vld [vmem:[#allocation3 + $0x1f8] sm:$0xff] }
 0x31b   : > { %4553 = vmatmul.mubr.msk.f32.gmra.mrb[30].mxu1 %vm2334_vm7, %v2895_v16 }
 0x31d   : > { %v4527_v19 = vpop.f32.mrb[12].mxu1 }
 0x31e   : > { %4282 = vst.msk [vmem:[%s5952_s12 + $0x168] sm:$0xff] %vm2659_vm8, %v4527_v19  ;;  %v3122_v2 = vpop.f32.mrb[13].mxu1  ;;  %v3339_v4 = vmul.f32 %v4527_v19, %v4527_v19  ;;  %v3281_v27 = vsel %vm2659_vm8, %v4527_v19, 0.0 }
 0x31f   : > { %4281 = vst.msk [vmem:[%s5952_s12 + $0x160] sm:$0xff] %vm2659_vm8, %v3122_v2  ;;  %v3279_v47 = vsel %vm2659_vm8, %v3122_v2, 0.0  ;;  %v3338_v48 = vmul.f32 %v3122_v2, %v3122_v2 }
 0x320   : > { %v3280_v52 = vadd.f32 %v3279_v47, %v3278_v13  ;;  %v3383_v31 = vsel %vm2659_vm8, %v3339_v4, 0.0 }
 0x321   : > { %v3381_v0 = vsel %vm2659_vm8, %v3338_v48, 0.0 }
 0x322   : > { %v3382_v20 = vadd.f32 %v3381_v0, %v3380_v14  ;;  %v3282_v21 = vadd.f32 %v3281_v27, %v3280_v52 }
 0x324   : > { %v3384_v55 = vadd.f32 %v3383_v31, %v3382_v20 }
 0x325   : > { %v4476_v56 = vpop.f32.mrb[14].mxu0 }
 0x326   : > { %2675 = vst.msk [vmem:[%s5952_s12 + $0x78] sm:$0xff] %vm2659_vm8, %v4476_v56  ;;  %v2567_v28 = vpop.f32.mrb[15].mxu0  ;;  %v2777_v44 = vmul.f32 %v4476_v56, %v4476_v56  ;;  %v2721_v36 = vsel %vm2659_vm8, %v4476_v56, 0.0 }
 0x327   : > { %2674 = vst.msk [vmem:[%s5952_s12 + $0x70] sm:$0xff] %vm2659_vm8, %v2567_v28  ;;  %v2719_v17 = vsel %vm2659_vm8, %v2567_v28, 0.0  ;;  %v2776_v59 = vmul.f32 %v2567_v28, %v2567_v28 }
 0x328   : > { %v2720_v60 = vadd.f32 %v2719_v17, %v2718_v22  ;;  %v2823_v30 = vsel %vm2659_vm8, %v2777_v44, 0.0 }
 0x329   : > { %v2821_v3 = vsel %vm2659_vm8, %v2776_v59, 0.0 }
 0x32a   : > { %v2822_v61 = vadd.f32 %v2821_v3, %v2820_v9  ;;  %v2722_v26 = vadd.f32 %v2721_v36, %v2720_v60 }
 0x32c   : > { %v2824_v33 = vadd.f32 %v2823_v30, %v2822_v61 }
 0x335   : > { %v4530_v10 = vpop.f32.mrb[14].mxu1 }
 0x336   : > { %4284 = vst.msk [vmem:[%s5952_s12 + $0x178] sm:$0xff] %vm2659_vm8, %v4530_v10  ;;  %v3132_v34 = vpop.f32.mrb[15].mxu1  ;;  %v3341_v35 = vmul.f32 %v4530_v10, %v4530_v10  ;;  %v3285_v32 = vsel %vm2659_vm8, %v4530_v10, 0.0 }
 0x337   : > { %4283 = vst.msk [vmem:[%s5952_s12 + $0x170] sm:$0xff] %vm2659_vm8, %v3132_v34  ;;  %v3283_v38 = vsel %vm2659_vm8, %v3132_v34, 0.0  ;;  %v3340_v29 = vmul.f32 %v3132_v34, %v3132_v34 }
 0x338   : > { %v3284_v39 = vadd.f32 %v3283_v38, %v3282_v21  ;;  %v3387_v45 = vsel %vm2659_vm8, %v3341_v35, 0.0 }
 0x339   : > { %v3385_v40 = vsel %vm2659_vm8, %v3340_v29, 0.0 }
 0x33a   : > { %v3386_v41 = vadd.f32 %v3385_v40, %v3384_v55  ;;  %v3286_v42 = vadd.f32 %v3285_v32, %v3284_v39 }
 0x33c   : > { %v3388_v37 = vadd.f32 %v3387_v45, %v3386_v41 }
 0x33d   : > { %v4479_v46 = vpop.f32.mrb[16].mxu0 }
 0x33e   : > { %2677 = vst.msk [vmem:[%s5952_s12 + $0x88] sm:$0xff] %vm2659_vm8, %v4479_v46  ;;  %v2577_v58 = vpop.f32.mrb[17].mxu0  ;;  %v2779_v50 = vmul.f32 %v4479_v46, %v4479_v46  ;;  %v2725_v13 = vsel %vm2659_vm8, %v4479_v46, 0.0 }
 0x33f   : > { %2676 = vst.msk [vmem:[%s5952_s12 + $0x80] sm:$0xff] %vm2659_vm8, %v2577_v58  ;;  %v2723_v51 = vsel %vm2659_vm8, %v2577_v58, 0.0  ;;  %v2778_v24 = vmul.f32 %v2577_v58, %v2577_v58 }
 0x340   : > { %v2724_v18 = vadd.f32 %v2723_v51, %v2722_v26  ;;  %v2827_v57 = vsel %vm2659_vm8, %v2779_v50, 0.0 }
 0x341   : > { %v2825_v53 = vsel %vm2659_vm8, %v2778_v24, 0.0 }
 0x342   : > { %v2826_v14 = vadd.f32 %v2825_v53, %v2824_v33  ;;  %v2726_v23 = vadd.f32 %v2725_v13, %v2724_v18 }
 0x344   : > { %v2828_v62 = vadd.f32 %v2827_v57, %v2826_v14 }
 0x34d   : > { %v4533_v63 = vpop.f32.mrb[16].mxu1 }
 0x34e   : > { %4286 = vst.msk [vmem:[%s5952_s12 + $0x188] sm:$0xff] %vm2659_vm8, %v4533_v63  ;;  %v3142_v1 = vpop.f32.mrb[17].mxu1  ;;  %v3343_v5 = vmul.f32 %v4533_v63, %v4533_v63  ;;  %v3289_v8 = vsel %vm2659_vm8, %v4533_v63, 0.0 }
 0x34f   : > { %4285 = vst.msk [vmem:[%s5952_s12 + $0x180] sm:$0xff] %vm2659_vm8, %v3142_v1  ;;  %v3287_v49 = vsel %vm2659_vm8, %v3142_v1, 0.0  ;;  %v3342_v7 = vmul.f32 %v3142_v1, %v3142_v1 }
 0x350   : > { %v3288_v25 = vadd.f32 %v3287_v49, %v3286_v42  ;;  %v3391_v12 = vsel %vm2659_vm8, %v3343_v5, 0.0 }
 0x351   : > { %v3389_v54 = vsel %vm2659_vm8, %v3342_v7, 0.0 }
 0x352   : > { %v3390_v11 = vadd.f32 %v3389_v54, %v3388_v37  ;;  %v3290_v6 = vadd.f32 %v3289_v8, %v3288_v25 }
 0x354   : > { %v3392_v22 = vadd.f32 %v3391_v12, %v3390_v11 }
 0x355   : > { %v4482_v15 = vpop.f32.mrb[18].mxu0 }
 0x356   : > { %2679 = vst.msk [vmem:[%s5952_s12 + $0x98] sm:$0xff] %vm2659_vm8, %v4482_v15  ;;  %v2587_v9 = vpop.f32.mrb[19].mxu0  ;;  %v2781_v43 = vmul.f32 %v4482_v15, %v4482_v15  ;;  %v2729_v4 = vsel %vm2659_vm8, %v4482_v15, 0.0 }
 0x357   : > { %2678 = vst.msk [vmem:[%s5952_s12 + $0x90] sm:$0xff] %vm2659_vm8, %v2587_v9  ;;  %v2727_v16 = vsel %vm2659_vm8, %v2587_v9, 0.0  ;;  %v2780_v19 = vmul.f32 %v2587_v9, %v2587_v9 }
 0x358   : > { %v2728_v2 = vadd.f32 %v2727_v16, %v2726_v23  ;;  %v2831_v27 = vsel %vm2659_vm8, %v2781_v43, 0.0 }
 0x359   : > { %v2829_v47 = vsel %vm2659_vm8, %v2780_v19, 0.0 }
 0x35a   : > { %v2830_v48 = vadd.f32 %v2829_v47, %v2828_v62  ;;  %v2730_v52 = vadd.f32 %v2729_v4, %v2728_v2 }
 0x35c   : > { %v2832_v0 = vadd.f32 %v2831_v27, %v2830_v48 }
 0x365   : > { %v4536_v20 = vpop.f32.mrb[18].mxu1 }
 0x366   : > { %4288 = vst.msk [vmem:[%s5952_s12 + $0x198] sm:$0xff] %vm2659_vm8, %v4536_v20  ;;  %v3152_v21 = vpop.f32.mrb[19].mxu1  ;;  %v3345_v31 = vmul.f32 %v4536_v20, %v4536_v20  ;;  %v3293_v44 = vsel %vm2659_vm8, %v4536_v20, 0.0 }
 0x367   : > { %4287 = vst.msk [vmem:[%s5952_s12 + $0x190] sm:$0xff] %vm2659_vm8, %v3152_v21  ;;  %v3291_v55 = vsel %vm2659_vm8, %v3152_v21, 0.0  ;;  %v3344_v56 = vmul.f32 %v3152_v21, %v3152_v21 }
 0x368   : > { %v3292_v28 = vadd.f32 %v3291_v55, %v3290_v6  ;;  %v3395_v36 = vsel %vm2659_vm8, %v3345_v31, 0.0 }
 0x369   : > { %v3393_v17 = vsel %vm2659_vm8, %v3344_v56, 0.0 }
 0x36a   : > { %v3394_v59 = vadd.f32 %v3393_v17, %v3392_v22  ;;  %v3294_v60 = vadd.f32 %v3293_v44, %v3292_v28 }
 0x36c   : > { %v3396_v3 = vadd.f32 %v3395_v36, %v3394_v59 }
 0x36d   : > { %v4485_v61 = vpop.f32.mrb[20].mxu0 }
 0x36e   : > { %2681 = vst.msk [vmem:[%s5952_s12 + $0xa8] sm:$0xff] %vm2659_vm8, %v4485_v61  ;;  %v2597_v26 = vpop.f32.mrb[21].mxu0  ;;  %v2783_v30 = vmul.f32 %v4485_v61, %v4485_v61  ;;  %v2733_v35 = vsel %vm2659_vm8, %v4485_v61, 0.0 }
 0x36f   : > { %2680 = vst.msk [vmem:[%s5952_s12 + $0xa0] sm:$0xff] %vm2659_vm8, %v2597_v26  ;;  %v2731_v33 = vsel %vm2659_vm8, %v2597_v26, 0.0  ;;  %v2782_v10 = vmul.f32 %v2597_v26, %v2597_v26 }
 0x370   : > { %v2732_v34 = vadd.f32 %v2731_v33, %v2730_v52  ;;  %v2835_v32 = vsel %vm2659_vm8, %v2783_v30, 0.0 }
 0x371   : > { %v2833_v38 = vsel %vm2659_vm8, %v2782_v10, 0.0 }
 0x372   : > { %v2834_v29 = vadd.f32 %v2833_v38, %v2832_v0  ;;  %v2734_v39 = vadd.f32 %v2733_v35, %v2732_v34 }
 0x374   : > { %v2836_v40 = vadd.f32 %v2835_v32, %v2834_v29 }
 0x37d   : > { %v4539_v41 = vpop.f32.mrb[20].mxu1 }
 0x37e   : > { %4290 = vst.msk [vmem:[%s5952_s12 + $0x1a8] sm:$0xff] %vm2659_vm8, %v4539_v41  ;;  %v3162_v42 = vpop.f32.mrb[21].mxu1  ;;  %v3347_v45 = vmul.f32 %v4539_v41, %v4539_v41  ;;  %v3297_v50 = vsel %vm2659_vm8, %v4539_v41, 0.0 }
 0x37f   : > { %4289 = vst.msk [vmem:[%s5952_s12 + $0x1a0] sm:$0xff] %vm2659_vm8, %v3162_v42  ;;  %v3295_v37 = vsel %vm2659_vm8, %v3162_v42, 0.0  ;;  %v3346_v46 = vmul.f32 %v3162_v42, %v3162_v42 }
 0x380   : > { %v3296_v58 = vadd.f32 %v3295_v37, %v3294_v60  ;;  %v3399_v13 = vsel %vm2659_vm8, %v3347_v45, 0.0 }
 0x381   : > { %v3397_v51 = vsel %vm2659_vm8, %v3346_v46, 0.0 }
 0x382   : > { %v3398_v24 = vadd.f32 %v3397_v51, %v3396_v3  ;;  %v3298_v18 = vadd.f32 %v3297_v50, %v3296_v58 }
 0x384   : > { %v3400_v53 = vadd.f32 %v3399_v13, %v3398_v24 }
 0x385   : > { %v4488_v14 = vpop.f32.mrb[22].mxu0 }
 0x386   : > { %2683 = vst.msk [vmem:[%s5952_s12 + $0xb8] sm:$0xff] %vm2659_vm8, %v4488_v14  ;;  %v2607_v23 = vpop.f32.mrb[23].mxu0  ;;  %v2785_v57 = vmul.f32 %v4488_v14, %v4488_v14  ;;  %v2737_v5 = vsel %vm2659_vm8, %v4488_v14, 0.0 }
 0x387   : > { %2682 = vst.msk [vmem:[%s5952_s12 + $0xb0] sm:$0xff] %vm2659_vm8, %v2607_v23  ;;  %v2735_v62 = vsel %vm2659_vm8, %v2607_v23, 0.0  ;;  %v2784_v63 = vmul.f32 %v2607_v23, %v2607_v23 }
 0x388   : > { %v2736_v1 = vadd.f32 %v2735_v62, %v2734_v39  ;;  %v2839_v8 = vsel %vm2659_vm8, %v2785_v57, 0.0 }
 0x389   : > { %v2837_v49 = vsel %vm2659_vm8, %v2784_v63, 0.0 }
 0x38a   : > { %v2838_v7 = vadd.f32 %v2837_v49, %v2836_v40  ;;  %v2738_v25 = vadd.f32 %v2737_v5, %v2736_v1 }
 0x38c   : > { %v2840_v54 = vadd.f32 %v2839_v8, %v2838_v7 }
 0x395   : > { %v4542_v11 = vpop.f32.mrb[22].mxu1 }
 0x396   : > { %4292 = vst.msk [vmem:[%s5952_s12 + $0x1b8] sm:$0xff] %vm2659_vm8, %v4542_v11  ;;  %v3172_v6 = vpop.f32.mrb[23].mxu1  ;;  %v3349_v12 = vmul.f32 %v4542_v11, %v4542_v11  ;;  %v3301_v43 = vsel %vm2659_vm8, %v4542_v11, 0.0 }
 0x397   : > { %4291 = vst.msk [vmem:[%s5952_s12 + $0x1b0] sm:$0xff] %vm2659_vm8, %v3172_v6  ;;  %v3299_v22 = vsel %vm2659_vm8, %v3172_v6, 0.0  ;;  %v3348_v15 = vmul.f32 %v3172_v6, %v3172_v6 }
 0x398   : > { %v3300_v9 = vadd.f32 %v3299_v22, %v3298_v18  ;;  %v3403_v4 = vsel %vm2659_vm8, %v3349_v12, 0.0 }
 0x399   : > { %v3401_v16 = vsel %vm2659_vm8, %v3348_v15, 0.0 }
 0x39a   : > { %v3402_v19 = vadd.f32 %v3401_v16, %v3400_v53  ;;  %v3302_v2 = vadd.f32 %v3301_v43, %v3300_v9 }
 0x39c   : > { %v3404_v47 = vadd.f32 %v3403_v4, %v3402_v19 }
 0x39d   : > { %v4491_v48 = vpop.f32.mrb[24].mxu0 }
 0x39e   : > { %2685 = vst.msk [vmem:[%s5952_s12 + $0xc8] sm:$0xff] %vm2659_vm8, %v4491_v48  ;;  %v2617_v52 = vpop.f32.mrb[25].mxu0  ;;  %v2787_v27 = vmul.f32 %v4491_v48, %v4491_v48  ;;  %v2741_v31 = vsel %vm2659_vm8, %v4491_v48, 0.0 }
 0x39f   : > { %2684 = vst.msk [vmem:[%s5952_s12 + $0xc0] sm:$0xff] %vm2659_vm8, %v2617_v52  ;;  %v2739_v0 = vsel %vm2659_vm8, %v2617_v52, 0.0  ;;  %v2786_v20 = vmul.f32 %v2617_v52, %v2617_v52 }
 0x3a0   : > { %v2740_v21 = vadd.f32 %v2739_v0, %v2738_v25  ;;  %v2843_v44 = vsel %vm2659_vm8, %v2787_v27, 0.0 }
 0x3a1   : > { %v2841_v55 = vsel %vm2659_vm8, %v2786_v20, 0.0 }
 0x3a2   : > { %v2842_v56 = vadd.f32 %v2841_v55, %v2840_v54  ;;  %v2742_v28 = vadd.f32 %v2741_v31, %v2740_v21 }
 0x3a4   : > { %v2844_v17 = vadd.f32 %v2843_v44, %v2842_v56 }
 0x3ad   : > { %v4545_v59 = vpop.f32.mrb[24].mxu1 }
 0x3ae   : > { %4294 = vst.msk [vmem:[%s5952_s12 + $0x1c8] sm:$0xff] %vm2659_vm8, %v4545_v59  ;;  %v3182_v60 = vpop.f32.mrb[25].mxu1  ;;  %v3351_v36 = vmul.f32 %v4545_v59, %v4545_v59  ;;  %v3305_v30 = vsel %vm2659_vm8, %v4545_v59, 0.0 }
 0x3af   : > { %4293 = vst.msk [vmem:[%s5952_s12 + $0x1c0] sm:$0xff] %vm2659_vm8, %v3182_v60  ;;  %v3303_v3 = vsel %vm2659_vm8, %v3182_v60, 0.0  ;;  %v3350_v61 = vmul.f32 %v3182_v60, %v3182_v60 }
 0x3b0   : > { %v3304_v26 = vadd.f32 %v3303_v3, %v3302_v2  ;;  %v3407_v35 = vsel %vm2659_vm8, %v3351_v36, 0.0 }
 0x3b1   : > { %v3405_v33 = vsel %vm2659_vm8, %v3350_v61, 0.0 }
 0x3b2   : > { %v3406_v10 = vadd.f32 %v3405_v33, %v3404_v47  ;;  %v3306_v34 = vadd.f32 %v3305_v30, %v3304_v26 }
 0x3b4   : > { %v3408_v38 = vadd.f32 %v3407_v35, %v3406_v10 }
 0x3b5   : > { %v4494_v29 = vpop.f32.mrb[26].mxu0 }
 0x3b6   : > { %2687 = vst.msk [vmem:[%s5952_s12 + $0xd8] sm:$0xff] %vm2659_vm8, %v4494_v29  ;;  %v2627_v39 = vpop.f32.mrb[27].mxu0  ;;  %v2789_v32 = vmul.f32 %v4494_v29, %v4494_v29  ;;  %v2745_v45 = vsel %vm2659_vm8, %v4494_v29, 0.0 }
 0x3b7   : > { %2686 = vst.msk [vmem:[%s5952_s12 + $0xd0] sm:$0xff] %vm2659_vm8, %v2627_v39  ;;  %v2743_v40 = vsel %vm2659_vm8, %v2627_v39, 0.0  ;;  %v2788_v41 = vmul.f32 %v2627_v39, %v2627_v39 }
 0x3b8   : > { %v2744_v42 = vadd.f32 %v2743_v40, %v2742_v28  ;;  %v2847_v50 = vsel %vm2659_vm8, %v2789_v32, 0.0 }
 0x3b9   : > { %v2845_v37 = vsel %vm2659_vm8, %v2788_v41, 0.0 }
 0x3ba   : > { %v2846_v46 = vadd.f32 %v2845_v37, %v2844_v17  ;;  %v2746_v58 = vadd.f32 %v2745_v45, %v2744_v42 }
 0x3bc   : > { %v2848_v51 = vadd.f32 %v2847_v50, %v2846_v46 }
 0x3c5   : > { %v4548_v24 = vpop.f32.mrb[26].mxu1 }
 0x3c6   : > { %4296 = vst.msk [vmem:[%s5952_s12 + $0x1d8] sm:$0xff] %vm2659_vm8, %v4548_v24  ;;  %v3192_v18 = vpop.f32.mrb[27].mxu1  ;;  %v3353_v13 = vmul.f32 %v4548_v24, %v4548_v24  ;;  %v3309_v57 = vsel %vm2659_vm8, %v4548_v24, 0.0 }
 0x3c7   : > { %4295 = vst.msk [vmem:[%s5952_s12 + $0x1d0] sm:$0xff] %vm2659_vm8, %v3192_v18  ;;  %v3307_v53 = vsel %vm2659_vm8, %v3192_v18, 0.0  ;;  %v3352_v14 = vmul.f32 %v3192_v18, %v3192_v18 }
 0x3c8   : > { %v3308_v23 = vadd.f32 %v3307_v53, %v3306_v34  ;;  %v3411_v5 = vsel %vm2659_vm8, %v3353_v13, 0.0 }
 0x3c9   : > { %v3409_v62 = vsel %vm2659_vm8, %v3352_v14, 0.0 }
 0x3ca   : > { %v3410_v63 = vadd.f32 %v3409_v62, %v3408_v38  ;;  %v3310_v1 = vadd.f32 %v3309_v57, %v3308_v23 }
 0x3cc   : > { %v3412_v49 = vadd.f32 %v3411_v5, %v3410_v63 }
 0x3cd   : > { %v4497_v7 = vpop.f32.mrb[28].mxu0 }
 0x3ce   : > { %2689 = vst.msk [vmem:[%s5952_s12 + $0xe8] sm:$0xff] %vm2659_vm8, %v4497_v7  ;;  %v2637_v25 = vpop.f32.mrb[29].mxu0  ;;  %v2791_v8 = vmul.f32 %v4497_v7, %v4497_v7  ;;  %v2749_v12 = vsel %vm2659_vm8, %v4497_v7, 0.0 }
 0x3cf   : > { %2688 = vst.msk [vmem:[%s5952_s12 + $0xe0] sm:$0xff] %vm2659_vm8, %v2637_v25  ;;  %v2747_v54 = vsel %vm2659_vm8, %v2637_v25, 0.0  ;;  %v2790_v11 = vmul.f32 %v2637_v25, %v2637_v25 }
 0x3d0   : > { %v2748_v6 = vadd.f32 %v2747_v54, %v2746_v58  ;;  %v2851_v43 = vsel %vm2659_vm8, %v2791_v8, 0.0  ;;  %v2297_v8 = vld [vmem:[#allocation4] sm:$0x1] }
 0x3d1   : > { %v2849_v22 = vsel %vm2659_vm8, %v2790_v11, 0.0 }
 0x3d2   : > { %v2850_v15 = vadd.f32 %v2849_v22, %v2848_v51  ;;  %v2750_v9 = vadd.f32 %v2749_v12, %v2748_v6  ;;  %v2298_v12 = vld [vmem:[#allocation5] sm:$0x1] }
 0x3d4   : > { %v2852_v16 = vadd.f32 %v2851_v43, %v2850_v15 }
 0x3dd   : > { %v4551_v19 = vpop.f32.mrb[28].mxu1 }
 0x3de   : > { %4298 = vst.msk [vmem:[%s5952_s12 + $0x1e8] sm:$0xff] %vm2659_vm8, %v4551_v19  ;;  %v3202_v2 = vpop.f32.mrb[29].mxu1  ;;  %v3355_v4 = vmul.f32 %v4551_v19, %v4551_v19  ;;  %v3313_v27 = vsel %vm2659_vm8, %v4551_v19, 0.0 }
 0x3df   : > { %4297 = vst.msk [vmem:[%s5952_s12 + $0x1e0] sm:$0xff] %vm2659_vm8, %v3202_v2  ;;  %v3311_v47 = vsel %vm2659_vm8, %v3202_v2, 0.0  ;;  %v3354_v48 = vmul.f32 %v3202_v2, %v3202_v2 }
 0x3e0   : > { %v3312_v52 = vadd.f32 %v3311_v47, %v3310_v1  ;;  %v3415_v31 = vsel %vm2659_vm8, %v3355_v4, 0.0 }
 0x3e1   : > { %v3413_v0 = vsel %vm2659_vm8, %v3354_v48, 0.0 }
 0x3e2   : > { %v3414_v20 = vadd.f32 %v3413_v0, %v3412_v49  ;;  %v3314_v21 = vadd.f32 %v3313_v27, %v3312_v52 }
 0x3e4   : > { %v3416_v55 = vadd.f32 %v3415_v31, %v3414_v20 }
 0x3e5   : > { %v4500_v56 = vpop.f32.mrb[30].mxu0 }
 0x3e6   : > { %2691 = vst.msk [vmem:[%s5952_s12 + $0xf8] sm:$0xff] %vm2659_vm8, %v4500_v56  ;;  %v2647_v28 = vpop.f32.mrb[31].mxu0  ;;  %v2793_v44 = vmul.f32 %v4500_v56, %v4500_v56  ;;  %v2753_v36 = vsel %vm2659_vm8, %v4500_v56, 0.0 }
 0x3e7   : > { %2690 = vst.msk [vmem:[%s5952_s12 + $0xf0] sm:$0xff] %vm2659_vm8, %v2647_v28  ;;  %v2751_v17 = vsel %vm2659_vm8, %v2647_v28, 0.0  ;;  %v2792_v59 = vmul.f32 %v2647_v28, %v2647_v28 }
 0x3e8   : > { %v2752_v60 = vadd.f32 %v2751_v17, %v2750_v9  ;;  %v2855_v30 = vsel %vm2659_vm8, %v2793_v44, 0.0 }
 0x3e9   : > { %v2853_v3 = vsel %vm2659_vm8, %v2792_v59, 0.0 }
 0x3ea   : > { %v2754_v61 = vadd.f32 %v2753_v36, %v2752_v60  ;;  %v2854_v26 = vadd.f32 %v2853_v3, %v2852_v16 }
 0x3ec   : > { %v2755_v33 = vrot.slane %v2754_v61, 4  ;;  %v2856_v10 = vadd.f32 %v2855_v30, %v2854_v26 }
 0x3ee   : > { %v2756_v34 = vadd.f32 %v2755_v33, %v2754_v61  ;;  %v2857_v35 = vrot.slane %v2856_v10, 4  ;;  %v4554_v38 = vpop.f32.mrb[30].mxu1 }
 0x3ef   : > { %4300 = vst.msk [vmem:[%s5952_s12 + $0x1f8] sm:$0xff] %vm2659_vm8, %v4554_v38  ;;  %v3357_v29 = vmul.f32 %v4554_v38, %v4554_v38  ;;  %v3212_v39 = vpop.f32.mrb[31].mxu1  ;;  %v3317_v46 = vsel %vm2659_vm8, %v4554_v38, 0.0 }
 0x3f0   : > { %v2757_v32 = vrot.slane %v2756_v34, 2  ;;  %v2858_v40 = vadd.f32 %v2857_v35, %v2856_v10  ;;  %4299 = vst.msk [vmem:[%s5952_s12 + $0x1f0] sm:$0xff] %vm2659_vm8, %v3212_v39  ;;  %v3315_v41 = vsel %vm2659_vm8, %v3212_v39, 0.0  ;;  %v3356_v42 = vmul.f32 %v3212_v39, %v3212_v39 }
 0x3f1   : > { %v3316_v45 = vadd.f32 %v3315_v41, %v3314_v21  ;;  %v3419_v18 = vsel %vm2659_vm8, %v3357_v29, 0.0 }
 0x3f2   : > { %v2859_v37 = vrot.slane %v2858_v40, 2  ;;  %v3417_v58 = vsel %vm2659_vm8, %v3356_v42, 0.0  ;;  %v2758_v50 = vadd.f32 %v2757_v32, %v2756_v34 }
 0x3f3   : > { %v3318_v51 = vadd.f32 %v3317_v46, %v3316_v45  ;;  %v3418_v24 = vadd.f32 %v3417_v58, %v3416_v55 }
 0x3f4   : > { %v2860_v13 = vadd.f32 %v2859_v37, %v2858_v40  ;;  %v2759_v23 = vrot.slane %v2758_v50, 1 }
 0x3f5   : > { %v3319_v53 = vrot.slane %v3318_v51, 4  ;;  %v3420_v14 = vadd.f32 %v3419_v18, %v3418_v24 }
 0x3f6   : > { %v2861_v63 = vrot.slane %v2860_v13, 1  ;;  %v2760_v49 = vadd.f32 %v2759_v23, %v2758_v50 }
 0x3f7   : > { %v3320_v57 = vadd.f32 %v3319_v53, %v3318_v51  ;;  %v3421_v62 = vrot.slane %v3420_v14, 4 }
 0x3f8   : > { %v2862_v54 = vadd.f32 %v2861_v63, %v2860_v13  ;;  %v2761_v22 = vadd.f32 %v2760_v49, %v2297_v8 }
 0x3f9   : > { %v3321_v1 = vrot.slane %v3320_v57, 2  ;;  %v3422_v5 = vadd.f32 %v3421_v62, %v3420_v14 }
 0x3fa   : > { %v2863_v43 = vadd.f32 %v2862_v54, %v2298_v12 }
 0x3fb   : > { %v3322_v7 = vadd.f32 %v3321_v1, %v3320_v57  ;;  %v3423_v25 = vrot.slane %v3422_v5, 2 }
 0x3fd   : > { %v3323_v11 = vrot.slane %v3322_v7, 1  ;;  %v3424_v6 = vadd.f32 %v3423_v25, %v3422_v5 }
 0x3ff   : > { %v3324_v15 = vadd.f32 %v3323_v11, %v3322_v7  ;;  %v3425_v9 = vrot.slane %v3424_v6, 1 }
 0x401   : > { %v3325_v16 = vadd.f32 %v3324_v15, %v2761_v22  ;;  %v3426_v19 = vadd.f32 %v3425_v9, %v3424_v6 }
 0x403   : > { %v3427_v2 = vadd.f32 %v3426_v19, %v2863_v43  ;;  %3429 = vst.msk [vmem:[#allocation4] sm:$0x1] %vm3428_vm9, %v3325_v16 }
 0x405   : > { %3430 = vst.msk [vmem:[#allocation5] sm:$0x1] %vm3428_vm9, %v3427_v2 }
 0x406 PF: > { %p4301_p9 = scmp.ne.s32.totalorder %s4640_s16, 1 }
 0x407   : > { %s4660_s6 = smov (!%p4301_p9), 120   ;;  %v3448_v48 = vlaneseq (!%p4301_p9)  ;;  %s4661_s7 = smov (!%p4301_p9), 8   ;;  %vm3455_vm10 = vcmask (!%p4301_p9), 64512   ;;  %v3471_v33 = vld [vmem:[%s6843_s2] sm:$0x1] (!%p4301_p9)  ;;  %vm3621_vm11 = vcmask (!%p4301_p9), 130048  }
 0x408   : > { %3434 = sbr.rel (%p4301_p9) target bundleno = 1357 (0x54d), region = 48  ;;  %s4375_s16 = sshll.u32 (!%p4301_p9), %s4636_s15, 9  ;;  %v6375_v34 = vld [vmem:[%s6844_s3] sm:$0x1] (!%p4301_p9) }
 0x409   : > { %v3449_v52 = vshrl.u32 (!%p4301_p9), %v3448_v48, 7  ;;  %s6377_s14 = scalar_lea.vmem (!%p4301_p9), [#allocation2], %s4375_s16 }
 0x40a   : > { %v3435_v4 = vld [vmem:[#allocation4] sm:$0x1] (!%p4301_p9)  ;;  %v3482_v38 = vld [vmem:[%s6377_s14 + $0x8] sm:$0xff] (!%p4301_p9)  ;;  %v3483_v29 = vld [vmem:[%s6377_s14 + $0x10] sm:$0xff] (!%p4301_p9) }
 0x40b   : > { %3438 = vrot.lane.b32.xlu0 (!%p4301_p9), %v3435_v4, %s4660_s6  ;;  %v6364_v27 = vsub.s32 (!%p4301_p9), 0, %v3449_v52  ;;  %v3481_v35 = vld [vmem:[%s6377_s14] sm:$0xff] (!%p4301_p9)  ;;  %v3484_v39 = vld [vmem:[%s6377_s14 + $0x18] sm:$0xff] (!%p4301_p9)  ;;  %v3486_v40 = vld [vmem:[%s6377_s14 + $0x28] sm:$0xff] (!%p4301_p9) }
 0x40c   : > { %v3436_v47 = vld [vmem:[#allocation5] sm:$0x1] (!%p4301_p9)  ;;  %v3487_v41 = vld [vmem:[%s6377_s14 + $0x30] sm:$0xff] (!%p4301_p9)  ;;  %v3488_v45 = vld [vmem:[%s6377_s14 + $0x38] sm:$0xff] (!%p4301_p9) }
 0x40d   : > { %v3485_v32 = vld [vmem:[%s6377_s14 + $0x20] sm:$0xff] (!%p4301_p9)  ;;  %v3490_v46 = vld [vmem:[%s6377_s14 + $0x48] sm:$0xff] (!%p4301_p9)  ;;  %v3491_v58 = vld [vmem:[%s6377_s14 + $0x50] sm:$0xff] (!%p4301_p9) }
 0x40e   : > { %v3489_v37 = vld [vmem:[%s6377_s14 + $0x40] sm:$0xff] (!%p4301_p9)  ;;  %v3492_v50 = vld [vmem:[%s6377_s14 + $0x58] sm:$0xff] (!%p4301_p9)  ;;  %v3494_v24 = vld [vmem:[%s6377_s14 + $0x68] sm:$0xff] (!%p4301_p9) }
 0x40f   : > { %3443 = vrot.lane.b32.xlu0 %v3436_v47, %s4660_s6  ;;  %v3493_v51 = vld [vmem:[%s6377_s14 + $0x60] sm:$0xff]  ;;  %v3495_v53 = vld [vmem:[%s6377_s14 + $0x70] sm:$0xff]  ;;  %v3496_v14 = vld [vmem:[%s6377_s14 + $0x78] sm:$0xff] }
 0x410   : > { %v3497_v23 = vld [vmem:[%s6377_s14 + $0x80] sm:$0xff]  ;;  %v3498_v57 = vld [vmem:[%s6377_s14 + $0x88] sm:$0xff]  ;;  %v3499_v62 = vld [vmem:[%s6377_s14 + $0x90] sm:$0xff] }
 0x411   : > { %v3500_v63 = vld [vmem:[%s6377_s14 + $0x98] sm:$0xff]  ;;  %v3501_v25 = vld [vmem:[%s6377_s14 + $0xa0] sm:$0xff]  ;;  %v3502_v8 = vld [vmem:[%s6377_s14 + $0xa8] sm:$0xff] }
 0x412   : > { %v3503_v54 = vld [vmem:[%s6377_s14 + $0xb0] sm:$0xff]  ;;  %v3504_v15 = vld [vmem:[%s6377_s14 + $0xb8] sm:$0xff]  ;;  %v3505_v9 = vld [vmem:[%s6377_s14 + $0xc0] sm:$0xff] }
 0x413   : > { %v3506_v43 = vld [vmem:[%s6377_s14 + $0xc8] sm:$0xff]  ;;  %v3508_v48 = vld [vmem:[%s6377_s14 + $0xd8] sm:$0xff]  ;;  %v3509_v52 = vld [vmem:[%s6377_s14 + $0xe0] sm:$0xff] }
 0x47d   : > { %v3439_v0 = vpop.permute.xlu0 %3438 }
 0x47e   : > { %v3441_v20 = vadd.f32 %v3439_v0, %v3435_v4 }
 0x480   : > { %v3451_v21 = vrot.slane %v3441_v20, %v6364_v27 }
 0x481   : > { %v3444_v31 = vpop.permute.xlu0 %3443 }
 0x482   : > { %v3446_v55 = vadd.f32 %v3444_v31, %v3436_v47  ;;  %3452 = vrot.lane.b32.xlu1 %v3451_v21, %s4661_s7  ;;  %v3507_v47 = vld [vmem:[%s6377_s14 + $0xd0] sm:$0xff] }
 0x484   : > { %v3461_v56 = vrot.slane %v3446_v55, %v6364_v27 }
 0x486   : > { %3462 = vrot.lane.b32.xlu1 %v3461_v56, %s4661_s7  ;;  %v3511_v56 = vld [vmem:[%s6377_s14 + $0xf0] sm:$0xff] }
 0x4f4   : > { %v3453_v28 = vpop.permute.xlu1 %3452 }
 0x4f5   : > { %v3456_v44 = vsel %vm3455_vm10, %v3441_v20, %v3453_v28  ;;  %v3512_v28 = vld [vmem:[%s6377_s14 + $0xf8] sm:$0xff] }
 0x4f6   : > { %v3466_v17 = vmul.f32 0.00048828125, %v3456_v44 }
 0x4f8   : > { %v3463_v59 = vpop.permute.xlu1 %3462  ;;  %v3468_v36 = vmul.f32 %v3466_v17, %v3466_v17 }
 0x4f9   : > { %v3465_v60 = vsel %vm3455_vm10, %v3446_v55, %v3463_v59  ;;  %v3510_v55 = vld [vmem:[%s6377_s14 + $0xe8] sm:$0xff] }
 0x4fa   : > { %v3467_v3 = vmul.f32 0.00048828125, %v3465_v60 }
 0x4fc   : > { %v3469_v61 = vsub.f32 %v3467_v3, %v3468_v36  ;;  %v4306_v36 = vld [vmem:[%s6377_s14 + $0x100] sm:$0xff]  ;;  %v4307_v3 = vld [vmem:[%s6377_s14 + $0x108] sm:$0xff] }
 0x4fe   : > { %v3470_v26 = vmax.f32 %v3469_v61, 0.0  ;;  %v4308_v61 = vld [vmem:[%s6377_s14 + $0x110] sm:$0xff] }
 0x500   : > { %v3472_v30 = vadd.f32 1e-05, %v3470_v26 }
 0x502   : > { %4612 = vrsqrt.f32 %v3472_v30 }
 0x50c   : > { %v4613_v10 = vpop.eup %4612 }
 0x50d   : > { %v3474_v42 = vmul.f32 %v4613_v10, %v3471_v33 }
 0x50f   : > { %v3476_v18 = vmul.f32 %v3474_v42, %v3466_v17  ;;  %v6394_v13 = vrot.slane %v3474_v42, %v6364_v27 }
 0x511   : > { %v3477_v1 = vsub.f32 %v6375_v34, %v3476_v18  ;;  %v3519_v5 = vmul.f32 %v6394_v13, %v3481_v35  ;;  %v3520_v49 = vmul.f32 %v6394_v13, %v3482_v38  ;;  %v3521_v7 = vmul.f32 %v6394_v13, %v3483_v29  ;;  %v4309_v34 = vld [vmem:[%s6377_s14 + $0x118] sm:$0xff]  ;;  %v4310_v35 = vld [vmem:[%s6377_s14 + $0x120] sm:$0xff]  ;;  %v4311_v38 = vld [vmem:[%s6377_s14 + $0x128] sm:$0xff] }
 0x512   : > { %v3522_v11 = vmul.f32 %v6394_v13, %v3484_v39  ;;  %v3523_v6 = vmul.f32 %v6394_v13, %v3485_v32  ;;  %v3524_v12 = vmul.f32 %v6394_v13, %v3486_v40  ;;  %v3525_v22 = vmul.f32 %v6394_v13, %v3487_v41 }
 0x513   : > { %v3526_v16 = vmul.f32 %v6394_v13, %v3488_v45  ;;  %v3527_v19 = vmul.f32 %v6394_v13, %v3489_v37  ;;  %v3528_v2 = vmul.f32 %v6394_v13, %v3490_v46  ;;  %v3529_v4 = vmul.f32 %v6394_v13, %v3491_v58 }
 0x514   : > { %v3530_v0 = vmul.f32 %v6394_v13, %v3492_v50  ;;  %v3531_v20 = vmul.f32 %v6394_v13, %v3493_v51  ;;  %v3532_v21 = vmul.f32 %v6394_v13, %v3494_v24  ;;  %v3533_v31 = vmul.f32 %v6394_v13, %v3495_v53 }
 0x515   : > { %v3534_v44 = vmul.f32 %v6394_v13, %v3496_v14  ;;  %v3535_v17 = vmul.f32 %v6394_v13, %v3497_v23  ;;  %v3536_v59 = vmul.f32 %v6394_v13, %v3498_v57  ;;  %v3537_v60 = vmul.f32 %v6394_v13, %v3499_v62 }
 0x516   : > { %v3538_v26 = vmul.f32 %v6394_v13, %v3500_v63  ;;  %v3539_v30 = vmul.f32 %v6394_v13, %v3501_v25  ;;  %v3540_v33 = vmul.f32 %v6394_v13, %v3502_v8  ;;  %v3541_v10 = vmul.f32 %v6394_v13, %v3503_v54 }
 0x517   : > { %v3542_v29 = vmul.f32 %v6394_v13, %v3504_v15  ;;  %v3543_v39 = vmul.f32 %v6394_v13, %v3505_v9  ;;  %v3544_v32 = vmul.f32 %v6394_v13, %v3506_v43  ;;  %v3545_v40 = vmul.f32 %v6394_v13, %v3507_v47 }
 0x518   : > { %v3546_v41 = vmul.f32 %v6394_v13, %v3508_v48  ;;  %v3547_v42 = vmul.f32 %v6394_v13, %v3509_v52  ;;  %v3548_v45 = vmul.f32 %v6394_v13, %v3510_v55  ;;  %v3549_v37 = vmul.f32 %v6394_v13, %v3511_v56 }
 0x519   : > { %v3550_v46 = vmul.f32 %v6394_v13, %v3512_v28  ;;  %v6454_v58 = vrot.slane %v3477_v1, %v6364_v27  ;;  %v6457_v50 = vmul.f32 %v4306_v36, %v6394_v13  ;;  %v6460_v51 = vmul.f32 %v4307_v3, %v6394_v13 }
 0x51a   : > { %v6463_v24 = vmul.f32 %v4308_v61, %v6394_v13  ;;  %v6466_v18 = vmul.f32 %v4309_v34, %v6394_v13  ;;  %v6469_v53 = vmul.f32 %v4310_v35, %v6394_v13  ;;  %v6472_v14 = vmul.f32 %v4311_v38, %v6394_v13  ;;  %v4312_v34 = vld [vmem:[%s6377_s14 + $0x130] sm:$0xff]  ;;  %v4313_v35 = vld [vmem:[%s6377_s14 + $0x138] sm:$0xff]  ;;  %v4314_v38 = vld [vmem:[%s6377_s14 + $0x140] sm:$0xff] }
 0x51b   : > { %v3557_v27 = vadd.f32 %v6454_v58, %v3519_v5  ;;  %v3558_v23 = vadd.f32 %v6454_v58, %v3520_v49  ;;  %v3559_v57 = vadd.f32 %v6454_v58, %v3521_v7  ;;  %v3560_v62 = vadd.f32 %v6454_v58, %v3522_v11 }
 0x51c   : > { %v3561_v63 = vadd.f32 %v6454_v58, %v3523_v6  ;;  %v3562_v1 = vadd.f32 %v6454_v58, %v3524_v12  ;;  %v3563_v25 = vadd.f32 %v6454_v58, %v3525_v22  ;;  %v3564_v8 = vadd.f32 %v6454_v58, %v3526_v16 }
 0x51d   : > { %v3565_v54 = vadd.f32 %v6454_v58, %v3527_v19  ;;  %v3566_v15 = vadd.f32 %v6454_v58, %v3528_v2  ;;  %v3567_v5 = vadd.f32 %v6454_v58, %v3529_v4  ;;  %v3568_v49 = vadd.f32 %v6454_v58, %v3530_v0 }
 0x51e   : > { %v6487_v7 = vadd.f32 %v6454_v58, %v3531_v20  ;;  %v6490_v11 = vadd.f32 %v6454_v58, %v3532_v21  ;;  %v6493_v6 = vadd.f32 %v6454_v58, %v3533_v31  ;;  %v6496_v12 = vadd.f32 %v6454_v58, %v3534_v44 }
 0x51f   : > { %v6499_v22 = vadd.f32 %v6454_v58, %v3535_v17  ;;  %v6502_v9 = vadd.f32 %v6454_v58, %v3536_v59  ;;  %v6505_v43 = vadd.f32 %v6454_v58, %v3537_v60  ;;  %v6508_v16 = vadd.f32 %v6454_v58, %v3538_v26 }
 0x520   : > { %v6511_v19 = vadd.f32 %v6454_v58, %v3539_v30  ;;  %v6514_v2 = vadd.f32 %v6454_v58, %v3540_v33  ;;  %v6517_v4 = vadd.f32 %v6454_v58, %v3541_v10  ;;  %v6520_v47 = vadd.f32 %v6454_v58, %v3542_v29  ;;  %v4315_v29 = vld [vmem:[%s6377_s14 + $0x148] sm:$0xff] }
 0x521   : > { %v6523_v48 = vadd.f32 %v6454_v58, %v3543_v39  ;;  %v6526_v52 = vadd.f32 %v6454_v58, %v3544_v32  ;;  %v6529_v0 = vadd.f32 %v6454_v58, %v3545_v40  ;;  %v6532_v20 = vadd.f32 %v6454_v58, %v3546_v41 }
 0x522   : > { %v6535_v21 = vadd.f32 %v6454_v58, %v3547_v42  ;;  %v6538_v31 = vadd.f32 %v6454_v58, %v3548_v45  ;;  %v6541_v55 = vadd.f32 %v6454_v58, %v3549_v37  ;;  %v6544_v56 = vadd.f32 %v6454_v58, %v3550_v46  ;;  %v4316_v42 = vld [vmem:[%s6377_s14 + $0x150] sm:$0xff]  ;;  %v4317_v45 = vld [vmem:[%s6377_s14 + $0x158] sm:$0xff]  ;;  %v4318_v37 = vld [vmem:[%s6377_s14 + $0x160] sm:$0xff] }
 0x523   : > { %v3589_v28 = vmax.f32 %v3557_v27, 0.0  ;;  %v3590_v44 = vmax.f32 %v3558_v23, 0.0  ;;  %v3591_v17 = vmax.f32 %v3559_v57, 0.0  ;;  %v3592_v59 = vmax.f32 %v3560_v62, 0.0  ;;  %v4319_v46 = vld [vmem:[%s6377_s14 + $0x168] sm:$0xff] }
 0x524   : > { %v3593_v60 = vmax.f32 %v3561_v63, 0.0  ;;  %v3594_v36 = vmax.f32 %v3562_v1, 0.0  ;;  %v3595_v3 = vmax.f32 %v3563_v25, 0.0  ;;  %v3596_v61 = vmax.f32 %v3564_v8, 0.0  ;;  %v4320_v63 = vld [vmem:[%s6377_s14 + $0x170] sm:$0xff]  ;;  %v4321_v1 = vld [vmem:[%s6377_s14 + $0x178] sm:$0xff] }
 0x525   : > { %v3597_v26 = vmax.f32 %v3565_v54, 0.0  ;;  %v3598_v30 = vmax.f32 %v3566_v15, 0.0  ;;  %v3599_v33 = vmax.f32 %v3567_v5, 0.0  ;;  %v3600_v10 = vmax.f32 %v3568_v49, 0.0  ;;  %3622 = vst.msk [vmem:[%s4728_s29] sm:$0xff] %vm3621_vm11, %v3589_v28  ;;  %3623 = vst.msk [vmem:[%s4728_s29 + $0x8] sm:$0xff] %vm3621_vm11, %v3590_v44 }
 0x526   : > { %3624 = vst.msk [vmem:[%s4728_s29 + $0x10] sm:$0xff] %vm3621_vm11, %v3591_v17  ;;  %3625 = vst.msk [vmem:[%s4728_s29 + $0x18] sm:$0xff] %vm3621_vm11, %v3592_v59  ;;  %v3601_v39 = vmax.f32 %v6487_v7, 0.0  ;;  %v3602_v32 = vmax.f32 %v6490_v11, 0.0  ;;  %v3603_v40 = vmax.f32 %v6493_v6, 0.0  ;;  %v3604_v41 = vmax.f32 %v6496_v12, 0.0 }
 0x527   : > { %3626 = vst.msk [vmem:[%s4728_s29 + $0x20] sm:$0xff] %vm3621_vm11, %v3593_v60  ;;  %3627 = vst.msk [vmem:[%s4728_s29 + $0x28] sm:$0xff] %vm3621_vm11, %v3594_v36  ;;  %v3605_v27 = vmax.f32 %v6499_v22, 0.0  ;;  %v3606_v23 = vmax.f32 %v6502_v9, 0.0  ;;  %v3607_v57 = vmax.f32 %v6505_v43, 0.0  ;;  %v3608_v62 = vmax.f32 %v6508_v16, 0.0 }
 0x528   : > { %3628 = vst.msk [vmem:[%s4728_s29 + $0x30] sm:$0xff] %vm3621_vm11, %v3595_v3  ;;  %3629 = vst.msk [vmem:[%s4728_s29 + $0x38] sm:$0xff] %vm3621_vm11, %v3596_v61  ;;  %v4322_v25 = vld [vmem:[%s6377_s14 + $0x180] sm:$0xff]  ;;  %v3609_v8 = vmax.f32 %v6511_v19, 0.0  ;;  %v3610_v54 = vmax.f32 %v6514_v2, 0.0  ;;  %v3611_v15 = vmax.f32 %v6517_v4, 0.0  ;;  %v3699_v44 = vmul.f32 %v4316_v42, %v6394_v13 }
 0x529   : > { %3630 = vst.msk [vmem:[%s4728_s29 + $0x40] sm:$0xff] %vm3621_vm11, %v3597_v26  ;;  %3631 = vst.msk [vmem:[%s4728_s29 + $0x48] sm:$0xff] %vm3621_vm11, %v3598_v30  ;;  %v3612_v5 = vmax.f32 %v6520_v47, 0.0  ;;  %v4323_v49 = vld [vmem:[%s6377_s14 + $0x188] sm:$0xff]  ;;  %v4324_v7 = vld [vmem:[%s6377_s14 + $0x190] sm:$0xff]  ;;  %v3613_v11 = vmax.f32 %v6523_v48, 0.0  ;;  %v3700_v17 = vmul.f32 %v4317_v45, %v6394_v13  ;;  %v3701_v59 = vmul.f32 %v4318_v37, %v6394_v13 }
 0x52a   : > { %3632 = vst.msk [vmem:[%s4728_s29 + $0x50] sm:$0xff] %vm3621_vm11, %v3599_v33  ;;  %3633 = vst.msk [vmem:[%s4728_s29 + $0x58] sm:$0xff] %vm3621_vm11, %v3600_v10  ;;  %v3614_v6 = vmax.f32 %v6526_v52, 0.0  ;;  %v3615_v12 = vmax.f32 %v6529_v0, 0.0  ;;  %v3616_v22 = vmax.f32 %v6532_v20, 0.0  ;;  %v4325_v9 = vld [vmem:[%s6377_s14 + $0x198] sm:$0xff]  ;;  %v3695_v0 = vmul.f32 %v4312_v34, %v6394_v13 }
 0x52b   : > { %3634 = vst.msk [vmem:[%s4728_s29 + $0x60] sm:$0xff] %vm3621_vm11, %v3601_v39  ;;  %3635 = vst.msk [vmem:[%s4728_s29 + $0x68] sm:$0xff] %vm3621_vm11, %v3602_v32  ;;  %v4326_v43 = vld [vmem:[%s6377_s14 + $0x1a0] sm:$0xff]  ;;  %v3617_v16 = vmax.f32 %v6535_v21, 0.0  ;;  %v3618_v19 = vmax.f32 %v6538_v31, 0.0  ;;  %v3619_v2 = vmax.f32 %v6541_v55, 0.0  ;;  %v3696_v20 = vmul.f32 %v4313_v35, %v6394_v13 }
 0x52c   : > { %3636 = vst.msk [vmem:[%s4728_s29 + $0x70] sm:$0xff] %vm3621_vm11, %v3603_v40  ;;  %3637 = vst.msk [vmem:[%s4728_s29 + $0x78] sm:$0xff] %vm3621_vm11, %v3604_v41  ;;  %v3620_v4 = vmax.f32 %v6544_v56, 0.0  ;;  %v4327_v47 = vld [vmem:[%s6377_s14 + $0x1a8] sm:$0xff]  ;;  %v4328_v48 = vld [vmem:[%s6377_s14 + $0x1b0] sm:$0xff]  ;;  %v3697_v21 = vmul.f32 %v4314_v38, %v6394_v13  ;;  %v3698_v31 = vmul.f32 %v4315_v29, %v6394_v13  ;;  %v3702_v60 = vmul.f32 %v4319_v46, %v6394_v13 }
 0x52d   : > { %3638 = vst.msk [vmem:[%s4728_s29 + $0x80] sm:$0xff] %vm3621_vm11, %v3605_v27  ;;  %3639 = vst.msk [vmem:[%s4728_s29 + $0x88] sm:$0xff] %vm3621_vm11, %v3606_v23  ;;  %v4329_v52 = vld [vmem:[%s6377_s14 + $0x1b8] sm:$0xff]  ;;  %v4330_v55 = vld [vmem:[%s6377_s14 + $0x1c0] sm:$0xff]  ;;  %v3703_v26 = vmul.f32 %v4320_v63, %v6394_v13  ;;  %v3704_v30 = vmul.f32 %v4321_v1, %v6394_v13  ;;  %v3705_v33 = vmul.f32 %v4322_v25, %v6394_v13 }
 0x52e   : > { %3640 = vst.msk [vmem:[%s4728_s29 + $0x90] sm:$0xff] %vm3621_vm11, %v3607_v57  ;;  %3641 = vst.msk [vmem:[%s4728_s29 + $0x98] sm:$0xff] %vm3621_vm11, %v3608_v62  ;;  %v4331_v56 = vld [vmem:[%s6377_s14 + $0x1c8] sm:$0xff]  ;;  %v4332_v28 = vld [vmem:[%s6377_s14 + $0x1d0] sm:$0xff]  ;;  %v3706_v10 = vmul.f32 %v4323_v49, %v6394_v13  ;;  %v3707_v38 = vmul.f32 %v4324_v7, %v6394_v13  ;;  %v3708_v29 = vmul.f32 %v4325_v9, %v6394_v13 }
 0x52f   : > { %3642 = vst.msk [vmem:[%s4728_s29 + $0xa0] sm:$0xff] %vm3621_vm11, %v3609_v8  ;;  %3643 = vst.msk [vmem:[%s4728_s29 + $0xa8] sm:$0xff] %vm3621_vm11, %v3610_v54  ;;  %v4333_v36 = vld [vmem:[%s6377_s14 + $0x1d8] sm:$0xff]  ;;  %v4334_v3 = vld [vmem:[%s6377_s14 + $0x1e0] sm:$0xff]  ;;  %v3709_v39 = vmul.f32 %v4326_v43, %v6394_v13  ;;  %v3710_v32 = vmul.f32 %v4327_v47, %v6394_v13  ;;  %v3711_v40 = vmul.f32 %v4328_v48, %v6394_v13 }
 0x530   : > { %3644 = vst.msk [vmem:[%s4728_s29 + $0xb0] sm:$0xff] %vm3621_vm11, %v3611_v15  ;;  %3645 = vst.msk [vmem:[%s4728_s29 + $0xb8] sm:$0xff] %vm3621_vm11, %v3612_v5  ;;  %v4335_v61 = vld [vmem:[%s6377_s14 + $0x1e8] sm:$0xff]  ;;  %v4336_v34 = vld [vmem:[%s6377_s14 + $0x1f0] sm:$0xff]  ;;  %v3712_v41 = vmul.f32 %v4329_v52, %v6394_v13  ;;  %v3713_v42 = vmul.f32 %v4330_v55, %v6394_v13  ;;  %v3714_v45 = vmul.f32 %v4331_v56, %v6394_v13 }
 0x531   : > { %3646 = vst.msk [vmem:[%s4728_s29 + $0xc0] sm:$0xff] %vm3621_vm11, %v3613_v11  ;;  %3647 = vst.msk [vmem:[%s4728_s29 + $0xc8] sm:$0xff] %vm3621_vm11, %v3614_v6  ;;  %v4337_v35 = vld [vmem:[%s6377_s14 + $0x1f8] sm:$0xff]  ;;  %v3715_v37 = vmul.f32 %v4332_v28, %v6394_v13  ;;  %v3716_v46 = vmul.f32 %v4333_v36, %v6394_v13  ;;  %v3717_v27 = vmul.f32 %v4334_v3, %v6394_v13 }
 0x532   : > { %3648 = vst.msk [vmem:[%s4728_s29 + $0xd0] sm:$0xff] %vm3621_vm11, %v3615_v12  ;;  %3649 = vst.msk [vmem:[%s4728_s29 + $0xd8] sm:$0xff] %vm3621_vm11, %v3616_v22  ;;  %v3718_v23 = vmul.f32 %v4335_v61, %v6394_v13  ;;  %v3719_v57 = vmul.f32 %v4336_v34, %v6394_v13  ;;  %v3720_v62 = vmul.f32 %v4337_v35, %v6394_v13 }
 0x533   : > { %3650 = vst.msk [vmem:[%s4728_s29 + $0xe0] sm:$0xff] %vm3621_vm11, %v3617_v16  ;;  %3651 = vst.msk [vmem:[%s4728_s29 + $0xe8] sm:$0xff] %vm3621_vm11, %v3618_v19  ;;  %v3721_v63 = vadd.f32 %v6457_v50, %v6454_v58  ;;  %v3722_v1 = vadd.f32 %v6460_v51, %v6454_v58  ;;  %v3723_v25 = vadd.f32 %v6463_v24, %v6454_v58 }
 0x534   : > { %3652 = vst.msk [vmem:[%s4728_s29 + $0xf0] sm:$0xff] %vm3621_vm11, %v3619_v2  ;;  %3653 = vst.msk [vmem:[%s4728_s29 + $0xf8] sm:$0xff] %vm3621_vm11, %v3620_v4  ;;  %v3724_v8 = vadd.f32 %v6466_v18, %v6454_v58  ;;  %v3725_v54 = vadd.f32 %v6469_v53, %v6454_v58  ;;  %v3726_v15 = vadd.f32 %v6472_v14, %v6454_v58 }
 0x535   : > { %v3727_v13 = vadd.f32 %v3695_v0, %v6454_v58  ;;  %v3728_v5 = vadd.f32 %v3696_v20, %v6454_v58  ;;  %v3729_v50 = vadd.f32 %v3697_v21, %v6454_v58  ;;  %v3730_v51 = vadd.f32 %v3698_v31, %v6454_v58 }
 0x536   : > { %v3731_v49 = vadd.f32 %v3699_v44, %v6454_v58  ;;  %v3732_v24 = vadd.f32 %v3700_v17, %v6454_v58  ;;  %v3733_v18 = vadd.f32 %v3701_v59, %v6454_v58  ;;  %v3734_v7 = vadd.f32 %v3702_v60, %v6454_v58 }
 0x537   : > { %v3735_v53 = vadd.f32 %v3703_v26, %v6454_v58  ;;  %v3736_v14 = vadd.f32 %v3704_v30, %v6454_v58  ;;  %v3737_v11 = vadd.f32 %v3705_v33, %v6454_v58  ;;  %v3738_v6 = vadd.f32 %v3706_v10, %v6454_v58 }
 0x538   : > { %v6707_v12 = vadd.f32 %v3707_v38, %v6454_v58  ;;  %v6710_v22 = vadd.f32 %v3708_v29, %v6454_v58  ;;  %v6713_v9 = vadd.f32 %v3709_v39, %v6454_v58  ;;  %v6716_v43 = vadd.f32 %v3710_v32, %v6454_v58 }
 0x539   : > { %v6719_v16 = vadd.f32 %v3711_v40, %v6454_v58  ;;  %v6722_v19 = vadd.f32 %v3712_v41, %v6454_v58  ;;  %v6725_v2 = vadd.f32 %v3713_v42, %v6454_v58  ;;  %v6728_v4 = vadd.f32 %v3714_v45, %v6454_v58 }
 0x53a   : > { %v6731_v47 = vadd.f32 %v3715_v37, %v6454_v58  ;;  %v6734_v48 = vadd.f32 %v3716_v46, %v6454_v58  ;;  %v6737_v52 = vadd.f32 %v3717_v27, %v6454_v58  ;;  %v6740_v0 = vadd.f32 %v3718_v23, %v6454_v58 }
 0x53b   : > { %v6743_v20 = vadd.f32 %v3719_v57, %v6454_v58  ;;  %v6746_v21 = vadd.f32 %v3720_v62, %v6454_v58  ;;  %v3753_v31 = vmax.f32 %v3721_v63, 0.0  ;;  %v3754_v55 = vmax.f32 %v3722_v1, 0.0 }
 0x53c   : > { %v3755_v56 = vmax.f32 %v3723_v25, 0.0  ;;  %v3756_v28 = vmax.f32 %v3724_v8, 0.0  ;;  %v3757_v44 = vmax.f32 %v3725_v54, 0.0  ;;  %v3758_v17 = vmax.f32 %v3726_v15, 0.0 }
 0x53d   : > { %v3759_v59 = vmax.f32 %v3727_v13, 0.0  ;;  %v3760_v60 = vmax.f32 %v3728_v5, 0.0  ;;  %v3761_v36 = vmax.f32 %v3729_v50, 0.0  ;;  %v3762_v3 = vmax.f32 %v3730_v51, 0.0  ;;  %4338 = vst.msk [vmem:[%s4728_s29 + $0x100] sm:$0xff] %vm3621_vm11, %v3753_v31  ;;  %4339 = vst.msk [vmem:[%s4728_s29 + $0x108] sm:$0xff] %vm3621_vm11, %v3754_v55 }
 0x53e   : > { %v3763_v58 = vmax.f32 %v3731_v49, 0.0  ;;  %v3764_v61 = vmax.f32 %v3732_v24, 0.0  ;;  %v3765_v26 = vmax.f32 %v3733_v18, 0.0  ;;  %v3766_v30 = vmax.f32 %v3734_v7, 0.0  ;;  %4340 = vst.msk [vmem:[%s4728_s29 + $0x110] sm:$0xff] %vm3621_vm11, %v3755_v56  ;;  %4341 = vst.msk [vmem:[%s4728_s29 + $0x118] sm:$0xff] %vm3621_vm11, %v3756_v28 }
 0x53f   : > { %4342 = vst.msk [vmem:[%s4728_s29 + $0x120] sm:$0xff] %vm3621_vm11, %v3757_v44  ;;  %4343 = vst.msk [vmem:[%s4728_s29 + $0x128] sm:$0xff] %vm3621_vm11, %v3758_v17  ;;  %v3767_v33 = vmax.f32 %v3735_v53, 0.0  ;;  %v3768_v10 = vmax.f32 %v3736_v14, 0.0  ;;  %v3769_v34 = vmax.f32 %v3737_v11, 0.0  ;;  %v3770_v35 = vmax.f32 %v3738_v6, 0.0 }
 0x540   : > { %4344 = vst.msk [vmem:[%s4728_s29 + $0x130] sm:$0xff] %vm3621_vm11, %v3759_v59  ;;  %4345 = vst.msk [vmem:[%s4728_s29 + $0x138] sm:$0xff] %vm3621_vm11, %v3760_v60  ;;  %v3771_v38 = vmax.f32 %v6707_v12, 0.0  ;;  %v3772_v29 = vmax.f32 %v6710_v22, 0.0  ;;  %v3773_v39 = vmax.f32 %v6713_v9, 0.0  ;;  %v3774_v32 = vmax.f32 %v6716_v43, 0.0 }
 0x541   : > { %4346 = vst.msk [vmem:[%s4728_s29 + $0x140] sm:$0xff] %vm3621_vm11, %v3761_v36  ;;  %4347 = vst.msk [vmem:[%s4728_s29 + $0x148] sm:$0xff] %vm3621_vm11, %v3762_v3  ;;  %v3775_v40 = vmax.f32 %v6719_v16, 0.0  ;;  %v3776_v41 = vmax.f32 %v6722_v19, 0.0  ;;  %v3777_v42 = vmax.f32 %v6725_v2, 0.0  ;;  %v3778_v45 = vmax.f32 %v6728_v4, 0.0 }
 0x542   : > { %4348 = vst.msk [vmem:[%s4728_s29 + $0x150] sm:$0xff] %vm3621_vm11, %v3763_v58  ;;  %4349 = vst.msk [vmem:[%s4728_s29 + $0x158] sm:$0xff] %vm3621_vm11, %v3764_v61  ;;  %v3779_v37 = vmax.f32 %v6731_v47, 0.0  ;;  %v3780_v46 = vmax.f32 %v6734_v48, 0.0  ;;  %v3781_v27 = vmax.f32 %v6737_v52, 0.0  ;;  %v3782_v23 = vmax.f32 %v6740_v0, 0.0 }
 0x543   : > { %4350 = vst.msk [vmem:[%s4728_s29 + $0x160] sm:$0xff] %vm3621_vm11, %v3765_v26  ;;  %4351 = vst.msk [vmem:[%s4728_s29 + $0x168] sm:$0xff] %vm3621_vm11, %v3766_v30  ;;  %v3783_v57 = vmax.f32 %v6743_v20, 0.0  ;;  %v3784_v62 = vmax.f32 %v6746_v21, 0.0 }
 0x544   : > { %4352 = vst.msk [vmem:[%s4728_s29 + $0x170] sm:$0xff] %vm3621_vm11, %v3767_v33  ;;  %4353 = vst.msk [vmem:[%s4728_s29 + $0x178] sm:$0xff] %vm3621_vm11, %v3768_v10 }
 0x545   : > { %4354 = vst.msk [vmem:[%s4728_s29 + $0x180] sm:$0xff] %vm3621_vm11, %v3769_v34  ;;  %4355 = vst.msk [vmem:[%s4728_s29 + $0x188] sm:$0xff] %vm3621_vm11, %v3770_v35 }
 0x546   : > { %4356 = vst.msk [vmem:[%s4728_s29 + $0x190] sm:$0xff] %vm3621_vm11, %v3771_v38  ;;  %4357 = vst.msk [vmem:[%s4728_s29 + $0x198] sm:$0xff] %vm3621_vm11, %v3772_v29 }
 0x547   : > { %4358 = vst.msk [vmem:[%s4728_s29 + $0x1a0] sm:$0xff] %vm3621_vm11, %v3773_v39  ;;  %4359 = vst.msk [vmem:[%s4728_s29 + $0x1a8] sm:$0xff] %vm3621_vm11, %v3774_v32 }
 0x548   : > { %4360 = vst.msk [vmem:[%s4728_s29 + $0x1b0] sm:$0xff] %vm3621_vm11, %v3775_v40  ;;  %4361 = vst.msk [vmem:[%s4728_s29 + $0x1b8] sm:$0xff] %vm3621_vm11, %v3776_v41 }
 0x549   : > { %4362 = vst.msk [vmem:[%s4728_s29 + $0x1c0] sm:$0xff] %vm3621_vm11, %v3777_v42  ;;  %4363 = vst.msk [vmem:[%s4728_s29 + $0x1c8] sm:$0xff] %vm3621_vm11, %v3778_v45 }
 0x54a   : > { %4364 = vst.msk [vmem:[%s4728_s29 + $0x1d0] sm:$0xff] %vm3621_vm11, %v3779_v37  ;;  %4365 = vst.msk [vmem:[%s4728_s29 + $0x1d8] sm:$0xff] %vm3621_vm11, %v3780_v46 }
 0x54b   : > { %4366 = vst.msk [vmem:[%s4728_s29 + $0x1e0] sm:$0xff] %vm3621_vm11, %v3781_v27  ;;  %4367 = vst.msk [vmem:[%s4728_s29 + $0x1e8] sm:$0xff] %vm3621_vm11, %v3782_v23 }
 0x54c   : > { %4368 = vst.msk [vmem:[%s4728_s29 + $0x1f0] sm:$0xff] %vm3621_vm11, %v3783_v57  ;;  %4369 = vst.msk [vmem:[%s4728_s29 + $0x1f8] sm:$0xff] %vm3621_vm11, %v3784_v62 }
 0x54d PF: > { %s14_s19 = sadd.s32 1, %s4652_s19   ;;  %s6899_s15 = smov %s4644_s17 }
 0x54e   : > { %p11_p10 = scmp.ge.s32.totalorder %s14_s19, 6   ;;  %s6900_s16 = smov %s4648_s18 }
 0x54f   : > { %s6901_s17 = smov %s6904_s20  ;;  %s6902_s18 = smov %s6908_s21 }
 0x550   :  { %13 = sbr.rel (!%p11_p10) target bundleno = 3 (0x3), region = 87 }

</bundles_post_ra>
